<compile_context>
chip_gen: v7x
topology: tpu7x:2x2x1
jax: 0.10.0
libtpu: 0.0.40
codegen_flags: <defaults>
</compile_context>

<pallas_src>
import functools

import jax
import jax.numpy as jnp
from jax.experimental import pallas as pl
from jax.experimental.pallas import tpu as pltpu


# ---------------------------------------------------------------------------
# Fused Pallas kernel (built for a static configuration)
# ---------------------------------------------------------------------------
def _make_fused_kernel(T, Bp, H, num_layers):
    """Kernel ref order:
         inputs : x2d, (w_ih_l, w_hh_l, b_l) * num_layers, w_out, b_out
         outputs: out
         scratch: seq_sc (VMEM, (T*Bp, H)) -- inter-layer sequence buffer
    """

    def kernel(*refs):
        n_in = 3 + 3 * num_layers
        x_ref = refs[0]
        wout_ref = refs[n_in - 2]       # (H, O)
        bout_ref = refs[n_in - 1]       # (1, O)
        out_ref = refs[n_in]            # (Bp, O)
        seq_sc = refs[n_in + 1]         # (T*Bp, H) scratch

        # Current layer input, flattened time-major: (T*Bp, I_layer).
        seq2d = x_ref[...]

        h = None
        for l in range(num_layers):
            wih_ref = refs[1 + 3 * l]   # (4, I_l, H)
            whh_ref = refs[2 + 3 * l]   # (4, H, H)
            b_ref = refs[3 + 3 * l]     # (4, 1, H)

            # Hoisted input projection for all T timesteps, per gate: (T*Bp, H).
            xp = [
                jnp.dot(seq2d, wih_ref[g], preferred_element_type=jnp.float32)
                + b_ref[g]
                for g in range(4)
            ]
            # Keep recurrent weights resident as values for the whole loop.
            whh = [whh_ref[g] for g in range(4)]

            h = jnp.zeros((Bp, H), jnp.float32)
            c = jnp.zeros((Bp, H), jnp.float32)

            last_layer = (l + 1 == num_layers)
            for t in range(T):          # fully unrolled: T is small and static
                r0 = t * Bp
                rec = [
                    jnp.dot(h, whh[g], preferred_element_type=jnp.float32)
                    for g in range(4)
                ]
                i_g = jax.nn.sigmoid(xp[0][r0:r0 + Bp, :] + rec[0])
                f_g = jax.nn.sigmoid(xp[1][r0:r0 + Bp, :] + rec[1])
                g_g = jnp.tanh(xp[2][r0:r0 + Bp, :] + rec[2])
                o_g = jax.nn.sigmoid(xp[3][r0:r0 + Bp, :] + rec[3])
                c = f_g * c + i_g * g_g
                h = o_g * jnp.tanh(c)
                if not last_layer:
                    seq_sc[r0:r0 + Bp, :] = h
            if not last_layer:
                seq2d = seq_sc[...]

        # Head fused in: relu(last hidden) @ W_out^T + b_out.
        hr = jnp.maximum(h, 0.0)
        out_ref[...] = (
            jnp.dot(hr, wout_ref[...], preferred_element_type=jnp.float32)
            + bout_ref[...]
        ).astype(out_ref.dtype)

    return kernel


# ---------------------------------------------------------------------------
# Parameter preparation (done once, outside the forward pass)
# ---------------------------------------------------------------------------
def prepare_params(raw, hidden):
    """Pre-transpose weights, pre-add biases, and split per gate (i, f, g, o)."""
    H = hidden
    layers = []
    for (w_ih, w_hh, b_ih, b_hh) in raw["lstm"]:
        in_sz = w_ih.shape[1]
        wih_t = jnp.transpose(w_ih.reshape(4, H, in_sz), (0, 2, 1))  # (4, I, H)
        whh_t = jnp.transpose(w_hh.reshape(4, H, H), (0, 2, 1))      # (4, H, H)
        b = (b_ih + b_hh).reshape(4, 1, H)                           # (4, 1, H)
        layers.append((wih_t, whh_t, b))
    return {
        "layers": layers,
        "w_out_t": jnp.transpose(raw["w_out"]),   # (H, O)
        "b_out": raw["b_out"].reshape(1, -1),     # (1, O)
    }


# ---------------------------------------------------------------------------
# Forward wrapper
# ---------------------------------------------------------------------------
def lstm_forward(x, prep, hidden):
    """x: (B, T, I) batch-first.  Returns (B, 1, output_size)."""
    B, T, I = x.shape
    H = hidden
    O = prep["w_out_t"].shape[1]
    num_layers = len(prep["layers"])
    Bp = max(8, -(-B // 8) * 8)        # pad batch to a full sublane group

    xt = jnp.transpose(x, (1, 0, 2))   # (T, B, I) time-major
    if Bp != B:
        xt = jnp.pad(xt, ((0, 0), (0, Bp - B), (0, 0)))
    x2d = xt.reshape(T * Bp, I)        # rows [t*Bp:(t+1)*Bp] = timestep t

    args = [x2d]
    for (wih_t, whh_t, b) in prep["layers"]:
        args += [wih_t, whh_t, b]
    args += [prep["w_out_t"], prep["b_out"]]

    out = pl.pallas_call(
        _make_fused_kernel(T, Bp, H, num_layers),
        out_shape=jax.ShapeDtypeStruct((Bp, O), x.dtype),
        scratch_shapes=[pltpu.VMEM((T * Bp, H), jnp.float32)],
    )(*args)
    return out[:B][:, None, :]         # drop batch padding, unsqueeze(1)


# ---------------------------------------------------------------------------
# Pure-JAX reference (sanity check only)
# ---------------------------------------------------------------------------
def lstm_forward_ref(x, params, hidden):
    B, T, I = x.shape
    H = hidden
    seq = x
    for (w_ih, w_hh, b_ih, b_hh) in params["lstm"]:
        h = jnp.zeros((B, H), jnp.float32)
        c = jnp.zeros((B, H), jnp.float32)
        outs = []
        for t in range(T):
            g = seq[:, t, :] @ w_ih.T + b_ih + h @ w_hh.T + b_hh
            i_g = jax.nn.sigmoid(g[:, 0 * H:1 * H])
            f_g = jax.nn.sigmoid(g[:, 1 * H:2 * H])
            g_g = jnp.tanh(g[:, 2 * H:3 * H])
            o_g = jax.nn.sigmoid(g[:, 3 * H:4 * H])
            c = f_g * c + i_g * g_g
            h = o_g * jnp.tanh(c)
            outs.append(h)
        seq = jnp.stack(outs, axis=1)
    y = jnp.maximum(seq[:, -1, :], 0.0)
    y = y @ params["w_out"].T + params["b_out"]
    return y[:, None, :]


# ---------------------------------------------------------------------------
# Parameter init (PyTorch-style uniform(-1/sqrt(H), 1/sqrt(H)), gate order ifgo)
# ---------------------------------------------------------------------------
def init_params(key, input_size, hidden, num_layers, output_size):
    params = {"lstm": []}
    bound = 1.0 / jnp.sqrt(hidden)
    in_sz = input_size
    for _ in range(num_layers):
        key, k1, k2, k3, k4 = jax.random.split(key, 5)
        w_ih = jax.random.uniform(k1, (4 * hidden, in_sz), jnp.float32, -bound, bound)
        w_hh = jax.random.uniform(k2, (4 * hidden, hidden), jnp.float32, -bound, bound)
        b_ih = jax.random.uniform(k3, (4 * hidden,), jnp.float32, -bound, bound)
        b_hh = jax.random.uniform(k4, (4 * hidden,), jnp.float32, -bound, bound)
        params["lstm"].append((w_ih, w_hh, b_ih, b_hh))
        in_sz = hidden
    key, k1, k2 = jax.random.split(key, 3)
    ob = 1.0 / jnp.sqrt(hidden)
    params["w_out"] = jax.random.uniform(k1, (output_size, hidden), jnp.float32, -ob, ob)
    params["b_out"] = jax.random.uniform(k2, (output_size,), jnp.float32, -ob, ob)
    return params


# ---------------------------------------------------------------------------
if __name__ == "__main__":
    # Module config: LSTM(input_size=16, hidden_lstm=32, num_layer_lstm=2,
    #                     hidden_fc=None, output_size=8, bi=False)
    B, T, I = 4, 8, 16
    H, NUM_LAYERS, OUT = 32, 2, 8

    key = jax.random.PRNGKey(0)
    key, kx, kp = jax.random.split(key, 3)
    x = jax.random.normal(kx, (B, T, I), jnp.float32)
    raw = init_params(kp, I, H, NUM_LAYERS, OUT)
    prep = prepare_params(raw, H)

    fwd = jax.jit(functools.partial(lstm_forward, hidden=H))
    y = jax.block_until_ready(fwd(x, prep))
    assert y.shape == (B, 1, OUT), y.shape

    # Loose-tolerance sanity check (MXU f32 matmuls run at reduced precision).
    y_ref = lstm_forward_ref(x, raw, H)
    assert jnp.allclose(y, y_ref, rtol=5e-2, atol=5e-2), (
        float(jnp.max(jnp.abs(y - y_ref)))
    )

    print("KERNEL_OK")
</pallas_src>

<mosaic_0001>
module attributes {stable_mosaic.version = 11 : i64} {
  func.func @kernel(%arg0: memref<64x16xf32, #tpu.memory_space<vmem>>, %arg1: memref<4x16x32xf32, #tpu.memory_space<vmem>>, %arg2: memref<4x32x32xf32, #tpu.memory_space<vmem>>, %arg3: memref<4x1x32xf32, #tpu.memory_space<vmem>>, %arg4: memref<4x32x32xf32, #tpu.memory_space<vmem>>, %arg5: memref<4x32x32xf32, #tpu.memory_space<vmem>>, %arg6: memref<4x1x32xf32, #tpu.memory_space<vmem>>, %arg7: memref<32x8xf32, #tpu.memory_space<vmem>>, %arg8: memref<1x8xf32, #tpu.memory_space<vmem>>, %arg9: memref<8x8xf32, #tpu.memory_space<vmem>>, %arg10: memref<64x32xf32, #tpu.memory_space<vmem>>) attributes {dimension_semantics = [], scalar_prefetch = 0 : i64, scratch_operands = 1 : i64, tpu.core_type = #tpu.core_type<tc>} {
    %c0 = arith.constant 0 : index
    %c0_0 = arith.constant 0 : index
    %0 = vector.load %arg0[%c0, %c0_0] : memref<64x16xf32, #tpu.memory_space<vmem>>, vector<64x16xf32>
    %c0_1 = arith.constant 0 : index
    %c0_2 = arith.constant 0 : index
    %c0_3 = arith.constant 0 : index
    %1 = vector.load %arg1[%c0_1, %c0_2, %c0_3] : memref<4x16x32xf32, #tpu.memory_space<vmem>>, vector<1x16x32xf32>
    %2 = vector.shape_cast %1 : vector<1x16x32xf32> to vector<16x32xf32>
    %cst = arith.constant dense<0.000000e+00> : vector<64x32xf32>
    %3 = tpu.matmul %0, %2, %cst {dimension_numbers = #tpu.dot_dimension_numbers<[1], [0], [0], [1], [0, 0, 1, 1], [], []>} : vector<64x16xf32>, vector<16x32xf32>, vector<64x32xf32> -> vector<64x32xf32>
    %c0_4 = arith.constant 0 : index
    %c0_5 = arith.constant 0 : index
    %c0_6 = arith.constant 0 : index
    %4 = vector.load %arg3[%c0_4, %c0_5, %c0_6] : memref<4x1x32xf32, #tpu.memory_space<vmem>>, vector<1x1x32xf32>
    %5 = vector.shape_cast %4 : vector<1x1x32xf32> to vector<1x32xf32>
    %6 = vector.broadcast %5 : vector<1x32xf32> to vector<64x32xf32>
    %7 = arith.addf %3, %6 : vector<64x32xf32>
    %c1 = arith.constant 1 : index
    %c0_7 = arith.constant 0 : index
    %c0_8 = arith.constant 0 : index
    %8 = vector.load %arg1[%c1, %c0_7, %c0_8] : memref<4x16x32xf32, #tpu.memory_space<vmem>>, vector<1x16x32xf32>
    %9 = vector.shape_cast %8 : vector<1x16x32xf32> to vector<16x32xf32>
    %cst_9 = arith.constant dense<0.000000e+00> : vector<64x32xf32>
    %10 = tpu.matmul %0, %9, %cst_9 {dimension_numbers = #tpu.dot_dimension_numbers<[1], [0], [0], [1], [0, 0, 1, 1], [], []>} : vector<64x16xf32>, vector<16x32xf32>, vector<64x32xf32> -> vector<64x32xf32>
    %c1_10 = arith.constant 1 : index
    %c0_11 = arith.constant 0 : index
    %c0_12 = arith.constant 0 : index
    %11 = vector.load %arg3[%c1_10, %c0_11, %c0_12] : memref<4x1x32xf32, #tpu.memory_space<vmem>>, vector<1x1x32xf32>
    %12 = vector.shape_cast %11 : vector<1x1x32xf32> to vector<1x32xf32>
    %13 = vector.broadcast %12 : vector<1x32xf32> to vector<64x32xf32>
    %14 = arith.addf %10, %13 : vector<64x32xf32>
    %c2 = arith.constant 2 : index
    %c0_13 = arith.constant 0 : index
    %c0_14 = arith.constant 0 : index
    %15 = vector.load %arg1[%c2, %c0_13, %c0_14] : memref<4x16x32xf32, #tpu.memory_space<vmem>>, vector<1x16x32xf32>
    %16 = vector.shape_cast %15 : vector<1x16x32xf32> to vector<16x32xf32>
    %cst_15 = arith.constant dense<0.000000e+00> : vector<64x32xf32>
    %17 = tpu.matmul %0, %16, %cst_15 {dimension_numbers = #tpu.dot_dimension_numbers<[1], [0], [0], [1], [0, 0, 1, 1], [], []>} : vector<64x16xf32>, vector<16x32xf32>, vector<64x32xf32> -> vector<64x32xf32>
    %c2_16 = arith.constant 2 : index
    %c0_17 = arith.constant 0 : index
    %c0_18 = arith.constant 0 : index
    %18 = vector.load %arg3[%c2_16, %c0_17, %c0_18] : memref<4x1x32xf32, #tpu.memory_space<vmem>>, vector<1x1x32xf32>
    %19 = vector.shape_cast %18 : vector<1x1x32xf32> to vector<1x32xf32>
    %20 = vector.broadcast %19 : vector<1x32xf32> to vector<64x32xf32>
    %21 = arith.addf %17, %20 : vector<64x32xf32>
    %c3 = arith.constant 3 : index
    %c0_19 = arith.constant 0 : index
    %c0_20 = arith.constant 0 : index
    %22 = vector.load %arg1[%c3, %c0_19, %c0_20] : memref<4x16x32xf32, #tpu.memory_space<vmem>>, vector<1x16x32xf32>
    %23 = vector.shape_cast %22 : vector<1x16x32xf32> to vector<16x32xf32>
    %cst_21 = arith.constant dense<0.000000e+00> : vector<64x32xf32>
    %24 = tpu.matmul %0, %23, %cst_21 {dimension_numbers = #tpu.dot_dimension_numbers<[1], [0], [0], [1], [0, 0, 1, 1], [], []>} : vector<64x16xf32>, vector<16x32xf32>, vector<64x32xf32> -> vector<64x32xf32>
    %c3_22 = arith.constant 3 : index
    %c0_23 = arith.constant 0 : index
    %c0_24 = arith.constant 0 : index
    %25 = vector.load %arg3[%c3_22, %c0_23, %c0_24] : memref<4x1x32xf32, #tpu.memory_space<vmem>>, vector<1x1x32xf32>
    %26 = vector.shape_cast %25 : vector<1x1x32xf32> to vector<1x32xf32>
    %27 = vector.broadcast %26 : vector<1x32xf32> to vector<64x32xf32>
    %28 = arith.addf %24, %27 : vector<64x32xf32>
    %c0_25 = arith.constant 0 : index
    %c0_26 = arith.constant 0 : index
    %c0_27 = arith.constant 0 : index
    %29 = vector.load %arg2[%c0_25, %c0_26, %c0_27] : memref<4x32x32xf32, #tpu.memory_space<vmem>>, vector<1x32x32xf32>
    %30 = vector.shape_cast %29 : vector<1x32x32xf32> to vector<32x32xf32>
    %c1_28 = arith.constant 1 : index
    %c0_29 = arith.constant 0 : index
    %c0_30 = arith.constant 0 : index
    %31 = vector.load %arg2[%c1_28, %c0_29, %c0_30] : memref<4x32x32xf32, #tpu.memory_space<vmem>>, vector<1x32x32xf32>
    %32 = vector.shape_cast %31 : vector<1x32x32xf32> to vector<32x32xf32>
    %c2_31 = arith.constant 2 : index
    %c0_32 = arith.constant 0 : index
    %c0_33 = arith.constant 0 : index
    %33 = vector.load %arg2[%c2_31, %c0_32, %c0_33] : memref<4x32x32xf32, #tpu.memory_space<vmem>>, vector<1x32x32xf32>
    %34 = vector.shape_cast %33 : vector<1x32x32xf32> to vector<32x32xf32>
    %c3_34 = arith.constant 3 : index
    %c0_35 = arith.constant 0 : index
    %c0_36 = arith.constant 0 : index
    %35 = vector.load %arg2[%c3_34, %c0_35, %c0_36] : memref<4x32x32xf32, #tpu.memory_space<vmem>>, vector<1x32x32xf32>
    %36 = vector.shape_cast %35 : vector<1x32x32xf32> to vector<32x32xf32>
    %cst_37 = arith.constant 0.000000e+00 : f32
    %37 = vector.broadcast %cst_37 : f32 to vector<8x32xf32>
    %cst_38 = arith.constant 0.000000e+00 : f32
    %38 = vector.broadcast %cst_38 : f32 to vector<8x32xf32>
    %cst_39 = arith.constant dense<0.000000e+00> : vector<8x32xf32>
    %39 = tpu.matmul %37, %30, %cst_39 {dimension_numbers = #tpu.dot_dimension_numbers<[1], [0], [0], [1], [0, 0, 1, 1], [], []>} : vector<8x32xf32>, vector<32x32xf32>, vector<8x32xf32> -> vector<8x32xf32>
    %cst_40 = arith.constant dense<0.000000e+00> : vector<8x32xf32>
    %40 = tpu.matmul %37, %32, %cst_40 {dimension_numbers = #tpu.dot_dimension_numbers<[1], [0], [0], [1], [0, 0, 1, 1], [], []>} : vector<8x32xf32>, vector<32x32xf32>, vector<8x32xf32> -> vector<8x32xf32>
    %cst_41 = arith.constant dense<0.000000e+00> : vector<8x32xf32>
    %41 = tpu.matmul %37, %34, %cst_41 {dimension_numbers = #tpu.dot_dimension_numbers<[1], [0], [0], [1], [0, 0, 1, 1], [], []>} : vector<8x32xf32>, vector<32x32xf32>, vector<8x32xf32> -> vector<8x32xf32>
    %cst_42 = arith.constant dense<0.000000e+00> : vector<8x32xf32>
    %42 = tpu.matmul %37, %36, %cst_42 {dimension_numbers = #tpu.dot_dimension_numbers<[1], [0], [0], [1], [0, 0, 1, 1], [], []>} : vector<8x32xf32>, vector<32x32xf32>, vector<8x32xf32> -> vector<8x32xf32>
    %43 = vector.extract_strided_slice %7 {offsets = [0, 0], sizes = [8, 32], strides = [1, 1]} : vector<64x32xf32> to vector<8x32xf32>
    %44 = arith.addf %43, %39 : vector<8x32xf32>
    %45 = arith.negf %44 : vector<8x32xf32>
    %46 = math.exp %45 : vector<8x32xf32>
    %cst_43 = arith.constant 1.000000e+00 : f32
    %47 = vector.broadcast %cst_43 : f32 to vector<8x32xf32>
    %48 = arith.addf %47, %46 : vector<8x32xf32>
    %49 = arith.divf %47, %48 : vector<8x32xf32>
    %50 = vector.extract_strided_slice %14 {offsets = [0, 0], sizes = [8, 32], strides = [1, 1]} : vector<64x32xf32> to vector<8x32xf32>
    %51 = arith.addf %50, %40 : vector<8x32xf32>
    %52 = arith.negf %51 : vector<8x32xf32>
    %53 = math.exp %52 : vector<8x32xf32>
    %cst_44 = arith.constant 1.000000e+00 : f32
    %54 = vector.broadcast %cst_44 : f32 to vector<8x32xf32>
    %55 = arith.addf %54, %53 : vector<8x32xf32>
    %56 = arith.divf %54, %55 : vector<8x32xf32>
    %57 = vector.extract_strided_slice %21 {offsets = [0, 0], sizes = [8, 32], strides = [1, 1]} : vector<64x32xf32> to vector<8x32xf32>
    %58 = arith.addf %57, %41 : vector<8x32xf32>
    %59 = math.tanh %58 : vector<8x32xf32>
    %60 = vector.extract_strided_slice %28 {offsets = [0, 0], sizes = [8, 32], strides = [1, 1]} : vector<64x32xf32> to vector<8x32xf32>
    %61 = arith.addf %60, %42 : vector<8x32xf32>
    %62 = arith.negf %61 : vector<8x32xf32>
    %63 = math.exp %62 : vector<8x32xf32>
    %cst_45 = arith.constant 1.000000e+00 : f32
    %64 = vector.broadcast %cst_45 : f32 to vector<8x32xf32>
    %65 = arith.addf %64, %63 : vector<8x32xf32>
    %66 = arith.divf %64, %65 : vector<8x32xf32>
    %67 = arith.mulf %56, %38 : vector<8x32xf32>
    %68 = arith.mulf %49, %59 : vector<8x32xf32>
    %69 = arith.addf %67, %68 : vector<8x32xf32>
    %70 = math.tanh %69 : vector<8x32xf32>
    %71 = arith.mulf %66, %70 : vector<8x32xf32>
    %c0_46 = arith.constant 0 : index
    %c0_47 = arith.constant 0 : index
    %72 = vector.load %arg10[%c0_46, %c0_47] : memref<64x32xf32, #tpu.memory_space<vmem>>, vector<8x32xf32>
    tpu.vector_store %arg10[%c0_46, %c0_47], %71 {strides = array<i32>} : memref<64x32xf32, #tpu.memory_space<vmem>>, vector<8x32xf32>,
    %cst_48 = arith.constant dense<0.000000e+00> : vector<8x32xf32>
    %73 = tpu.matmul %71, %30, %cst_48 {dimension_numbers = #tpu.dot_dimension_numbers<[1], [0], [0], [1], [0, 0, 1, 1], [], []>} : vector<8x32xf32>, vector<32x32xf32>, vector<8x32xf32> -> vector<8x32xf32>
    %cst_49 = arith.constant dense<0.000000e+00> : vector<8x32xf32>
    %74 = tpu.matmul %71, %32, %cst_49 {dimension_numbers = #tpu.dot_dimension_numbers<[1], [0], [0], [1], [0, 0, 1, 1], [], []>} : vector<8x32xf32>, vector<32x32xf32>, vector<8x32xf32> -> vector<8x32xf32>
    %cst_50 = arith.constant dense<0.000000e+00> : vector<8x32xf32>
    %75 = tpu.matmul %71, %34, %cst_50 {dimension_numbers = #tpu.dot_dimension_numbers<[1], [0], [0], [1], [0, 0, 1, 1], [], []>} : vector<8x32xf32>, vector<32x32xf32>, vector<8x32xf32> -> vector<8x32xf32>
    %cst_51 = arith.constant dense<0.000000e+00> : vector<8x32xf32>
    %76 = tpu.matmul %71, %36, %cst_51 {dimension_numbers = #tpu.dot_dimension_numbers<[1], [0], [0], [1], [0, 0, 1, 1], [], []>} : vector<8x32xf32>, vector<32x32xf32>, vector<8x32xf32> -> vector<8x32xf32>
    %77 = vector.extract_strided_slice %7 {offsets = [8, 0], sizes = [8, 32], strides = [1, 1]} : vector<64x32xf32> to vector<8x32xf32>
    %78 = arith.addf %77, %73 : vector<8x32xf32>
    %79 = arith.negf %78 : vector<8x32xf32>
    %80 = math.exp %79 : vector<8x32xf32>
    %cst_52 = arith.constant 1.000000e+00 : f32
    %81 = vector.broadcast %cst_52 : f32 to vector<8x32xf32>
    %82 = arith.addf %81, %80 : vector<8x32xf32>
    %83 = arith.divf %81, %82 : vector<8x32xf32>
    %84 = vector.extract_strided_slice %14 {offsets = [8, 0], sizes = [8, 32], strides = [1, 1]} : vector<64x32xf32> to vector<8x32xf32>
    %85 = arith.addf %84, %74 : vector<8x32xf32>
    %86 = arith.negf %85 : vector<8x32xf32>
    %87 = math.exp %86 : vector<8x32xf32>
    %cst_53 = arith.constant 1.000000e+00 : f32
    %88 = vector.broadcast %cst_53 : f32 to vector<8x32xf32>
    %89 = arith.addf %88, %87 : vector<8x32xf32>
    %90 = arith.divf %88, %89 : vector<8x32xf32>
    %91 = vector.extract_strided_slice %21 {offsets = [8, 0], sizes = [8, 32], strides = [1, 1]} : vector<64x32xf32> to vector<8x32xf32>
    %92 = arith.addf %91, %75 : vector<8x32xf32>
    %93 = math.tanh %92 : vector<8x32xf32>
    %94 = vector.extract_strided_slice %28 {offsets = [8, 0], sizes = [8, 32], strides = [1, 1]} : vector<64x32xf32> to vector<8x32xf32>
    %95 = arith.addf %94, %76 : vector<8x32xf32>
    %96 = arith.negf %95 : vector<8x32xf32>
    %97 = math.exp %96 : vector<8x32xf32>
    %cst_54 = arith.constant 1.000000e+00 : f32
    %98 = vector.broadcast %cst_54 : f32 to vector<8x32xf32>
    %99 = arith.addf %98, %97 : vector<8x32xf32>
    %100 = arith.divf %98, %99 : vector<8x32xf32>
    %101 = arith.mulf %90, %69 : vector<8x32xf32>
    %102 = arith.mulf %83, %93 : vector<8x32xf32>
    %103 = arith.addf %101, %102 : vector<8x32xf32>
    %104 = math.tanh %103 : vector<8x32xf32>
    %105 = arith.mulf %100, %104 : vector<8x32xf32>
    %c8 = arith.constant 8 : index
    %c0_55 = arith.constant 0 : index
    %106 = vector.load %arg10[%c8, %c0_55] : memref<64x32xf32, #tpu.memory_space<vmem>>, vector<8x32xf32>
    tpu.vector_store %arg10[%c8, %c0_55], %105 {strides = array<i32>} : memref<64x32xf32, #tpu.memory_space<vmem>>, vector<8x32xf32>,
    %cst_56 = arith.constant dense<0.000000e+00> : vector<8x32xf32>
    %107 = tpu.matmul %105, %30, %cst_56 {dimension_numbers = #tpu.dot_dimension_numbers<[1], [0], [0], [1], [0, 0, 1, 1], [], []>} : vector<8x32xf32>, vector<32x32xf32>, vector<8x32xf32> -> vector<8x32xf32>
    %cst_57 = arith.constant dense<0.000000e+00> : vector<8x32xf32>
    %108 = tpu.matmul %105, %32, %cst_57 {dimension_numbers = #tpu.dot_dimension_numbers<[1], [0], [0], [1], [0, 0, 1, 1], [], []>} : vector<8x32xf32>, vector<32x32xf32>, vector<8x32xf32> -> vector<8x32xf32>
    %cst_58 = arith.constant dense<0.000000e+00> : vector<8x32xf32>
    %109 = tpu.matmul %105, %34, %cst_58 {dimension_numbers = #tpu.dot_dimension_numbers<[1], [0], [0], [1], [0, 0, 1, 1], [], []>} : vector<8x32xf32>, vector<32x32xf32>, vector<8x32xf32> -> vector<8x32xf32>
    %cst_59 = arith.constant dense<0.000000e+00> : vector<8x32xf32>
    %110 = tpu.matmul %105, %36, %cst_59 {dimension_numbers = #tpu.dot_dimension_numbers<[1], [0], [0], [1], [0, 0, 1, 1], [], []>} : vector<8x32xf32>, vector<32x32xf32>, vector<8x32xf32> -> vector<8x32xf32>
    %111 = vector.extract_strided_slice %7 {offsets = [16, 0], sizes = [8, 32], strides = [1, 1]} : vector<64x32xf32> to vector<8x32xf32>
    %112 = arith.addf %111, %107 : vector<8x32xf32>
    %113 = arith.negf %112 : vector<8x32xf32>
    %114 = math.exp %113 : vector<8x32xf32>
    %cst_60 = arith.constant 1.000000e+00 : f32
    %115 = vector.broadcast %cst_60 : f32 to vector<8x32xf32>
    %116 = arith.addf %115, %114 : vector<8x32xf32>
    %117 = arith.divf %115, %116 : vector<8x32xf32>
    %118 = vector.extract_strided_slice %14 {offsets = [16, 0], sizes = [8, 32], strides = [1, 1]} : vector<64x32xf32> to vector<8x32xf32>
    %119 = arith.addf %118, %108 : vector<8x32xf32>
    %120 = arith.negf %119 : vector<8x32xf32>
    %121 = math.exp %120 : vector<8x32xf32>
    %cst_61 = arith.constant 1.000000e+00 : f32
    %122 = vector.broadcast %cst_61 : f32 to vector<8x32xf32>
    %123 = arith.addf %122, %121 : vector<8x32xf32>
    %124 = arith.divf %122, %123 : vector<8x32xf32>
    %125 = vector.extract_strided_slice %21 {offsets = [16, 0], sizes = [8, 32], strides = [1, 1]} : vector<64x32xf32> to vector<8x32xf32>
    %126 = arith.addf %125, %109 : vector<8x32xf32>
    %127 = math.tanh %126 : vector<8x32xf32>
    %128 = vector.extract_strided_slice %28 {offsets = [16, 0], sizes = [8, 32], strides = [1, 1]} : vector<64x32xf32> to vector<8x32xf32>
    %129 = arith.addf %128, %110 : vector<8x32xf32>
    %130 = arith.negf %129 : vector<8x32xf32>
    %131 = math.exp %130 : vector<8x32xf32>
    %cst_62 = arith.constant 1.000000e+00 : f32
    %132 = vector.broadcast %cst_62 : f32 to vector<8x32xf32>
    %133 = arith.addf %132, %131 : vector<8x32xf32>
    %134 = arith.divf %132, %133 : vector<8x32xf32>
    %135 = arith.mulf %124, %103 : vector<8x32xf32>
    %136 = arith.mulf %117, %127 : vector<8x32xf32>
    %137 = arith.addf %135, %136 : vector<8x32xf32>
    %138 = math.tanh %137 : vector<8x32xf32>
    %139 = arith.mulf %134, %138 : vector<8x32xf32>
    %c16 = arith.constant 16 : index
    %c0_63 = arith.constant 0 : index
    %140 = vector.load %arg10[%c16, %c0_63] : memref<64x32xf32, #tpu.memory_space<vmem>>, vector<8x32xf32>
    tpu.vector_store %arg10[%c16, %c0_63], %139 {strides = array<i32>} : memref<64x32xf32, #tpu.memory_space<vmem>>, vector<8x32xf32>,
    %cst_64 = arith.constant dense<0.000000e+00> : vector<8x32xf32>
    %141 = tpu.matmul %139, %30, %cst_64 {dimension_numbers = #tpu.dot_dimension_numbers<[1], [0], [0], [1], [0, 0, 1, 1], [], []>} : vector<8x32xf32>, vector<32x32xf32>, vector<8x32xf32> -> vector<8x32xf32>
    %cst_65 = arith.constant dense<0.000000e+00> : vector<8x32xf32>
    %142 = tpu.matmul %139, %32, %cst_65 {dimension_numbers = #tpu.dot_dimension_numbers<[1], [0], [0], [1], [0, 0, 1, 1], [], []>} : vector<8x32xf32>, vector<32x32xf32>, vector<8x32xf32> -> vector<8x32xf32>
    %cst_66 = arith.constant dense<0.000000e+00> : vector<8x32xf32>
    %143 = tpu.matmul %139, %34, %cst_66 {dimension_numbers = #tpu.dot_dimension_numbers<[1], [0], [0], [1], [0, 0, 1, 1], [], []>} : vector<8x32xf32>, vector<32x32xf32>, vector<8x32xf32> -> vector<8x32xf32>
    %cst_67 = arith.constant dense<0.000000e+00> : vector<8x32xf32>
    %144 = tpu.matmul %139, %36, %cst_67 {dimension_numbers = #tpu.dot_dimension_numbers<[1], [0], [0], [1], [0, 0, 1, 1], [], []>} : vector<8x32xf32>, vector<32x32xf32>, vector<8x32xf32> -> vector<8x32xf32>
    %145 = vector.extract_strided_slice %7 {offsets = [24, 0], sizes = [8, 32], strides = [1, 1]} : vector<64x32xf32> to vector<8x32xf32>
    %146 = arith.addf %145, %141 : vector<8x32xf32>
    %147 = arith.negf %146 : vector<8x32xf32>
    %148 = math.exp %147 : vector<8x32xf32>
    %cst_68 = arith.constant 1.000000e+00 : f32
    %149 = vector.broadcast %cst_68 : f32 to vector<8x32xf32>
    %150 = arith.addf %149, %148 : vector<8x32xf32>
    %151 = arith.divf %149, %150 : vector<8x32xf32>
    %152 = vector.extract_strided_slice %14 {offsets = [24, 0], sizes = [8, 32], strides = [1, 1]} : vector<64x32xf32> to vector<8x32xf32>
    %153 = arith.addf %152, %142 : vector<8x32xf32>
    %154 = arith.negf %153 : vector<8x32xf32>
    %155 = math.exp %154 : vector<8x32xf32>
    %cst_69 = arith.constant 1.000000e+00 : f32
    %156 = vector.broadcast %cst_69 : f32 to vector<8x32xf32>
    %157 = arith.addf %156, %155 : vector<8x32xf32>
    %158 = arith.divf %156, %157 : vector<8x32xf32>
    %159 = vector.extract_strided_slice %21 {offsets = [24, 0], sizes = [8, 32], strides = [1, 1]} : vector<64x32xf32> to vector<8x32xf32>
    %160 = arith.addf %159, %143 : vector<8x32xf32>
    %161 = math.tanh %160 : vector<8x32xf32>
    %162 = vector.extract_strided_slice %28 {offsets = [24, 0], sizes = [8, 32], strides = [1, 1]} : vector<64x32xf32> to vector<8x32xf32>
    %163 = arith.addf %162, %144 : vector<8x32xf32>
    %164 = arith.negf %163 : vector<8x32xf32>
    %165 = math.exp %164 : vector<8x32xf32>
    %cst_70 = arith.constant 1.000000e+00 : f32
    %166 = vector.broadcast %cst_70 : f32 to vector<8x32xf32>
    %167 = arith.addf %166, %165 : vector<8x32xf32>
    %168 = arith.divf %166, %167 : vector<8x32xf32>
    %169 = arith.mulf %158, %137 : vector<8x32xf32>
    %170 = arith.mulf %151, %161 : vector<8x32xf32>
    %171 = arith.addf %169, %170 : vector<8x32xf32>
    %172 = math.tanh %171 : vector<8x32xf32>
    %173 = arith.mulf %168, %172 : vector<8x32xf32>
    %c24 = arith.constant 24 : index
    %c0_71 = arith.constant 0 : index
    %174 = vector.load %arg10[%c24, %c0_71] : memref<64x32xf32, #tpu.memory_space<vmem>>, vector<8x32xf32>
    tpu.vector_store %arg10[%c24, %c0_71], %173 {strides = array<i32>} : memref<64x32xf32, #tpu.memory_space<vmem>>, vector<8x32xf32>,
    %cst_72 = arith.constant dense<0.000000e+00> : vector<8x32xf32>
    %175 = tpu.matmul %173, %30, %cst_72 {dimension_numbers = #tpu.dot_dimension_numbers<[1], [0], [0], [1], [0, 0, 1, 1], [], []>} : vector<8x32xf32>, vector<32x32xf32>, vector<8x32xf32> -> vector<8x32xf32>
    %cst_73 = arith.constant dense<0.000000e+00> : vector<8x32xf32>
    %176 = tpu.matmul %173, %32, %cst_73 {dimension_numbers = #tpu.dot_dimension_numbers<[1], [0], [0], [1], [0, 0, 1, 1], [], []>} : vector<8x32xf32>, vector<32x32xf32>, vector<8x32xf32> -> vector<8x32xf32>
    %cst_74 = arith.constant dense<0.000000e+00> : vector<8x32xf32>
    %177 = tpu.matmul %173, %34, %cst_74 {dimension_numbers = #tpu.dot_dimension_numbers<[1], [0], [0], [1], [0, 0, 1, 1], [], []>} : vector<8x32xf32>, vector<32x32xf32>, vector<8x32xf32> -> vector<8x32xf32>
    %cst_75 = arith.constant dense<0.000000e+00> : vector<8x32xf32>
    %178 = tpu.matmul %173, %36, %cst_75 {dimension_numbers = #tpu.dot_dimension_numbers<[1], [0], [0], [1], [0, 0, 1, 1], [], []>} : vector<8x32xf32>, vector<32x32xf32>, vector<8x32xf32> -> vector<8x32xf32>
    %179 = vector.extract_strided_slice %7 {offsets = [32, 0], sizes = [8, 32], strides = [1, 1]} : vector<64x32xf32> to vector<8x32xf32>
    %180 = arith.addf %179, %175 : vector<8x32xf32>
    %181 = arith.negf %180 : vector<8x32xf32>
    %182 = math.exp %181 : vector<8x32xf32>
    %cst_76 = arith.constant 1.000000e+00 : f32
    %183 = vector.broadcast %cst_76 : f32 to vector<8x32xf32>
    %184 = arith.addf %183, %182 : vector<8x32xf32>
    %185 = arith.divf %183, %184 : vector<8x32xf32>
    %186 = vector.extract_strided_slice %14 {offsets = [32, 0], sizes = [8, 32], strides = [1, 1]} : vector<64x32xf32> to vector<8x32xf32>
    %187 = arith.addf %186, %176 : vector<8x32xf32>
    %188 = arith.negf %187 : vector<8x32xf32>
    %189 = math.exp %188 : vector<8x32xf32>
    %cst_77 = arith.constant 1.000000e+00 : f32
    %190 = vector.broadcast %cst_77 : f32 to vector<8x32xf32>
    %191 = arith.addf %190, %189 : vector<8x32xf32>
    %192 = arith.divf %190, %191 : vector<8x32xf32>
    %193 = vector.extract_strided_slice %21 {offsets = [32, 0], sizes = [8, 32], strides = [1, 1]} : vector<64x32xf32> to vector<8x32xf32>
    %194 = arith.addf %193, %177 : vector<8x32xf32>
    %195 = math.tanh %194 : vector<8x32xf32>
    %196 = vector.extract_strided_slice %28 {offsets = [32, 0], sizes = [8, 32], strides = [1, 1]} : vector<64x32xf32> to vector<8x32xf32>
    %197 = arith.addf %196, %178 : vector<8x32xf32>
    %198 = arith.negf %197 : vector<8x32xf32>
    %199 = math.exp %198 : vector<8x32xf32>
    %cst_78 = arith.constant 1.000000e+00 : f32
    %200 = vector.broadcast %cst_78 : f32 to vector<8x32xf32>
    %201 = arith.addf %200, %199 : vector<8x32xf32>
    %202 = arith.divf %200, %201 : vector<8x32xf32>
    %203 = arith.mulf %192, %171 : vector<8x32xf32>
    %204 = arith.mulf %185, %195 : vector<8x32xf32>
    %205 = arith.addf %203, %204 : vector<8x32xf32>
    %206 = math.tanh %205 : vector<8x32xf32>
    %207 = arith.mulf %202, %206 : vector<8x32xf32>
    %c32 = arith.constant 32 : index
    %c0_79 = arith.constant 0 : index
    %208 = vector.load %arg10[%c32, %c0_79] : memref<64x32xf32, #tpu.memory_space<vmem>>, vector<8x32xf32>
    tpu.vector_store %arg10[%c32, %c0_79], %207 {strides = array<i32>} : memref<64x32xf32, #tpu.memory_space<vmem>>, vector<8x32xf32>,
    %cst_80 = arith.constant dense<0.000000e+00> : vector<8x32xf32>
    %209 = tpu.matmul %207, %30, %cst_80 {dimension_numbers = #tpu.dot_dimension_numbers<[1], [0], [0], [1], [0, 0, 1, 1], [], []>} : vector<8x32xf32>, vector<32x32xf32>, vector<8x32xf32> -> vector<8x32xf32>
    %cst_81 = arith.constant dense<0.000000e+00> : vector<8x32xf32>
    %210 = tpu.matmul %207, %32, %cst_81 {dimension_numbers = #tpu.dot_dimension_numbers<[1], [0], [0], [1], [0, 0, 1, 1], [], []>} : vector<8x32xf32>, vector<32x32xf32>, vector<8x32xf32> -> vector<8x32xf32>
    %cst_82 = arith.constant dense<0.000000e+00> : vector<8x32xf32>
    %211 = tpu.matmul %207, %34, %cst_82 {dimension_numbers = #tpu.dot_dimension_numbers<[1], [0], [0], [1], [0, 0, 1, 1], [], []>} : vector<8x32xf32>, vector<32x32xf32>, vector<8x32xf32> -> vector<8x32xf32>
    %cst_83 = arith.constant dense<0.000000e+00> : vector<8x32xf32>
    %212 = tpu.matmul %207, %36, %cst_83 {dimension_numbers = #tpu.dot_dimension_numbers<[1], [0], [0], [1], [0, 0, 1, 1], [], []>} : vector<8x32xf32>, vector<32x32xf32>, vector<8x32xf32> -> vector<8x32xf32>
    %213 = vector.extract_strided_slice %7 {offsets = [40, 0], sizes = [8, 32], strides = [1, 1]} : vector<64x32xf32> to vector<8x32xf32>
    %214 = arith.addf %213, %209 : vector<8x32xf32>
    %215 = arith.negf %214 : vector<8x32xf32>
    %216 = math.exp %215 : vector<8x32xf32>
    %cst_84 = arith.constant 1.000000e+00 : f32
    %217 = vector.broadcast %cst_84 : f32 to vector<8x32xf32>
    %218 = arith.addf %217, %216 : vector<8x32xf32>
    %219 = arith.divf %217, %218 : vector<8x32xf32>
    %220 = vector.extract_strided_slice %14 {offsets = [40, 0], sizes = [8, 32], strides = [1, 1]} : vector<64x32xf32> to vector<8x32xf32>
    %221 = arith.addf %220, %210 : vector<8x32xf32>
    %222 = arith.negf %221 : vector<8x32xf32>
    %223 = math.exp %222 : vector<8x32xf32>
    %cst_85 = arith.constant 1.000000e+00 : f32
    %224 = vector.broadcast %cst_85 : f32 to vector<8x32xf32>
    %225 = arith.addf %224, %223 : vector<8x32xf32>
    %226 = arith.divf %224, %225 : vector<8x32xf32>
    %227 = vector.extract_strided_slice %21 {offsets = [40, 0], sizes = [8, 32], strides = [1, 1]} : vector<64x32xf32> to vector<8x32xf32>
    %228 = arith.addf %227, %211 : vector<8x32xf32>
    %229 = math.tanh %228 : vector<8x32xf32>
    %230 = vector.extract_strided_slice %28 {offsets = [40, 0], sizes = [8, 32], strides = [1, 1]} : vector<64x32xf32> to vector<8x32xf32>
    %231 = arith.addf %230, %212 : vector<8x32xf32>
    %232 = arith.negf %231 : vector<8x32xf32>
    %233 = math.exp %232 : vector<8x32xf32>
    %cst_86 = arith.constant 1.000000e+00 : f32
    %234 = vector.broadcast %cst_86 : f32 to vector<8x32xf32>
    %235 = arith.addf %234, %233 : vector<8x32xf32>
    %236 = arith.divf %234, %235 : vector<8x32xf32>
    %237 = arith.mulf %226, %205 : vector<8x32xf32>
    %238 = arith.mulf %219, %229 : vector<8x32xf32>
    %239 = arith.addf %237, %238 : vector<8x32xf32>
    %240 = math.tanh %239 : vector<8x32xf32>
    %241 = arith.mulf %236, %240 : vector<8x32xf32>
    %c40 = arith.constant 40 : index
    %c0_87 = arith.constant 0 : index
    %242 = vector.load %arg10[%c40, %c0_87] : memref<64x32xf32, #tpu.memory_space<vmem>>, vector<8x32xf32>
    tpu.vector_store %arg10[%c40, %c0_87], %241 {strides = array<i32>} : memref<64x32xf32, #tpu.memory_space<vmem>>, vector<8x32xf32>,
    %cst_88 = arith.constant dense<0.000000e+00> : vector<8x32xf32>
    %243 = tpu.matmul %241, %30, %cst_88 {dimension_numbers = #tpu.dot_dimension_numbers<[1], [0], [0], [1], [0, 0, 1, 1], [], []>} : vector<8x32xf32>, vector<32x32xf32>, vector<8x32xf32> -> vector<8x32xf32>
    %cst_89 = arith.constant dense<0.000000e+00> : vector<8x32xf32>
    %244 = tpu.matmul %241, %32, %cst_89 {dimension_numbers = #tpu.dot_dimension_numbers<[1], [0], [0], [1], [0, 0, 1, 1], [], []>} : vector<8x32xf32>, vector<32x32xf32>, vector<8x32xf32> -> vector<8x32xf32>
    %cst_90 = arith.constant dense<0.000000e+00> : vector<8x32xf32>
    %245 = tpu.matmul %241, %34, %cst_90 {dimension_numbers = #tpu.dot_dimension_numbers<[1], [0], [0], [1], [0, 0, 1, 1], [], []>} : vector<8x32xf32>, vector<32x32xf32>, vector<8x32xf32> -> vector<8x32xf32>
    %cst_91 = arith.constant dense<0.000000e+00> : vector<8x32xf32>
    %246 = tpu.matmul %241, %36, %cst_91 {dimension_numbers = #tpu.dot_dimension_numbers<[1], [0], [0], [1], [0, 0, 1, 1], [], []>} : vector<8x32xf32>, vector<32x32xf32>, vector<8x32xf32> -> vector<8x32xf32>
    %247 = vector.extract_strided_slice %7 {offsets = [48, 0], sizes = [8, 32], strides = [1, 1]} : vector<64x32xf32> to vector<8x32xf32>
    %248 = arith.addf %247, %243 : vector<8x32xf32>
    %249 = arith.negf %248 : vector<8x32xf32>
    %250 = math.exp %249 : vector<8x32xf32>
    %cst_92 = arith.constant 1.000000e+00 : f32
    %251 = vector.broadcast %cst_92 : f32 to vector<8x32xf32>
    %252 = arith.addf %251, %250 : vector<8x32xf32>
    %253 = arith.divf %251, %252 : vector<8x32xf32>
    %254 = vector.extract_strided_slice %14 {offsets = [48, 0], sizes = [8, 32], strides = [1, 1]} : vector<64x32xf32> to vector<8x32xf32>
    %255 = arith.addf %254, %244 : vector<8x32xf32>
    %256 = arith.negf %255 : vector<8x32xf32>
    %257 = math.exp %256 : vector<8x32xf32>
    %cst_93 = arith.constant 1.000000e+00 : f32
    %258 = vector.broadcast %cst_93 : f32 to vector<8x32xf32>
    %259 = arith.addf %258, %257 : vector<8x32xf32>
    %260 = arith.divf %258, %259 : vector<8x32xf32>
    %261 = vector.extract_strided_slice %21 {offsets = [48, 0], sizes = [8, 32], strides = [1, 1]} : vector<64x32xf32> to vector<8x32xf32>
    %262 = arith.addf %261, %245 : vector<8x32xf32>
    %263 = math.tanh %262 : vector<8x32xf32>
    %264 = vector.extract_strided_slice %28 {offsets = [48, 0], sizes = [8, 32], strides = [1, 1]} : vector<64x32xf32> to vector<8x32xf32>
    %265 = arith.addf %264, %246 : vector<8x32xf32>
    %266 = arith.negf %265 : vector<8x32xf32>
    %267 = math.exp %266 : vector<8x32xf32>
    %cst_94 = arith.constant 1.000000e+00 : f32
    %268 = vector.broadcast %cst_94 : f32 to vector<8x32xf32>
    %269 = arith.addf %268, %267 : vector<8x32xf32>
    %270 = arith.divf %268, %269 : vector<8x32xf32>
    %271 = arith.mulf %260, %239 : vector<8x32xf32>
    %272 = arith.mulf %253, %263 : vector<8x32xf32>
    %273 = arith.addf %271, %272 : vector<8x32xf32>
    %274 = math.tanh %273 : vector<8x32xf32>
    %275 = arith.mulf %270, %274 : vector<8x32xf32>
    %c48 = arith.constant 48 : index
    %c0_95 = arith.constant 0 : index
    %276 = vector.load %arg10[%c48, %c0_95] : memref<64x32xf32, #tpu.memory_space<vmem>>, vector<8x32xf32>
    tpu.vector_store %arg10[%c48, %c0_95], %275 {strides = array<i32>} : memref<64x32xf32, #tpu.memory_space<vmem>>, vector<8x32xf32>,
    %cst_96 = arith.constant dense<0.000000e+00> : vector<8x32xf32>
    %277 = tpu.matmul %275, %30, %cst_96 {dimension_numbers = #tpu.dot_dimension_numbers<[1], [0], [0], [1], [0, 0, 1, 1], [], []>} : vector<8x32xf32>, vector<32x32xf32>, vector<8x32xf32> -> vector<8x32xf32>
    %cst_97 = arith.constant dense<0.000000e+00> : vector<8x32xf32>
    %278 = tpu.matmul %275, %32, %cst_97 {dimension_numbers = #tpu.dot_dimension_numbers<[1], [0], [0], [1], [0, 0, 1, 1], [], []>} : vector<8x32xf32>, vector<32x32xf32>, vector<8x32xf32> -> vector<8x32xf32>
    %cst_98 = arith.constant dense<0.000000e+00> : vector<8x32xf32>
    %279 = tpu.matmul %275, %34, %cst_98 {dimension_numbers = #tpu.dot_dimension_numbers<[1], [0], [0], [1], [0, 0, 1, 1], [], []>} : vector<8x32xf32>, vector<32x32xf32>, vector<8x32xf32> -> vector<8x32xf32>
    %cst_99 = arith.constant dense<0.000000e+00> : vector<8x32xf32>
    %280 = tpu.matmul %275, %36, %cst_99 {dimension_numbers = #tpu.dot_dimension_numbers<[1], [0], [0], [1], [0, 0, 1, 1], [], []>} : vector<8x32xf32>, vector<32x32xf32>, vector<8x32xf32> -> vector<8x32xf32>
    %281 = vector.extract_strided_slice %7 {offsets = [56, 0], sizes = [8, 32], strides = [1, 1]} : vector<64x32xf32> to vector<8x32xf32>
    %282 = arith.addf %281, %277 : vector<8x32xf32>
    %283 = arith.negf %282 : vector<8x32xf32>
    %284 = math.exp %283 : vector<8x32xf32>
    %cst_100 = arith.constant 1.000000e+00 : f32
    %285 = vector.broadcast %cst_100 : f32 to vector<8x32xf32>
    %286 = arith.addf %285, %284 : vector<8x32xf32>
    %287 = arith.divf %285, %286 : vector<8x32xf32>
    %288 = vector.extract_strided_slice %14 {offsets = [56, 0], sizes = [8, 32], strides = [1, 1]} : vector<64x32xf32> to vector<8x32xf32>
    %289 = arith.addf %288, %278 : vector<8x32xf32>
    %290 = arith.negf %289 : vector<8x32xf32>
    %291 = math.exp %290 : vector<8x32xf32>
    %cst_101 = arith.constant 1.000000e+00 : f32
    %292 = vector.broadcast %cst_101 : f32 to vector<8x32xf32>
    %293 = arith.addf %292, %291 : vector<8x32xf32>
    %294 = arith.divf %292, %293 : vector<8x32xf32>
    %295 = vector.extract_strided_slice %21 {offsets = [56, 0], sizes = [8, 32], strides = [1, 1]} : vector<64x32xf32> to vector<8x32xf32>
    %296 = arith.addf %295, %279 : vector<8x32xf32>
    %297 = math.tanh %296 : vector<8x32xf32>
    %298 = vector.extract_strided_slice %28 {offsets = [56, 0], sizes = [8, 32], strides = [1, 1]} : vector<64x32xf32> to vector<8x32xf32>
    %299 = arith.addf %298, %280 : vector<8x32xf32>
    %300 = arith.negf %299 : vector<8x32xf32>
    %301 = math.exp %300 : vector<8x32xf32>
    %cst_102 = arith.constant 1.000000e+00 : f32
    %302 = vector.broadcast %cst_102 : f32 to vector<8x32xf32>
    %303 = arith.addf %302, %301 : vector<8x32xf32>
    %304 = arith.divf %302, %303 : vector<8x32xf32>
    %305 = arith.mulf %294, %273 : vector<8x32xf32>
    %306 = arith.mulf %287, %297 : vector<8x32xf32>
    %307 = arith.addf %305, %306 : vector<8x32xf32>
    %308 = math.tanh %307 : vector<8x32xf32>
    %309 = arith.mulf %304, %308 : vector<8x32xf32>
    %c56 = arith.constant 56 : index
    %c0_103 = arith.constant 0 : index
    %310 = vector.load %arg10[%c56, %c0_103] : memref<64x32xf32, #tpu.memory_space<vmem>>, vector<8x32xf32>
    tpu.vector_store %arg10[%c56, %c0_103], %309 {strides = array<i32>} : memref<64x32xf32, #tpu.memory_space<vmem>>, vector<8x32xf32>,
    %c0_104 = arith.constant 0 : index
    %c0_105 = arith.constant 0 : index
    %311 = vector.load %arg10[%c0_104, %c0_105] : memref<64x32xf32, #tpu.memory_space<vmem>>, vector<64x32xf32>
    %c0_106 = arith.constant 0 : index
    %c0_107 = arith.constant 0 : index
    %c0_108 = arith.constant 0 : index
    %312 = vector.load %arg4[%c0_106, %c0_107, %c0_108] : memref<4x32x32xf32, #tpu.memory_space<vmem>>, vector<1x32x32xf32>
    %313 = vector.shape_cast %312 : vector<1x32x32xf32> to vector<32x32xf32>
    %cst_109 = arith.constant dense<0.000000e+00> : vector<64x32xf32>
    %314 = tpu.matmul %311, %313, %cst_109 {dimension_numbers = #tpu.dot_dimension_numbers<[1], [0], [0], [1], [0, 0, 1, 1], [], []>} : vector<64x32xf32>, vector<32x32xf32>, vector<64x32xf32> -> vector<64x32xf32>
    %c0_110 = arith.constant 0 : index
    %c0_111 = arith.constant 0 : index
    %c0_112 = arith.constant 0 : index
    %315 = vector.load %arg6[%c0_110, %c0_111, %c0_112] : memref<4x1x32xf32, #tpu.memory_space<vmem>>, vector<1x1x32xf32>
    %316 = vector.shape_cast %315 : vector<1x1x32xf32> to vector<1x32xf32>
    %317 = vector.broadcast %316 : vector<1x32xf32> to vector<64x32xf32>
    %318 = arith.addf %314, %317 : vector<64x32xf32>
    %c1_113 = arith.constant 1 : index
    %c0_114 = arith.constant 0 : index
    %c0_115 = arith.constant 0 : index
    %319 = vector.load %arg4[%c1_113, %c0_114, %c0_115] : memref<4x32x32xf32, #tpu.memory_space<vmem>>, vector<1x32x32xf32>
    %320 = vector.shape_cast %319 : vector<1x32x32xf32> to vector<32x32xf32>
    %cst_116 = arith.constant dense<0.000000e+00> : vector<64x32xf32>
    %321 = tpu.matmul %311, %320, %cst_116 {dimension_numbers = #tpu.dot_dimension_numbers<[1], [0], [0], [1], [0, 0, 1, 1], [], []>} : vector<64x32xf32>, vector<32x32xf32>, vector<64x32xf32> -> vector<64x32xf32>
    %c1_117 = arith.constant 1 : index
    %c0_118 = arith.constant 0 : index
    %c0_119 = arith.constant 0 : index
    %322 = vector.load %arg6[%c1_117, %c0_118, %c0_119] : memref<4x1x32xf32, #tpu.memory_space<vmem>>, vector<1x1x32xf32>
    %323 = vector.shape_cast %322 : vector<1x1x32xf32> to vector<1x32xf32>
    %324 = vector.broadcast %323 : vector<1x32xf32> to vector<64x32xf32>
    %325 = arith.addf %321, %324 : vector<64x32xf32>
    %c2_120 = arith.constant 2 : index
    %c0_121 = arith.constant 0 : index
    %c0_122 = arith.constant 0 : index
    %326 = vector.load %arg4[%c2_120, %c0_121, %c0_122] : memref<4x32x32xf32, #tpu.memory_space<vmem>>, vector<1x32x32xf32>
    %327 = vector.shape_cast %326 : vector<1x32x32xf32> to vector<32x32xf32>
    %cst_123 = arith.constant dense<0.000000e+00> : vector<64x32xf32>
    %328 = tpu.matmul %311, %327, %cst_123 {dimension_numbers = #tpu.dot_dimension_numbers<[1], [0], [0], [1], [0, 0, 1, 1], [], []>} : vector<64x32xf32>, vector<32x32xf32>, vector<64x32xf32> -> vector<64x32xf32>
    %c2_124 = arith.constant 2 : index
    %c0_125 = arith.constant 0 : index
    %c0_126 = arith.constant 0 : index
    %329 = vector.load %arg6[%c2_124, %c0_125, %c0_126] : memref<4x1x32xf32, #tpu.memory_space<vmem>>, vector<1x1x32xf32>
    %330 = vector.shape_cast %329 : vector<1x1x32xf32> to vector<1x32xf32>
    %331 = vector.broadcast %330 : vector<1x32xf32> to vector<64x32xf32>
    %332 = arith.addf %328, %331 : vector<64x32xf32>
    %c3_127 = arith.constant 3 : index
    %c0_128 = arith.constant 0 : index
    %c0_129 = arith.constant 0 : index
    %333 = vector.load %arg4[%c3_127, %c0_128, %c0_129] : memref<4x32x32xf32, #tpu.memory_space<vmem>>, vector<1x32x32xf32>
    %334 = vector.shape_cast %333 : vector<1x32x32xf32> to vector<32x32xf32>
    %cst_130 = arith.constant dense<0.000000e+00> : vector<64x32xf32>
    %335 = tpu.matmul %311, %334, %cst_130 {dimension_numbers = #tpu.dot_dimension_numbers<[1], [0], [0], [1], [0, 0, 1, 1], [], []>} : vector<64x32xf32>, vector<32x32xf32>, vector<64x32xf32> -> vector<64x32xf32>
    %c3_131 = arith.constant 3 : index
    %c0_132 = arith.constant 0 : index
    %c0_133 = arith.constant 0 : index
    %336 = vector.load %arg6[%c3_131, %c0_132, %c0_133] : memref<4x1x32xf32, #tpu.memory_space<vmem>>, vector<1x1x32xf32>
    %337 = vector.shape_cast %336 : vector<1x1x32xf32> to vector<1x32xf32>
    %338 = vector.broadcast %337 : vector<1x32xf32> to vector<64x32xf32>
    %339 = arith.addf %335, %338 : vector<64x32xf32>
    %c0_134 = arith.constant 0 : index
    %c0_135 = arith.constant 0 : index
    %c0_136 = arith.constant 0 : index
    %340 = vector.load %arg5[%c0_134, %c0_135, %c0_136] : memref<4x32x32xf32, #tpu.memory_space<vmem>>, vector<1x32x32xf32>
    %341 = vector.shape_cast %340 : vector<1x32x32xf32> to vector<32x32xf32>
    %c1_137 = arith.constant 1 : index
    %c0_138 = arith.constant 0 : index
    %c0_139 = arith.constant 0 : index
    %342 = vector.load %arg5[%c1_137, %c0_138, %c0_139] : memref<4x32x32xf32, #tpu.memory_space<vmem>>, vector<1x32x32xf32>
    %343 = vector.shape_cast %342 : vector<1x32x32xf32> to vector<32x32xf32>
    %c2_140 = arith.constant 2 : index
    %c0_141 = arith.constant 0 : index
    %c0_142 = arith.constant 0 : index
    %344 = vector.load %arg5[%c2_140, %c0_141, %c0_142] : memref<4x32x32xf32, #tpu.memory_space<vmem>>, vector<1x32x32xf32>
    %345 = vector.shape_cast %344 : vector<1x32x32xf32> to vector<32x32xf32>
    %c3_143 = arith.constant 3 : index
    %c0_144 = arith.constant 0 : index
    %c0_145 = arith.constant 0 : index
    %346 = vector.load %arg5[%c3_143, %c0_144, %c0_145] : memref<4x32x32xf32, #tpu.memory_space<vmem>>, vector<1x32x32xf32>
    %347 = vector.shape_cast %346 : vector<1x32x32xf32> to vector<32x32xf32>
    %cst_146 = arith.constant 0.000000e+00 : f32
    %348 = vector.broadcast %cst_146 : f32 to vector<8x32xf32>
    %cst_147 = arith.constant 0.000000e+00 : f32
    %349 = vector.broadcast %cst_147 : f32 to vector<8x32xf32>
    %cst_148 = arith.constant dense<0.000000e+00> : vector<8x32xf32>
    %350 = tpu.matmul %348, %341, %cst_148 {dimension_numbers = #tpu.dot_dimension_numbers<[1], [0], [0], [1], [0, 0, 1, 1], [], []>} : vector<8x32xf32>, vector<32x32xf32>, vector<8x32xf32> -> vector<8x32xf32>
    %cst_149 = arith.constant dense<0.000000e+00> : vector<8x32xf32>
    %351 = tpu.matmul %348, %343, %cst_149 {dimension_numbers = #tpu.dot_dimension_numbers<[1], [0], [0], [1], [0, 0, 1, 1], [], []>} : vector<8x32xf32>, vector<32x32xf32>, vector<8x32xf32> -> vector<8x32xf32>
    %cst_150 = arith.constant dense<0.000000e+00> : vector<8x32xf32>
    %352 = tpu.matmul %348, %345, %cst_150 {dimension_numbers = #tpu.dot_dimension_numbers<[1], [0], [0], [1], [0, 0, 1, 1], [], []>} : vector<8x32xf32>, vector<32x32xf32>, vector<8x32xf32> -> vector<8x32xf32>
    %cst_151 = arith.constant dense<0.000000e+00> : vector<8x32xf32>
    %353 = tpu.matmul %348, %347, %cst_151 {dimension_numbers = #tpu.dot_dimension_numbers<[1], [0], [0], [1], [0, 0, 1, 1], [], []>} : vector<8x32xf32>, vector<32x32xf32>, vector<8x32xf32> -> vector<8x32xf32>
    %354 = vector.extract_strided_slice %318 {offsets = [0, 0], sizes = [8, 32], strides = [1, 1]} : vector<64x32xf32> to vector<8x32xf32>
    %355 = arith.addf %354, %350 : vector<8x32xf32>
    %356 = arith.negf %355 : vector<8x32xf32>
    %357 = math.exp %356 : vector<8x32xf32>
    %cst_152 = arith.constant 1.000000e+00 : f32
    %358 = vector.broadcast %cst_152 : f32 to vector<8x32xf32>
    %359 = arith.addf %358, %357 : vector<8x32xf32>
    %360 = arith.divf %358, %359 : vector<8x32xf32>
    %361 = vector.extract_strided_slice %325 {offsets = [0, 0], sizes = [8, 32], strides = [1, 1]} : vector<64x32xf32> to vector<8x32xf32>
    %362 = arith.addf %361, %351 : vector<8x32xf32>
    %363 = arith.negf %362 : vector<8x32xf32>
    %364 = math.exp %363 : vector<8x32xf32>
    %cst_153 = arith.constant 1.000000e+00 : f32
    %365 = vector.broadcast %cst_153 : f32 to vector<8x32xf32>
    %366 = arith.addf %365, %364 : vector<8x32xf32>
    %367 = arith.divf %365, %366 : vector<8x32xf32>
    %368 = vector.extract_strided_slice %332 {offsets = [0, 0], sizes = [8, 32], strides = [1, 1]} : vector<64x32xf32> to vector<8x32xf32>
    %369 = arith.addf %368, %352 : vector<8x32xf32>
    %370 = math.tanh %369 : vector<8x32xf32>
    %371 = vector.extract_strided_slice %339 {offsets = [0, 0], sizes = [8, 32], strides = [1, 1]} : vector<64x32xf32> to vector<8x32xf32>
    %372 = arith.addf %371, %353 : vector<8x32xf32>
    %373 = arith.negf %372 : vector<8x32xf32>
    %374 = math.exp %373 : vector<8x32xf32>
    %cst_154 = arith.constant 1.000000e+00 : f32
    %375 = vector.broadcast %cst_154 : f32 to vector<8x32xf32>
    %376 = arith.addf %375, %374 : vector<8x32xf32>
    %377 = arith.divf %375, %376 : vector<8x32xf32>
    %378 = arith.mulf %367, %349 : vector<8x32xf32>
    %379 = arith.mulf %360, %370 : vector<8x32xf32>
    %380 = arith.addf %378, %379 : vector<8x32xf32>
    %381 = math.tanh %380 : vector<8x32xf32>
    %382 = arith.mulf %377, %381 : vector<8x32xf32>
    %cst_155 = arith.constant dense<0.000000e+00> : vector<8x32xf32>
    %383 = tpu.matmul %382, %341, %cst_155 {dimension_numbers = #tpu.dot_dimension_numbers<[1], [0], [0], [1], [0, 0, 1, 1], [], []>} : vector<8x32xf32>, vector<32x32xf32>, vector<8x32xf32> -> vector<8x32xf32>
    %cst_156 = arith.constant dense<0.000000e+00> : vector<8x32xf32>
    %384 = tpu.matmul %382, %343, %cst_156 {dimension_numbers = #tpu.dot_dimension_numbers<[1], [0], [0], [1], [0, 0, 1, 1], [], []>} : vector<8x32xf32>, vector<32x32xf32>, vector<8x32xf32> -> vector<8x32xf32>
    %cst_157 = arith.constant dense<0.000000e+00> : vector<8x32xf32>
    %385 = tpu.matmul %382, %345, %cst_157 {dimension_numbers = #tpu.dot_dimension_numbers<[1], [0], [0], [1], [0, 0, 1, 1], [], []>} : vector<8x32xf32>, vector<32x32xf32>, vector<8x32xf32> -> vector<8x32xf32>
    %cst_158 = arith.constant dense<0.000000e+00> : vector<8x32xf32>
    %386 = tpu.matmul %382, %347, %cst_158 {dimension_numbers = #tpu.dot_dimension_numbers<[1], [0], [0], [1], [0, 0, 1, 1], [], []>} : vector<8x32xf32>, vector<32x32xf32>, vector<8x32xf32> -> vector<8x32xf32>
    %387 = vector.extract_strided_slice %318 {offsets = [8, 0], sizes = [8, 32], strides = [1, 1]} : vector<64x32xf32> to vector<8x32xf32>
    %388 = arith.addf %387, %383 : vector<8x32xf32>
    %389 = arith.negf %388 : vector<8x32xf32>
    %390 = math.exp %389 : vector<8x32xf32>
    %cst_159 = arith.constant 1.000000e+00 : f32
    %391 = vector.broadcast %cst_159 : f32 to vector<8x32xf32>
    %392 = arith.addf %391, %390 : vector<8x32xf32>
    %393 = arith.divf %391, %392 : vector<8x32xf32>
    %394 = vector.extract_strided_slice %325 {offsets = [8, 0], sizes = [8, 32], strides = [1, 1]} : vector<64x32xf32> to vector<8x32xf32>
    %395 = arith.addf %394, %384 : vector<8x32xf32>
    %396 = arith.negf %395 : vector<8x32xf32>
    %397 = math.exp %396 : vector<8x32xf32>
    %cst_160 = arith.constant 1.000000e+00 : f32
    %398 = vector.broadcast %cst_160 : f32 to vector<8x32xf32>
    %399 = arith.addf %398, %397 : vector<8x32xf32>
    %400 = arith.divf %398, %399 : vector<8x32xf32>
    %401 = vector.extract_strided_slice %332 {offsets = [8, 0], sizes = [8, 32], strides = [1, 1]} : vector<64x32xf32> to vector<8x32xf32>
    %402 = arith.addf %401, %385 : vector<8x32xf32>
    %403 = math.tanh %402 : vector<8x32xf32>
    %404 = vector.extract_strided_slice %339 {offsets = [8, 0], sizes = [8, 32], strides = [1, 1]} : vector<64x32xf32> to vector<8x32xf32>
    %405 = arith.addf %404, %386 : vector<8x32xf32>
    %406 = arith.negf %405 : vector<8x32xf32>
    %407 = math.exp %406 : vector<8x32xf32>
    %cst_161 = arith.constant 1.000000e+00 : f32
    %408 = vector.broadcast %cst_161 : f32 to vector<8x32xf32>
    %409 = arith.addf %408, %407 : vector<8x32xf32>
    %410 = arith.divf %408, %409 : vector<8x32xf32>
    %411 = arith.mulf %400, %380 : vector<8x32xf32>
    %412 = arith.mulf %393, %403 : vector<8x32xf32>
    %413 = arith.addf %411, %412 : vector<8x32xf32>
    %414 = math.tanh %413 : vector<8x32xf32>
    %415 = arith.mulf %410, %414 : vector<8x32xf32>
    %cst_162 = arith.constant dense<0.000000e+00> : vector<8x32xf32>
    %416 = tpu.matmul %415, %341, %cst_162 {dimension_numbers = #tpu.dot_dimension_numbers<[1], [0], [0], [1], [0, 0, 1, 1], [], []>} : vector<8x32xf32>, vector<32x32xf32>, vector<8x32xf32> -> vector<8x32xf32>
    %cst_163 = arith.constant dense<0.000000e+00> : vector<8x32xf32>
    %417 = tpu.matmul %415, %343, %cst_163 {dimension_numbers = #tpu.dot_dimension_numbers<[1], [0], [0], [1], [0, 0, 1, 1], [], []>} : vector<8x32xf32>, vector<32x32xf32>, vector<8x32xf32> -> vector<8x32xf32>
    %cst_164 = arith.constant dense<0.000000e+00> : vector<8x32xf32>
    %418 = tpu.matmul %415, %345, %cst_164 {dimension_numbers = #tpu.dot_dimension_numbers<[1], [0], [0], [1], [0, 0, 1, 1], [], []>} : vector<8x32xf32>, vector<32x32xf32>, vector<8x32xf32> -> vector<8x32xf32>
    %cst_165 = arith.constant dense<0.000000e+00> : vector<8x32xf32>
    %419 = tpu.matmul %415, %347, %cst_165 {dimension_numbers = #tpu.dot_dimension_numbers<[1], [0], [0], [1], [0, 0, 1, 1], [], []>} : vector<8x32xf32>, vector<32x32xf32>, vector<8x32xf32> -> vector<8x32xf32>
    %420 = vector.extract_strided_slice %318 {offsets = [16, 0], sizes = [8, 32], strides = [1, 1]} : vector<64x32xf32> to vector<8x32xf32>
    %421 = arith.addf %420, %416 : vector<8x32xf32>
    %422 = arith.negf %421 : vector<8x32xf32>
    %423 = math.exp %422 : vector<8x32xf32>
    %cst_166 = arith.constant 1.000000e+00 : f32
    %424 = vector.broadcast %cst_166 : f32 to vector<8x32xf32>
    %425 = arith.addf %424, %423 : vector<8x32xf32>
    %426 = arith.divf %424, %425 : vector<8x32xf32>
    %427 = vector.extract_strided_slice %325 {offsets = [16, 0], sizes = [8, 32], strides = [1, 1]} : vector<64x32xf32> to vector<8x32xf32>
    %428 = arith.addf %427, %417 : vector<8x32xf32>
    %429 = arith.negf %428 : vector<8x32xf32>
    %430 = math.exp %429 : vector<8x32xf32>
    %cst_167 = arith.constant 1.000000e+00 : f32
    %431 = vector.broadcast %cst_167 : f32 to vector<8x32xf32>
    %432 = arith.addf %431, %430 : vector<8x32xf32>
    %433 = arith.divf %431, %432 : vector<8x32xf32>
    %434 = vector.extract_strided_slice %332 {offsets = [16, 0], sizes = [8, 32], strides = [1, 1]} : vector<64x32xf32> to vector<8x32xf32>
    %435 = arith.addf %434, %418 : vector<8x32xf32>
    %436 = math.tanh %435 : vector<8x32xf32>
    %437 = vector.extract_strided_slice %339 {offsets = [16, 0], sizes = [8, 32], strides = [1, 1]} : vector<64x32xf32> to vector<8x32xf32>
    %438 = arith.addf %437, %419 : vector<8x32xf32>
    %439 = arith.negf %438 : vector<8x32xf32>
    %440 = math.exp %439 : vector<8x32xf32>
    %cst_168 = arith.constant 1.000000e+00 : f32
    %441 = vector.broadcast %cst_168 : f32 to vector<8x32xf32>
    %442 = arith.addf %441, %440 : vector<8x32xf32>
    %443 = arith.divf %441, %442 : vector<8x32xf32>
    %444 = arith.mulf %433, %413 : vector<8x32xf32>
    %445 = arith.mulf %426, %436 : vector<8x32xf32>
    %446 = arith.addf %444, %445 : vector<8x32xf32>
    %447 = math.tanh %446 : vector<8x32xf32>
    %448 = arith.mulf %443, %447 : vector<8x32xf32>
    %cst_169 = arith.constant dense<0.000000e+00> : vector<8x32xf32>
    %449 = tpu.matmul %448, %341, %cst_169 {dimension_numbers = #tpu.dot_dimension_numbers<[1], [0], [0], [1], [0, 0, 1, 1], [], []>} : vector<8x32xf32>, vector<32x32xf32>, vector<8x32xf32> -> vector<8x32xf32>
    %cst_170 = arith.constant dense<0.000000e+00> : vector<8x32xf32>
    %450 = tpu.matmul %448, %343, %cst_170 {dimension_numbers = #tpu.dot_dimension_numbers<[1], [0], [0], [1], [0, 0, 1, 1], [], []>} : vector<8x32xf32>, vector<32x32xf32>, vector<8x32xf32> -> vector<8x32xf32>
    %cst_171 = arith.constant dense<0.000000e+00> : vector<8x32xf32>
    %451 = tpu.matmul %448, %345, %cst_171 {dimension_numbers = #tpu.dot_dimension_numbers<[1], [0], [0], [1], [0, 0, 1, 1], [], []>} : vector<8x32xf32>, vector<32x32xf32>, vector<8x32xf32> -> vector<8x32xf32>
    %cst_172 = arith.constant dense<0.000000e+00> : vector<8x32xf32>
    %452 = tpu.matmul %448, %347, %cst_172 {dimension_numbers = #tpu.dot_dimension_numbers<[1], [0], [0], [1], [0, 0, 1, 1], [], []>} : vector<8x32xf32>, vector<32x32xf32>, vector<8x32xf32> -> vector<8x32xf32>
    %453 = vector.extract_strided_slice %318 {offsets = [24, 0], sizes = [8, 32], strides = [1, 1]} : vector<64x32xf32> to vector<8x32xf32>
    %454 = arith.addf %453, %449 : vector<8x32xf32>
    %455 = arith.negf %454 : vector<8x32xf32>
    %456 = math.exp %455 : vector<8x32xf32>
    %cst_173 = arith.constant 1.000000e+00 : f32
    %457 = vector.broadcast %cst_173 : f32 to vector<8x32xf32>
    %458 = arith.addf %457, %456 : vector<8x32xf32>
    %459 = arith.divf %457, %458 : vector<8x32xf32>
    %460 = vector.extract_strided_slice %325 {offsets = [24, 0], sizes = [8, 32], strides = [1, 1]} : vector<64x32xf32> to vector<8x32xf32>
    %461 = arith.addf %460, %450 : vector<8x32xf32>
    %462 = arith.negf %461 : vector<8x32xf32>
    %463 = math.exp %462 : vector<8x32xf32>
    %cst_174 = arith.constant 1.000000e+00 : f32
    %464 = vector.broadcast %cst_174 : f32 to vector<8x32xf32>
    %465 = arith.addf %464, %463 : vector<8x32xf32>
    %466 = arith.divf %464, %465 : vector<8x32xf32>
    %467 = vector.extract_strided_slice %332 {offsets = [24, 0], sizes = [8, 32], strides = [1, 1]} : vector<64x32xf32> to vector<8x32xf32>
    %468 = arith.addf %467, %451 : vector<8x32xf32>
    %469 = math.tanh %468 : vector<8x32xf32>
    %470 = vector.extract_strided_slice %339 {offsets = [24, 0], sizes = [8, 32], strides = [1, 1]} : vector<64x32xf32> to vector<8x32xf32>
    %471 = arith.addf %470, %452 : vector<8x32xf32>
    %472 = arith.negf %471 : vector<8x32xf32>
    %473 = math.exp %472 : vector<8x32xf32>
    %cst_175 = arith.constant 1.000000e+00 : f32
    %474 = vector.broadcast %cst_175 : f32 to vector<8x32xf32>
    %475 = arith.addf %474, %473 : vector<8x32xf32>
    %476 = arith.divf %474, %475 : vector<8x32xf32>
    %477 = arith.mulf %466, %446 : vector<8x32xf32>
    %478 = arith.mulf %459, %469 : vector<8x32xf32>
    %479 = arith.addf %477, %478 : vector<8x32xf32>
    %480 = math.tanh %479 : vector<8x32xf32>
    %481 = arith.mulf %476, %480 : vector<8x32xf32>
    %cst_176 = arith.constant dense<0.000000e+00> : vector<8x32xf32>
    %482 = tpu.matmul %481, %341, %cst_176 {dimension_numbers = #tpu.dot_dimension_numbers<[1], [0], [0], [1], [0, 0, 1, 1], [], []>} : vector<8x32xf32>, vector<32x32xf32>, vector<8x32xf32> -> vector<8x32xf32>
    %cst_177 = arith.constant dense<0.000000e+00> : vector<8x32xf32>
    %483 = tpu.matmul %481, %343, %cst_177 {dimension_numbers = #tpu.dot_dimension_numbers<[1], [0], [0], [1], [0, 0, 1, 1], [], []>} : vector<8x32xf32>, vector<32x32xf32>, vector<8x32xf32> -> vector<8x32xf32>
    %cst_178 = arith.constant dense<0.000000e+00> : vector<8x32xf32>
    %484 = tpu.matmul %481, %345, %cst_178 {dimension_numbers = #tpu.dot_dimension_numbers<[1], [0], [0], [1], [0, 0, 1, 1], [], []>} : vector<8x32xf32>, vector<32x32xf32>, vector<8x32xf32> -> vector<8x32xf32>
    %cst_179 = arith.constant dense<0.000000e+00> : vector<8x32xf32>
    %485 = tpu.matmul %481, %347, %cst_179 {dimension_numbers = #tpu.dot_dimension_numbers<[1], [0], [0], [1], [0, 0, 1, 1], [], []>} : vector<8x32xf32>, vector<32x32xf32>, vector<8x32xf32> -> vector<8x32xf32>
    %486 = vector.extract_strided_slice %318 {offsets = [32, 0], sizes = [8, 32], strides = [1, 1]} : vector<64x32xf32> to vector<8x32xf32>
    %487 = arith.addf %486, %482 : vector<8x32xf32>
    %488 = arith.negf %487 : vector<8x32xf32>
    %489 = math.exp %488 : vector<8x32xf32>
    %cst_180 = arith.constant 1.000000e+00 : f32
    %490 = vector.broadcast %cst_180 : f32 to vector<8x32xf32>
    %491 = arith.addf %490, %489 : vector<8x32xf32>
    %492 = arith.divf %490, %491 : vector<8x32xf32>
    %493 = vector.extract_strided_slice %325 {offsets = [32, 0], sizes = [8, 32], strides = [1, 1]} : vector<64x32xf32> to vector<8x32xf32>
    %494 = arith.addf %493, %483 : vector<8x32xf32>
    %495 = arith.negf %494 : vector<8x32xf32>
    %496 = math.exp %495 : vector<8x32xf32>
    %cst_181 = arith.constant 1.000000e+00 : f32
    %497 = vector.broadcast %cst_181 : f32 to vector<8x32xf32>
    %498 = arith.addf %497, %496 : vector<8x32xf32>
    %499 = arith.divf %497, %498 : vector<8x32xf32>
    %500 = vector.extract_strided_slice %332 {offsets = [32, 0], sizes = [8, 32], strides = [1, 1]} : vector<64x32xf32> to vector<8x32xf32>
    %501 = arith.addf %500, %484 : vector<8x32xf32>
    %502 = math.tanh %501 : vector<8x32xf32>
    %503 = vector.extract_strided_slice %339 {offsets = [32, 0], sizes = [8, 32], strides = [1, 1]} : vector<64x32xf32> to vector<8x32xf32>
    %504 = arith.addf %503, %485 : vector<8x32xf32>
    %505 = arith.negf %504 : vector<8x32xf32>
    %506 = math.exp %505 : vector<8x32xf32>
    %cst_182 = arith.constant 1.000000e+00 : f32
    %507 = vector.broadcast %cst_182 : f32 to vector<8x32xf32>
    %508 = arith.addf %507, %506 : vector<8x32xf32>
    %509 = arith.divf %507, %508 : vector<8x32xf32>
    %510 = arith.mulf %499, %479 : vector<8x32xf32>
    %511 = arith.mulf %492, %502 : vector<8x32xf32>
    %512 = arith.addf %510, %511 : vector<8x32xf32>
    %513 = math.tanh %512 : vector<8x32xf32>
    %514 = arith.mulf %509, %513 : vector<8x32xf32>
    %cst_183 = arith.constant dense<0.000000e+00> : vector<8x32xf32>
    %515 = tpu.matmul %514, %341, %cst_183 {dimension_numbers = #tpu.dot_dimension_numbers<[1], [0], [0], [1], [0, 0, 1, 1], [], []>} : vector<8x32xf32>, vector<32x32xf32>, vector<8x32xf32> -> vector<8x32xf32>
    %cst_184 = arith.constant dense<0.000000e+00> : vector<8x32xf32>
    %516 = tpu.matmul %514, %343, %cst_184 {dimension_numbers = #tpu.dot_dimension_numbers<[1], [0], [0], [1], [0, 0, 1, 1], [], []>} : vector<8x32xf32>, vector<32x32xf32>, vector<8x32xf32> -> vector<8x32xf32>
    %cst_185 = arith.constant dense<0.000000e+00> : vector<8x32xf32>
    %517 = tpu.matmul %514, %345, %cst_185 {dimension_numbers = #tpu.dot_dimension_numbers<[1], [0], [0], [1], [0, 0, 1, 1], [], []>} : vector<8x32xf32>, vector<32x32xf32>, vector<8x32xf32> -> vector<8x32xf32>
    %cst_186 = arith.constant dense<0.000000e+00> : vector<8x32xf32>
    %518 = tpu.matmul %514, %347, %cst_186 {dimension_numbers = #tpu.dot_dimension_numbers<[1], [0], [0], [1], [0, 0, 1, 1], [], []>} : vector<8x32xf32>, vector<32x32xf32>, vector<8x32xf32> -> vector<8x32xf32>
    %519 = vector.extract_strided_slice %318 {offsets = [40, 0], sizes = [8, 32], strides = [1, 1]} : vector<64x32xf32> to vector<8x32xf32>
    %520 = arith.addf %519, %515 : vector<8x32xf32>
    %521 = arith.negf %520 : vector<8x32xf32>
    %522 = math.exp %521 : vector<8x32xf32>
    %cst_187 = arith.constant 1.000000e+00 : f32
    %523 = vector.broadcast %cst_187 : f32 to vector<8x32xf32>
    %524 = arith.addf %523, %522 : vector<8x32xf32>
    %525 = arith.divf %523, %524 : vector<8x32xf32>
    %526 = vector.extract_strided_slice %325 {offsets = [40, 0], sizes = [8, 32], strides = [1, 1]} : vector<64x32xf32> to vector<8x32xf32>
    %527 = arith.addf %526, %516 : vector<8x32xf32>
    %528 = arith.negf %527 : vector<8x32xf32>
    %529 = math.exp %528 : vector<8x32xf32>
    %cst_188 = arith.constant 1.000000e+00 : f32
    %530 = vector.broadcast %cst_188 : f32 to vector<8x32xf32>
    %531 = arith.addf %530, %529 : vector<8x32xf32>
    %532 = arith.divf %530, %531 : vector<8x32xf32>
    %533 = vector.extract_strided_slice %332 {offsets = [40, 0], sizes = [8, 32], strides = [1, 1]} : vector<64x32xf32> to vector<8x32xf32>
    %534 = arith.addf %533, %517 : vector<8x32xf32>
    %535 = math.tanh %534 : vector<8x32xf32>
    %536 = vector.extract_strided_slice %339 {offsets = [40, 0], sizes = [8, 32], strides = [1, 1]} : vector<64x32xf32> to vector<8x32xf32>
    %537 = arith.addf %536, %518 : vector<8x32xf32>
    %538 = arith.negf %537 : vector<8x32xf32>
    %539 = math.exp %538 : vector<8x32xf32>
    %cst_189 = arith.constant 1.000000e+00 : f32
    %540 = vector.broadcast %cst_189 : f32 to vector<8x32xf32>
    %541 = arith.addf %540, %539 : vector<8x32xf32>
    %542 = arith.divf %540, %541 : vector<8x32xf32>
    %543 = arith.mulf %532, %512 : vector<8x32xf32>
    %544 = arith.mulf %525, %535 : vector<8x32xf32>
    %545 = arith.addf %543, %544 : vector<8x32xf32>
    %546 = math.tanh %545 : vector<8x32xf32>
    %547 = arith.mulf %542, %546 : vector<8x32xf32>
    %cst_190 = arith.constant dense<0.000000e+00> : vector<8x32xf32>
    %548 = tpu.matmul %547, %341, %cst_190 {dimension_numbers = #tpu.dot_dimension_numbers<[1], [0], [0], [1], [0, 0, 1, 1], [], []>} : vector<8x32xf32>, vector<32x32xf32>, vector<8x32xf32> -> vector<8x32xf32>
    %cst_191 = arith.constant dense<0.000000e+00> : vector<8x32xf32>
    %549 = tpu.matmul %547, %343, %cst_191 {dimension_numbers = #tpu.dot_dimension_numbers<[1], [0], [0], [1], [0, 0, 1, 1], [], []>} : vector<8x32xf32>, vector<32x32xf32>, vector<8x32xf32> -> vector<8x32xf32>
    %cst_192 = arith.constant dense<0.000000e+00> : vector<8x32xf32>
    %550 = tpu.matmul %547, %345, %cst_192 {dimension_numbers = #tpu.dot_dimension_numbers<[1], [0], [0], [1], [0, 0, 1, 1], [], []>} : vector<8x32xf32>, vector<32x32xf32>, vector<8x32xf32> -> vector<8x32xf32>
    %cst_193 = arith.constant dense<0.000000e+00> : vector<8x32xf32>
    %551 = tpu.matmul %547, %347, %cst_193 {dimension_numbers = #tpu.dot_dimension_numbers<[1], [0], [0], [1], [0, 0, 1, 1], [], []>} : vector<8x32xf32>, vector<32x32xf32>, vector<8x32xf32> -> vector<8x32xf32>
    %552 = vector.extract_strided_slice %318 {offsets = [48, 0], sizes = [8, 32], strides = [1, 1]} : vector<64x32xf32> to vector<8x32xf32>
    %553 = arith.addf %552, %548 : vector<8x32xf32>
    %554 = arith.negf %553 : vector<8x32xf32>
    %555 = math.exp %554 : vector<8x32xf32>
    %cst_194 = arith.constant 1.000000e+00 : f32
    %556 = vector.broadcast %cst_194 : f32 to vector<8x32xf32>
    %557 = arith.addf %556, %555 : vector<8x32xf32>
    %558 = arith.divf %556, %557 : vector<8x32xf32>
    %559 = vector.extract_strided_slice %325 {offsets = [48, 0], sizes = [8, 32], strides = [1, 1]} : vector<64x32xf32> to vector<8x32xf32>
    %560 = arith.addf %559, %549 : vector<8x32xf32>
    %561 = arith.negf %560 : vector<8x32xf32>
    %562 = math.exp %561 : vector<8x32xf32>
    %cst_195 = arith.constant 1.000000e+00 : f32
    %563 = vector.broadcast %cst_195 : f32 to vector<8x32xf32>
    %564 = arith.addf %563, %562 : vector<8x32xf32>
    %565 = arith.divf %563, %564 : vector<8x32xf32>
    %566 = vector.extract_strided_slice %332 {offsets = [48, 0], sizes = [8, 32], strides = [1, 1]} : vector<64x32xf32> to vector<8x32xf32>
    %567 = arith.addf %566, %550 : vector<8x32xf32>
    %568 = math.tanh %567 : vector<8x32xf32>
    %569 = vector.extract_strided_slice %339 {offsets = [48, 0], sizes = [8, 32], strides = [1, 1]} : vector<64x32xf32> to vector<8x32xf32>
    %570 = arith.addf %569, %551 : vector<8x32xf32>
    %571 = arith.negf %570 : vector<8x32xf32>
    %572 = math.exp %571 : vector<8x32xf32>
    %cst_196 = arith.constant 1.000000e+00 : f32
    %573 = vector.broadcast %cst_196 : f32 to vector<8x32xf32>
    %574 = arith.addf %573, %572 : vector<8x32xf32>
    %575 = arith.divf %573, %574 : vector<8x32xf32>
    %576 = arith.mulf %565, %545 : vector<8x32xf32>
    %577 = arith.mulf %558, %568 : vector<8x32xf32>
    %578 = arith.addf %576, %577 : vector<8x32xf32>
    %579 = math.tanh %578 : vector<8x32xf32>
    %580 = arith.mulf %575, %579 : vector<8x32xf32>
    %cst_197 = arith.constant dense<0.000000e+00> : vector<8x32xf32>
    %581 = tpu.matmul %580, %341, %cst_197 {dimension_numbers = #tpu.dot_dimension_numbers<[1], [0], [0], [1], [0, 0, 1, 1], [], []>} : vector<8x32xf32>, vector<32x32xf32>, vector<8x32xf32> -> vector<8x32xf32>
    %cst_198 = arith.constant dense<0.000000e+00> : vector<8x32xf32>
    %582 = tpu.matmul %580, %343, %cst_198 {dimension_numbers = #tpu.dot_dimension_numbers<[1], [0], [0], [1], [0, 0, 1, 1], [], []>} : vector<8x32xf32>, vector<32x32xf32>, vector<8x32xf32> -> vector<8x32xf32>
    %cst_199 = arith.constant dense<0.000000e+00> : vector<8x32xf32>
    %583 = tpu.matmul %580, %345, %cst_199 {dimension_numbers = #tpu.dot_dimension_numbers<[1], [0], [0], [1], [0, 0, 1, 1], [], []>} : vector<8x32xf32>, vector<32x32xf32>, vector<8x32xf32> -> vector<8x32xf32>
    %cst_200 = arith.constant dense<0.000000e+00> : vector<8x32xf32>
    %584 = tpu.matmul %580, %347, %cst_200 {dimension_numbers = #tpu.dot_dimension_numbers<[1], [0], [0], [1], [0, 0, 1, 1], [], []>} : vector<8x32xf32>, vector<32x32xf32>, vector<8x32xf32> -> vector<8x32xf32>
    %585 = vector.extract_strided_slice %318 {offsets = [56, 0], sizes = [8, 32], strides = [1, 1]} : vector<64x32xf32> to vector<8x32xf32>
    %586 = arith.addf %585, %581 : vector<8x32xf32>
    %587 = arith.negf %586 : vector<8x32xf32>
    %588 = math.exp %587 : vector<8x32xf32>
    %cst_201 = arith.constant 1.000000e+00 : f32
    %589 = vector.broadcast %cst_201 : f32 to vector<8x32xf32>
    %590 = arith.addf %589, %588 : vector<8x32xf32>
    %591 = arith.divf %589, %590 : vector<8x32xf32>
    %592 = vector.extract_strided_slice %325 {offsets = [56, 0], sizes = [8, 32], strides = [1, 1]} : vector<64x32xf32> to vector<8x32xf32>
    %593 = arith.addf %592, %582 : vector<8x32xf32>
    %594 = arith.negf %593 : vector<8x32xf32>
    %595 = math.exp %594 : vector<8x32xf32>
    %cst_202 = arith.constant 1.000000e+00 : f32
    %596 = vector.broadcast %cst_202 : f32 to vector<8x32xf32>
    %597 = arith.addf %596, %595 : vector<8x32xf32>
    %598 = arith.divf %596, %597 : vector<8x32xf32>
    %599 = vector.extract_strided_slice %332 {offsets = [56, 0], sizes = [8, 32], strides = [1, 1]} : vector<64x32xf32> to vector<8x32xf32>
    %600 = arith.addf %599, %583 : vector<8x32xf32>
    %601 = math.tanh %600 : vector<8x32xf32>
    %602 = vector.extract_strided_slice %339 {offsets = [56, 0], sizes = [8, 32], strides = [1, 1]} : vector<64x32xf32> to vector<8x32xf32>
    %603 = arith.addf %602, %584 : vector<8x32xf32>
    %604 = arith.negf %603 : vector<8x32xf32>
    %605 = math.exp %604 : vector<8x32xf32>
    %cst_203 = arith.constant 1.000000e+00 : f32
    %606 = vector.broadcast %cst_203 : f32 to vector<8x32xf32>
    %607 = arith.addf %606, %605 : vector<8x32xf32>
    %608 = arith.divf %606, %607 : vector<8x32xf32>
    %609 = arith.mulf %598, %578 : vector<8x32xf32>
    %610 = arith.mulf %591, %601 : vector<8x32xf32>
    %611 = arith.addf %609, %610 : vector<8x32xf32>
    %612 = math.tanh %611 : vector<8x32xf32>
    %613 = arith.mulf %608, %612 : vector<8x32xf32>
    %cst_204 = arith.constant 0.000000e+00 : f32
    %614 = vector.broadcast %cst_204 : f32 to vector<8x32xf32>
    %615 = arith.maximumf %613, %614 : vector<8x32xf32>
    %c0_205 = arith.constant 0 : index
    %c0_206 = arith.constant 0 : index
    %616 = vector.load %arg7[%c0_205, %c0_206] : memref<32x8xf32, #tpu.memory_space<vmem>>, vector<32x8xf32>
    %cst_207 = arith.constant dense<0.000000e+00> : vector<8x8xf32>
    %617 = tpu.matmul %615, %616, %cst_207 {dimension_numbers = #tpu.dot_dimension_numbers<[1], [0], [0], [1], [0, 0, 1, 1], [], []>} : vector<8x32xf32>, vector<32x8xf32>, vector<8x8xf32> -> vector<8x8xf32>
    %c0_208 = arith.constant 0 : index
    %c0_209 = arith.constant 0 : index
    %618 = vector.load %arg8[%c0_208, %c0_209] : memref<1x8xf32, #tpu.memory_space<vmem>>, vector<1x8xf32>
    %619 = vector.broadcast %618 : vector<1x8xf32> to vector<8x8xf32>
    %620 = arith.addf %617, %619 : vector<8x8xf32>
    %c0_210 = arith.constant 0 : index
    %c0_211 = arith.constant 0 : index
    %621 = vector.load %arg9[%c0_210, %c0_211] : memref<8x8xf32, #tpu.memory_space<vmem>>, vector<8x8xf32>
    tpu.vector_store %arg9[%c0_210, %c0_211], %620 {strides = array<i32>} : memref<8x8xf32, #tpu.memory_space<vmem>>, vector<8x8xf32>,
    return
  }
}

</mosaic_0001>

<bundles_post_ra>
// kernel: lstm_forward.1
= control target key start
LH: loop header
LB: loop body
LE: loop exit
PB: predicated region body
PF: predicated region fallthrough
CT: control target
= control target key end

     0   :  { %14 = vsyncpa [#allocation4], 0  ;;  %s9451_s0 = inlined_call_operand.vmem [shape: f32[64,16], index: 0, kind: input, shape index: {}]   ;;  %s9452_s1 = inlined_call_operand.vmem [shape: f32[4,16,32], index: 1, kind: input, shape index: {}]   ;;  %s9453_s2 = inlined_call_operand.vmem [shape: f32[4,32,32], index: 2, kind: input, shape index: {}]   ;;  %s9454_s3 = inlined_call_operand.vmem [shape: f32[4,1,32], index: 3, kind: input, shape index: {}]   ;;  %s9455_s4 = inlined_call_operand.hbm [shape: f32[4,32,32], index: 4, kind: input, shape index: {}]   ;;  %s9456_s5 = inlined_call_operand.hbm [shape: f32[4,32,32], index: 5, kind: input, shape index: {}]   ;;  %s9457_s6 = inlined_call_operand.vmem [shape: f32[4,1,32], index: 6, kind: input, shape index: {}]   ;;  %s9458_s7 = inlined_call_operand.vmem [shape: f32[32,8], index: 7, kind: input, shape index: {}]   ;;  %s9459_s8 = inlined_call_operand.vmem [shape: f32[1,8], index: 8, kind: input, shape index: {}]   ;;  %s9460_s9 = inlined_call_operand.vmem [shape: f32[8,8], index: 9, kind: output, shape index: {}]  }
   0x1   :  { %15 = vsyncpa [#allocation6], 0  ;;  %s8395_s30 = smov [#allocation3]   ;;  %s8347_s13 = scalar_lea.hbm %s9455_s4, 2048 }
   0x2   :  { %s29_s10 = sshll.u32 %s8395_s30, 4  ;;  %p8348_p0 = scmp.ne.s32.totalorder %s9455_s4, %s8347_s13  ;;  %s30_s10 = int_to_ptr.vmem [resolvable:$true] %s29_s10 }
   0x3   :  { %p8351_p1 = scmp.lt.u32.totalorder %s8347_s13, %s9455_s4 }
   0x5   :  { %p8353_p2 = pnand %p8351_p1, %p8348_p0 }
   0x7   :  { %8356 = shalt.err (!%p8353_p2)
}
   0x8   :  { %s8357_s18 = scalar_lea.vmem %s30_s10, 2048  ;;  %p8362_p4 = scmp.lt.s32.totalorder %s30_s10, %s30_s10 }
   0x9   :  { %p8358_p3 = scmp.ne.s32.totalorder %s30_s10, %s8357_s18  ;;  %p8363_p5 = scmp.lt.s32.totalorder %s8357_s18, %s8357_s18 }
   0xb   :  { %p8364_p6 = por %p8363_p5, %p8362_p4 }
   0xd   :  { %p8365_p7 = pnand %p8364_p6, %p8358_p3 }
   0xf   :  { %8368 = shalt.err (!%p8365_p7)
}
  0x10   :  { %s8396_s19 = smov 128   ;;  %s8397_s20 = smov 8  }
  0x11   :  { %35 = dma.hbm_to_vmem [thread:$0]  %s9455_s4, 2048, %s30_s10, [#allocation4], %s8396_s19, %s8396_s19, %s8397_s20  }
  0x12   :  { %s8398_s23 = smov [#allocation5]   ;;  %s8369_s27 = scalar_lea.hbm %s9456_s5, 2048 }
  0x13   :  { %s41_s24 = sshll.u32 %s8398_s23, 4  ;;  %p8370_p8 = scmp.ne.s32.totalorder %s9456_s5, %s8369_s27  ;;  %s42_s24 = int_to_ptr.vmem [resolvable:$true] %s41_s24 }
  0x14   :  { %p8373_p9 = scmp.lt.u32.totalorder %s8369_s27, %s9456_s5 }
  0x16   :  { %p8375_p10 = pnand %p8373_p9, %p8370_p8 }
  0x18   :  { %8378 = shalt.err (!%p8375_p10)
}
  0x19   :  { %s8379_s12 = scalar_lea.vmem %s42_s24, 2048  ;;  %p8384_p12 = scmp.lt.s32.totalorder %s42_s24, %s42_s24 }
  0x1a   :  { %p8380_p11 = scmp.ne.s32.totalorder %s42_s24, %s8379_s12  ;;  %p8385_p13 = scmp.lt.s32.totalorder %s8379_s12, %s8379_s12 }
  0x1c   :  { %p8386_p0 = por %p8385_p13, %p8384_p12 }
  0x1e   :  { %p8387_p1 = pnand %p8386_p0, %p8380_p11 }
  0x20   :  { %8390 = shalt.err (!%p8387_p1)
}
  0x21   :  { %47 = dma.hbm_to_vmem [thread:$0]  %s9456_s5, 2048, %s42_s24, [#allocation6], %s8396_s19, %s8396_s19, %s8397_s20  }
  0x22   :  { %8391 = dma.done.wait [#allocation4], 2048  }
  0x23   :  { %8392 = vsyncadd [#allocation4], 4294965248 }
  0x24   :  { %8393 = dma.done.wait [#allocation6], 2048  }
  0x25   :  { %8394 = vsyncadd [#allocation6], 4294965248  ;;  %vm77_vm0 = vcmask 130048   ;;  %v68_v0 = vld [vmem:[%s9452_s1] sm:$0xff]  ;;  %v69_v1 = vld [vmem:[%s9452_s1 + $0x8] sm:$0xff]  ;;  %v9463_v20 = vmov 0.0|0.0  }
  0x26   :  { %v60_v2 = vld [vmem:[%s9451_s0] sm:$0xff]  ;;  %v7644_v3 = vpack.c.bf16 %v69_v1, %v68_v0  ;;  %v8489_v4 = vld [vmem:[%s9451_s0 + $0x30] sm:$0xff]  ;;  %v6180_v6 = vld [vmem:[%s9452_s1 + $0x18] sm:$0xff]  ;;  %vm8400_vm1 = vmmov 0   ;;  %v9461_v35 = vmov 0.0   ;;  %vm574_vm2 = vcmask 261120  }
  0x27   :  { %6789 = vmatprep.mubr.msk.f32.mxu0 %vm77_vm0, %v60_v2  ;;  %6798 = vmatprep.mubr.msk.f32.mxu1 %vm77_vm0, %v8489_v4  ;;  %v6179_v5 = vld [vmem:[%s9452_s1 + $0x10] sm:$0xff]  ;;  %v6204_v9 = vld [vmem:[%s9452_s1 + $0x38] sm:$0xff]  ;;  %v61_v10 = vld [vmem:[%s9451_s0 + $0x8] sm:$0xff]  ;;  %vm6162_vm3 = vcmask 64512  }
  0x28   :  { %7645 = vmatprep.subr.bf16.mxu0 %v7644_v3  ;;  %8082 = vmatprep.subr.bf16.mxu1 %v7644_v3  ;;  %v7648_v7 = vpack.c.bf16 %v6180_v6, %v6179_v5  ;;  %v6203_v8 = vld [vmem:[%s9452_s1 + $0x30] sm:$0xff]  ;;  %v8511_v11 = vld [vmem:[%s9451_s0 + $0x38] sm:$0xff]  ;;  %v6191_v12 = vld [vmem:[%s9452_s1 + $0x20] sm:$0xff] }
  0x29   :  { %7647 = vmatpush3.bf16.msra.mxu0 %v7644_v3  ;;  %8083 = vmatpush3.bf16.msra.mxu1 %v7644_v3  ;;  %v62_v13 = vld [vmem:[%s9451_s0 + $0x10] sm:$0xff]  ;;  %v7656_v14 = vpack.c.bf16 %v6204_v9, %v6203_v8  ;;  %v6192_v15 = vld [vmem:[%s9452_s1 + $0x28] sm:$0xff]  ;;  %v63_v17 = vld [vmem:[%s9451_s0 + $0x18] sm:$0xff] }
  0x2a   :  { %7649 = vmatprep.subr.bf16.mxu1 %v7648_v7  ;;  %v7652_v16 = vpack.c.bf16 %v6192_v15, %v6191_v12  ;;  %v64_v18 = vld [vmem:[%s9451_s0 + $0x20] sm:$0xff]  ;;  %v65_v19 = vld [vmem:[%s9451_s0 + $0x28] sm:$0xff]  ;;  %v557_v24 = vld [vmem:[%s9453_s2 + $0x10] sm:$0xff] }
  0x2b   :  { %v555_v21 = vld [vmem:[%s9453_s2] sm:$0xff]  ;;  %v556_v22 = vld [vmem:[%s9453_s2 + $0x8] sm:$0xff]  ;;  %v558_v25 = vld [vmem:[%s9453_s2 + $0x18] sm:$0xff] }
  0x2c   :  { %6790 = vmatmul.mubr.msk.f32.vlgmr.msra.gmra.mrb[0].mxu0 %vm77_vm0, %v61_v10  ;;  %6799 = vmatmul.mubr.msk.f32.vlgmr.msra.gmra.mrb[0].mxu1 %vm77_vm0, %v8511_v11  ;;  %v8552_v23 = vpack.c.bf16 %v556_v22, %v555_v21  ;;  %v6215_v26 = vld [vmem:[%s9453_s2 + $0x20] sm:$0xff]  ;;  %v6216_v27 = vld [vmem:[%s9453_s2 + $0x28] sm:$0xff]  ;;  %v8572_v28 = vpack.c.bf16 %v558_v25, %v557_v24  ;;  %v6217_v30 = vld [vmem:[%s9453_s2 + $0x30] sm:$0xff] }
  0x2d   :  { %7651 = vmatpush3.bf16.msra.mxu1 %v7648_v7  ;;  %6792 = vmatprep.mubr.msk.f32.mxu0 %vm77_vm0, %v62_v13  ;;  %v8580_v29 = vpack.c.bf16 %v6216_v27, %v6215_v26  ;;  %v6218_v31 = vld [vmem:[%s9453_s2 + $0x38] sm:$0xff]  ;;  %v6219_v32 = vld [vmem:[%s9453_s2 + $0x40] sm:$0xff]  ;;  %v6220_v33 = vld [vmem:[%s9453_s2 + $0x48] sm:$0xff] }
  0x2e   :  { %6805 = vmatprep.mubr.msk.f32.mxu1 %vm77_vm0, %v60_v2  ;;  %7657 = vmatprep.subr.bf16.mxu1 %v7656_v14  ;;  %v8603_v34 = vpack.c.bf16 %v6218_v31, %v6217_v30  ;;  %v8611_v36 = vpack.c.bf16 %v6220_v33, %v6219_v32  ;;  %v6221_v37 = vld [vmem:[%s9453_s2 + $0x50] sm:$0xff]  ;;  %v6222_v38 = vld [vmem:[%s9453_s2 + $0x58] sm:$0xff]  ;;  %v6223_v40 = vld [vmem:[%s9453_s2 + $0x60] sm:$0xff] }
  0x2f   :  { %7653 = vmatprep.subr.bf16.mxu0 %v7652_v16  ;;  %v8626_v39 = vpack.c.bf16 %v6222_v38, %v6221_v37  ;;  %v6224_v41 = vld [vmem:[%s9453_s2 + $0x68] sm:$0xff]  ;;  %v6225_v43 = vld [vmem:[%s9453_s2 + $0x70] sm:$0xff]  ;;  %v6226_v44 = vld [vmem:[%s9453_s2 + $0x78] sm:$0xff] }
  0x30   :  { %6793 = vmatmul.mubr.msk.f32.gmra.mrb[2].mxu0 %vm77_vm0, %v63_v17  ;;  %6806 = vmatmul.mubr.msk.f32.vlgmr.msra.gmra.mrb[2].mxu1 %vm77_vm0, %v61_v10  ;;  %v8642_v42 = vpack.c.bf16 %v6224_v41, %v6223_v40  ;;  %v8654_v45 = vpack.c.bf16 %v6226_v44, %v6225_v43  ;;  %v6170_v46 = vld [vmem:[%s9454_s3] ss:$0 sm:$0xff]  ;;  %v6182_v54 = vld [vmem:[%s9454_s3 + $0x1] ss:$0 sm:$0xff]  ;;  %v6194_v6 = vld [vmem:[%s9454_s3 + $0x2] ss:$0 sm:$0xff] }
  0x31   :  { %7659 = vmatpush3.bf16.msra.mxu1 %v7656_v14  ;;  %6795 = vmatprep.mubr.msk.f32.mxu0 %vm77_vm0, %v64_v18  ;;  %v6206_v22 = vld [vmem:[%s9454_s3 + $0x3] ss:$0 sm:$0xff] }
  0x32   :  { %6808 = vmatprep.mubr.msk.f32.mxu1 %vm77_vm0, %v62_v13  ;;  %7655 = vmatpush3.bf16.msra.mxu0 %v7652_v16 }
  0x33   :  { %7660 = vmatprep.subr.bf16.mxu0 %v9463_v20  ;;  %7666 = vmatprep.subr.bf16.mxu1 %v9463_v20 }
  0x34   :  { %6796 = vmatmul.mubr.msk.f32.gmra.mrb[4].mxu0 %vm77_vm0, %v65_v19  ;;  %6809 = vmatmul.mubr.msk.f32.gmra.mrb[4].mxu1 %vm77_vm0, %v63_v17 }
  0x35   :  { %6811 = vmatprep.mubr.msk.f32.mxu1 %vm77_vm0, %v64_v18  ;;  %6821 = vmatprep.mubr.msk.f32.mxu0 %vm77_vm0, %v60_v2 }
  0x38   :  { %6812 = vmatmul.mubr.msk.f32.gmra.mrb[6].mxu1 %vm77_vm0, %v65_v19  ;;  %6822 = vmatmul.mubr.msk.f32.vlgmr.msra.gmra.mrb[6].mxu0 %vm77_vm0, %v61_v10 }
  0x39   :  { %6814 = vmatprep.mubr.msk.f32.mxu1 %vm77_vm0, %v8489_v4  ;;  %6824 = vmatprep.mubr.msk.f32.mxu0 %vm77_vm0, %v62_v13 }
  0x3a   :  { %7662 = vmatpush3.bf16.msra.mxu0 %v8552_v23 }
  0x3b   :  { %7663 = vmatprep.subr.bf16.mxu0 %v9463_v20 }
  0x3c   :  { %6815 = vmatmul.mubr.msk.f32.gmra.mrb[8].mxu1 %vm77_vm0, %v8511_v11  ;;  %6825 = vmatmul.mubr.msk.f32.gmra.mrb[8].mxu0 %vm77_vm0, %v63_v17 }
  0x3d   :  { %6827 = vmatprep.mubr.msk.f32.mxu0 %vm77_vm0, %v64_v18  ;;  %6837 = vmatprep.mubr.msk.f32.mxu1 %vm77_vm0, %v60_v2 }
  0x3e   :  { %7665 = vmatpush3.bf16.msra.mxu0 %v8572_v28 }
  0x3f   :  { %7672 = vmatprep.subr.bf16.mxu0 %v9463_v20 }
  0x40   :  { %6828 = vmatmul.mubr.msk.f32.gmra.mrb[10].mxu0 %vm77_vm0, %v65_v19  ;;  %6838 = vmatmul.mubr.msk.f32.vlgmr.msra.gmra.mrb[10].mxu1 %vm77_vm0, %v61_v10 }
  0x41   :  { %7668 = vmatpush3.bf16.msra.mxu1 %v8580_v29  ;;  %6830 = vmatprep.mubr.msk.f32.mxu0 %vm77_vm0, %v8489_v4 }
  0x42   :  { %6840 = vmatprep.mubr.msk.f32.mxu1 %vm77_vm0, %v62_v13  ;;  %7669 = vmatprep.subr.bf16.mxu1 %v9463_v20 }
  0x44   :  { %6831 = vmatmul.mubr.msk.f32.gmra.mrb[12].mxu0 %vm77_vm0, %v8511_v11  ;;  %6841 = vmatmul.mubr.msk.f32.gmra.mrb[12].mxu1 %vm77_vm0, %v63_v17 }
  0x45   :  { %6843 = vmatprep.mubr.msk.f32.mxu1 %vm77_vm0, %v64_v18  ;;  %6857 = vmatprep.mubr.msk.f32.mxu0 %vm8400_vm1, %v9461_v35 }
  0x46   :  { %7671 = vmatpush3.bf16.msra.mxu1 %v8603_v34 }
  0x47   :  { %7678 = vmatprep.subr.bf16.mxu1 %v9463_v20 }
  0x48   :  { %6844 = vmatmul.mubr.msk.f32.gmra.mrb[14].mxu1 %vm77_vm0, %v65_v19  ;;  %6858 = vmatmul.mubr.f32.vlgmr.msra.gmra.mrb[14].mxu0 %v9461_v35 }
  0x49   :  { %7674 = vmatpush3.bf16.msra.mxu0 %v8611_v36  ;;  %6846 = vmatprep.mubr.msk.f32.mxu1 %vm77_vm0, %v8489_v4 }
  0x4a   :  { %7675 = vmatprep.subr.bf16.mxu0 %v9463_v20  ;;  %6879 = vmatprep.mubr.msk.f32.mxu0 %vm8400_vm1, %v9461_v35 }
  0x4c   :  { %6847 = vmatmul.mubr.msk.f32.gmra.mrb[16].mxu1 %vm77_vm0, %v8511_v11 }
  0x4d   :  { %7677 = vmatpush3.bf16.msra.mxu0 %v8626_v39  ;;  %6868 = vmatprep.mubr.msk.f32.mxu1 %vm8400_vm1, %v9461_v35 }
  0x4e   :  { %7684 = vmatprep.subr.bf16.mxu0 %v9463_v20 }
  0x50   :  { %6880 = vmatmul.mubr.f32.vlgmr.msra.gmra.mrb[16].mxu0 %v9461_v35  ;;  %6869 = vmatmul.mubr.f32.vlgmr.msra.gmra.mrb[18].mxu1 %v9461_v35 }
  0x51   :  { %7680 = vmatpush3.bf16.msra.mxu1 %v8642_v42  ;;  %6890 = vmatprep.mubr.msk.f32.mxu1 %vm8400_vm1, %v9461_v35 }
  0x52   :  { %7681 = vmatprep.subr.bf16.mxu1 %v9463_v20  ;;  %7686 = vmatpush3.bf16.msra.mxu0 %v8552_v23 }
  0x53   :  { %7687 = vmatprep.subr.bf16.mxu0 %v9463_v20  ;;  %6901 = vmatprep.mubr.msk.f32.mxu0 %vm8400_vm1, %v9461_v35 }
  0x55   :  { %7683 = vmatpush3.bf16.msra.mxu1 %v8654_v45 }
  0x56   :  { %7690 = vmatprep.subr.bf16.mxu1 %v9463_v20  ;;  %7689 = vmatpush3.bf16.msra.mxu0 %v8572_v28 }
  0x57   :  { %7696 = vmatprep.subr.bf16.mxu0 %v9463_v20 }
  0x58   :  { %6891 = vmatmul.mubr.f32.vlgmr.msra.gmra.mrb[20].mxu1 %v9461_v35 }
  0x59   :  { %7692 = vmatpush3.bf16.msra.mxu1 %v8580_v29  ;;  %6912 = vmatprep.mubr.msk.f32.mxu1 %vm8400_vm1, %v9461_v35 }
  0x5a   :  { %7693 = vmatprep.subr.bf16.mxu1 %v9463_v20 }
  0x5d   :  { %7695 = vmatpush3.bf16.msra.mxu1 %v8603_v34 }
  0x5e   :  { %7702 = vmatprep.subr.bf16.mxu1 %v9463_v20 }
  0xff   :  { %v6800_v47 = vpop.f32.mrb[0].mxu1  ;;  %v6791_v48 = vpop.f32.mrb[0].mxu0 }
 0x100   :  { %v8677_v49 = vadd.f32 %v6800_v47, %v6170_v46  ;;  %v198_v50 = vpop.f32.mrb[1].mxu1  ;;  %v8679_v51 = vadd.f32 %v6791_v48, %v6170_v46  ;;  %v168_v52 = vpop.f32.mrb[1].mxu0 }
 0x101   :  { %v8681_v53 = vadd.f32 %v6170_v46, %v198_v50  ;;  %v169_v50 = vadd.f32 %v6170_v46, %v168_v52 }
 0x103   :  { %v6807_v55 = vpop.f32.mrb[2].mxu1  ;;  %v6794_v56 = vpop.f32.mrb[2].mxu0 }
 0x104   :  { %v8686_v57 = vadd.f32 %v6807_v55, %v6182_v54  ;;  %v284_v58 = vpop.f32.mrb[3].mxu1  ;;  %v8688_v59 = vadd.f32 %v6794_v56, %v6170_v46  ;;  %v178_v60 = vpop.f32.mrb[3].mxu0 }
 0x105   :  { %v8690_v61 = vadd.f32 %v6170_v46, %v178_v60 }
 0x107   :  { %v6810_v62 = vpop.f32.mrb[4].mxu1  ;;  %v6797_v63 = vpop.f32.mrb[4].mxu0 }
 0x108   :  { %v8692_v0 = vadd.f32 %v6810_v62, %v6182_v54  ;;  %v294_v1 = vpop.f32.mrb[5].mxu1  ;;  %v8694_v2 = vadd.f32 %v6797_v63, %v6170_v46  ;;  %v188_v3 = vpop.f32.mrb[5].mxu0 }
 0x109   :  { %v8696_v4 = vadd.f32 %v6182_v54, %v294_v1  ;;  %v8698_v5 = vadd.f32 %v6170_v46, %v188_v3 }
 0x10b   :  { %v6813_v7 = vpop.f32.mrb[6].mxu1  ;;  %v6823_v8 = vpop.f32.mrb[6].mxu0 }
 0x10c   :  { %v8703_v9 = vadd.f32 %v6813_v7, %v6182_v54  ;;  %v304_v10 = vpop.f32.mrb[7].mxu1  ;;  %v8705_v11 = vadd.f32 %v6823_v8, %v6194_v6  ;;  %v400_v12 = vpop.f32.mrb[7].mxu0 }
 0x10d   :  { %v8707_v13 = vadd.f32 %v6182_v54, %v304_v10 }
 0x10f   :  { %v6816_v14 = vpop.f32.mrb[8].mxu1  ;;  %v6826_v15 = vpop.f32.mrb[8].mxu0 }
 0x110   :  { %v8709_v16 = vadd.f32 %v6816_v14, %v6182_v54  ;;  %v314_v17 = vpop.f32.mrb[9].mxu1  ;;  %v8711_v18 = vadd.f32 %v6826_v15, %v6194_v6  ;;  %v410_v19 = vpop.f32.mrb[9].mxu0 }
 0x111   :  { %v8713_v21 = vadd.f32 %v6182_v54, %v314_v17  ;;  %v8718_v24 = vadd.f32 %v6194_v6, %v410_v19  ;;  %v285_v17 = vadd.f32 %v6182_v54, %v284_v58  ;;  %v401_v19 = vadd.f32 %v6194_v6, %v400_v12 }
 0x113   :  { %v6839_v25 = vpop.f32.mrb[10].mxu1  ;;  %v6829_v26 = vpop.f32.mrb[10].mxu0 }
 0x114   :  { %v8720_v27 = vadd.f32 %v6839_v25, %v6206_v22  ;;  %v516_v30 = vpop.f32.mrb[11].mxu1  ;;  %v8722_v31 = vadd.f32 %v6829_v26, %v6194_v6  ;;  %v420_v32 = vpop.f32.mrb[11].mxu0 }
 0x115   :  { %v8724_v33 = vadd.f32 %v6194_v6, %v420_v32 }
 0x117   :  { %v6842_v37 = vpop.f32.mrb[12].mxu1  ;;  %v6832_v38 = vpop.f32.mrb[12].mxu0 }
 0x118   :  { %v8726_v40 = vadd.f32 %v6842_v37, %v6206_v22  ;;  %v526_v41 = vpop.f32.mrb[13].mxu1  ;;  %v8728_v43 = vadd.f32 %v6832_v38, %v6194_v6  ;;  %v430_v44 = vpop.f32.mrb[13].mxu0 }
 0x119   :  { %v8730_v47 = vadd.f32 %v6206_v22, %v526_v41  ;;  %v8732_v48 = vadd.f32 %v6194_v6, %v430_v44  ;;  %v517_v44 = vadd.f32 %v6206_v22, %v516_v30 }
 0x11b   :  { %v6845_v55 = vpop.f32.mrb[14].mxu1  ;;  %v644_v56 = vpop.f32.mrb[14].mxu0 }
 0x11c   :  { %v8734_v60 = vadd.f32 %v6845_v55, %v6206_v22  ;;  %v858_v62 = vadd.f32 %v644_v56, %v169_v50  ;;  %v536_v63 = vpop.f32.mrb[15].mxu1  ;;  %v6859_v1 = vpop.f32.mrb[15].mxu0 }
 0x11d   :  { %v8736_v3 = vadd.f32 %v6206_v22, %v536_v63 }
 0x11e   :  { %v6227_v7 = vmul.f32 -1.442695, %v858_v62 }
 0x11f   :  { %v6848_v8 = vpop.f32.mrb[16].mxu1 }
 0x120   :  { %8091 = vpow2.f32 %v6227_v7  ;;  %v8738_v10 = vadd.f32 %v6848_v8, %v6206_v22  ;;  %v546_v14 = vpop.f32.mrb[17].mxu1 }
 0x121   :  { %v8740_v15 = vadd.f32 %v6206_v22, %v546_v14 }
 0x123   :  { %v784_v46 = vpop.f32.mrb[16].mxu0  ;;  %v714_v52 = vpop.f32.mrb[18].mxu1 }
 0x124   :  { %v872_v25 = vadd.f32 %v784_v46, %v401_v19  ;;  %v865_v26 = vadd.f32 %v714_v52, %v285_v17  ;;  %v6870_v32 = vpop.f32.mrb[19].mxu1  ;;  %v6881_v37 = vpop.f32.mrb[17].mxu0 }
 0x126   :  { %v6228_v38 = vmul.f32 -1.442695, %v865_v26 }
 0x128   :  { %8093 = vpow2.f32 %v6228_v38 }
 0x129   :  { %8095 = vtanh.f32 %v872_v25 }
 0x12a   :  { %v8092_v41 = vpop.eup %8091 }
 0x12b   :  { %v862_v50 = vadd.f32 1.0, %v8092_v41  ;;  %v854_v55 = vpop.f32.mrb[20].mxu1 }
 0x12c   :  { %v874_v56 = vadd.f32 %v854_v55, %v517_v44  ;;  %v6892_v62 = vpop.f32.mrb[21].mxu1 }
 0x12d   :  { %8097 = vrcp.f32 %v862_v50 }
 0x12e   :  { %v6229_v63 = vmul.f32 -1.442695, %v874_v56 }
 0x130   :  { %8099 = vpow2.f32 %v6229_v63 }
 0x132   :  { %v8094_v1 = vpop.eup %8093 }
 0x133   :  { %v869_v54 = vadd.f32 1.0, %v8094_v1  ;;  %v8096_v58 = vpop.eup %8095 }
 0x135   :  { %8101 = vrcp.f32 %v869_v54 }
 0x137   :  { %v8098_v6 = vpop.eup %8097 }
 0x138   :  { %v882_v12 = vmul.f32 %v8098_v6, %v8096_v58 }
 0x13a   :  { %v8100_v7 = vpop.eup %8099 }
 0x13b   :  { %v878_v14 = vadd.f32 1.0, %v8100_v7 }
 0x13d   :  { %8103 = vrcp.f32 %v878_v14 }
 0x13f   :  { %v8102_v8 = vpop.eup %8101 }
 0x140   :  { %v881_v17 = vmul.f32 0.0, %v8102_v8 }
 0x142   :  { %v8742_v19 = vadd.f32 %v882_v12, %v881_v17 }
 0x144   :  { %8105 = vtanh.f32 %v8742_v19 }
 0x147   :  { %v8104_v22 = vpop.eup %8103 }
 0x14e   :  { %v8106_v30 = vpop.eup %8105 }
 0x14f   :  { %v885_v46 = vmul.f32 %v8106_v30, %v8104_v22 }
 0x151   :  { %886 = vst.msk [vmem:[#allocation2] sm:$0xff] %vm574_vm2, %v885_v46  ;;  %6902 = vmatmul.mubr.msk.f32.vlgmr.msra.gmra.mrb[18].mxu0 %vm574_vm2, %v885_v46  ;;  %6913 = vmatmul.mubr.msk.f32.vlgmr.msra.gmra.mrb[22].mxu1 %vm574_vm2, %v885_v46 }
 0x152   :  { %7698 = vmatpush3.bf16.msra.mxu0 %v8611_v36  ;;  %7704 = vmatpush3.bf16.msra.mxu1 %v8642_v42 }
 0x153   :  { %7699 = vmatprep.subr.bf16.mxu0 %v9463_v20  ;;  %7705 = vmatprep.subr.bf16.mxu1 %v9463_v20 }
 0x154   :  { %6923 = vmatprep.mubr.msk.f32.mxu0 %vm8400_vm1, %v9461_v35  ;;  %6934 = vmatprep.mubr.msk.f32.mxu1 %vm8400_vm1, %v9461_v35 }
 0x156   :  { %7701 = vmatpush3.bf16.msra.mxu0 %v8626_v39  ;;  %7707 = vmatpush3.bf16.msra.mxu1 %v8654_v45 }
 0x157   :  { %7708 = vmatprep.subr.bf16.mxu0 %v9463_v20  ;;  %7714 = vmatprep.subr.bf16.mxu1 %v9463_v20 }
 0x159   :  { %6924 = vmatmul.mubr.msk.f32.vlgmr.msra.gmra.mrb[20].mxu0 %vm574_vm2, %v885_v46  ;;  %6935 = vmatmul.mubr.msk.f32.vlgmr.msra.gmra.mrb[24].mxu1 %vm574_vm2, %v885_v46 }
 0x15a   :  { %7710 = vmatpush3.bf16.msra.mxu0 %v8552_v23  ;;  %7716 = vmatpush3.bf16.msra.mxu1 %v8580_v29 }
 0x15b   :  { %7711 = vmatprep.subr.bf16.mxu0 %v9463_v20  ;;  %7717 = vmatprep.subr.bf16.mxu1 %v9463_v20 }
 0x15c   :  { %6945 = vmatprep.mubr.msk.f32.mxu0 %vm8400_vm1, %v9461_v35  ;;  %6956 = vmatprep.mubr.msk.f32.mxu1 %vm8400_vm1, %v9461_v35 }
 0x15e   :  { %7713 = vmatpush3.bf16.msra.mxu0 %v8572_v28  ;;  %7719 = vmatpush3.bf16.msra.mxu1 %v8603_v34 }
 0x15f   :  { %7720 = vmatprep.subr.bf16.mxu0 %v9463_v20  ;;  %7726 = vmatprep.subr.bf16.mxu1 %v9463_v20 }
 0x224   :  { %v956_v52 = vpop.f32.mrb[18].mxu0  ;;  %v1026_v25 = vpop.f32.mrb[22].mxu1 }
 0x225   :  { %v1170_v26 = vadd.f32 %v956_v52, %v8679_v51  ;;  %v1177_v32 = vadd.f32 %v1026_v25, %v8686_v57  ;;  %v6903_v37 = vpop.f32.mrb[19].mxu0  ;;  %v6914_v38 = vpop.f32.mrb[23].mxu1 }
 0x227   :  { %v6234_v41 = vmul.f32 -1.442695, %v1170_v26  ;;  %v6235_v44 = vmul.f32 -1.442695, %v1177_v32 }
 0x229   :  { %8107 = vpow2.f32 %v6234_v41 }
 0x22a   :  { %8109 = vpow2.f32 %v6235_v44 }
 0x22c   :  { %v1096_v50 = vpop.f32.mrb[20].mxu0  ;;  %v1166_v55 = vpop.f32.mrb[24].mxu1 }
 0x22d   :  { %v1184_v56 = vadd.f32 %v1096_v50, %v8705_v11  ;;  %v1186_v62 = vadd.f32 %v1166_v55, %v8720_v27  ;;  %v6925_v63 = vpop.f32.mrb[21].mxu0  ;;  %v6936_v1 = vpop.f32.mrb[25].mxu1 }
 0x22f   :  { %v6236_v54 = vmul.f32 -1.442695, %v1186_v62 }
 0x231   :  { %8111 = vpow2.f32 %v6236_v54 }
 0x232   :  { %8113 = vtanh.f32 %v1184_v56 }
 0x233   :  { %v8108_v58 = vpop.eup %8107 }
 0x234   :  { %v8110_v6 = vpop.eup %8109  ;;  %v1174_v51 = vadd.f32 1.0, %v8108_v58 }
 0x235   :  { %v1181_v57 = vadd.f32 1.0, %v8110_v6 }
 0x236   :  { %8115 = vrcp.f32 %v1174_v51 }
 0x237   :  { %8117 = vrcp.f32 %v1181_v57 }
 0x23b   :  { %v8112_v12 = vpop.eup %8111 }
 0x23c   :  { %v8114_v7 = vpop.eup %8113  ;;  %v1190_v22 = vadd.f32 1.0, %v8112_v12 }
 0x23e   :  { %8119 = vrcp.f32 %v1190_v22 }
 0x240   :  { %v8116_v8 = vpop.eup %8115 }
 0x241   :  { %v8118_v14 = vpop.eup %8117  ;;  %v1194_v17 = vmul.f32 %v8116_v8, %v8114_v7 }
 0x242   :  { %v1193_v11 = vmul.f32 %v8118_v14, %v8742_v19 }
 0x244   :  { %v1195_v27 = vadd.f32 %v1194_v17, %v1193_v11 }
 0x246   :  { %8121 = vtanh.f32 %v1195_v27 }
 0x248   :  { %v8120_v30 = vpop.eup %8119 }
 0x250   :  { %v8122_v46 = vpop.eup %8121 }
 0x251   :  { %v1197_v52 = vmul.f32 %v8122_v46, %v8120_v30 }
 0x253   :  { %1198 = vst.msk [vmem:[#allocation2 + $0x8] sm:$0xff] %vm574_vm2, %v1197_v52  ;;  %6946 = vmatmul.mubr.msk.f32.vlgmr.msra.gmra.mrb[22].mxu0 %vm574_vm2, %v1197_v52  ;;  %6957 = vmatmul.mubr.msk.f32.vlgmr.msra.gmra.mrb[26].mxu1 %vm574_vm2, %v1197_v52 }
 0x254   :  { %7722 = vmatpush3.bf16.msra.mxu0 %v8611_v36  ;;  %7728 = vmatpush3.bf16.msra.mxu1 %v8642_v42 }
 0x255   :  { %7723 = vmatprep.subr.bf16.mxu0 %v9463_v20  ;;  %7729 = vmatprep.subr.bf16.mxu1 %v9463_v20 }
 0x256   :  { %6967 = vmatprep.mubr.msk.f32.mxu0 %vm8400_vm1, %v9461_v35  ;;  %6978 = vmatprep.mubr.msk.f32.mxu1 %vm8400_vm1, %v9461_v35 }
 0x258   :  { %7725 = vmatpush3.bf16.msra.mxu0 %v8626_v39  ;;  %7731 = vmatpush3.bf16.msra.mxu1 %v8654_v45 }
 0x259   :  { %7732 = vmatprep.subr.bf16.mxu0 %v9463_v20  ;;  %7738 = vmatprep.subr.bf16.mxu1 %v9463_v20 }
 0x25b   :  { %6968 = vmatmul.mubr.msk.f32.vlgmr.msra.gmra.mrb[24].mxu0 %vm574_vm2, %v1197_v52  ;;  %6979 = vmatmul.mubr.msk.f32.vlgmr.msra.gmra.mrb[28].mxu1 %vm574_vm2, %v1197_v52 }
 0x25c   :  { %7734 = vmatpush3.bf16.msra.mxu0 %v8552_v23  ;;  %7740 = vmatpush3.bf16.msra.mxu1 %v8580_v29 }
 0x25d   :  { %7735 = vmatprep.subr.bf16.mxu0 %v9463_v20  ;;  %7741 = vmatprep.subr.bf16.mxu1 %v9463_v20 }
 0x25e   :  { %6989 = vmatprep.mubr.msk.f32.mxu0 %vm8400_vm1, %v9461_v35  ;;  %7000 = vmatprep.mubr.msk.f32.mxu1 %vm8400_vm1, %v9461_v35 }
 0x260   :  { %7737 = vmatpush3.bf16.msra.mxu0 %v8572_v28  ;;  %7743 = vmatpush3.bf16.msra.mxu1 %v8603_v34 }
 0x261   :  { %7744 = vmatprep.subr.bf16.mxu0 %v9463_v20  ;;  %7750 = vmatprep.subr.bf16.mxu1 %v9463_v20 }
 0x326   :  { %v1268_v19 = vpop.f32.mrb[22].mxu0  ;;  %v1338_v25 = vpop.f32.mrb[26].mxu1 }
 0x327   :  { %v1482_v26 = vadd.f32 %v1268_v19, %v8690_v61  ;;  %v1489_v32 = vadd.f32 %v1338_v25, %v8696_v4  ;;  %v6947_v37 = vpop.f32.mrb[23].mxu0  ;;  %v6958_v38 = vpop.f32.mrb[27].mxu1 }
 0x329   :  { %v6241_v41 = vmul.f32 -1.442695, %v1482_v26  ;;  %v6242_v44 = vmul.f32 -1.442695, %v1489_v32 }
 0x32b   :  { %8123 = vpow2.f32 %v6241_v41 }
 0x32c   :  { %8125 = vpow2.f32 %v6242_v44 }
 0x32e   :  { %v1408_v50 = vpop.f32.mrb[24].mxu0  ;;  %v1478_v55 = vpop.f32.mrb[28].mxu1 }
 0x32f   :  { %v1496_v56 = vadd.f32 %v1408_v50, %v8718_v24  ;;  %v1498_v62 = vadd.f32 %v1478_v55, %v8730_v47  ;;  %v6969_v63 = vpop.f32.mrb[25].mxu0  ;;  %v6980_v1 = vpop.f32.mrb[29].mxu1 }
 0x331   :  { %v6243_v54 = vmul.f32 -1.442695, %v1498_v62 }
 0x333   :  { %8127 = vpow2.f32 %v6243_v54 }
 0x334   :  { %8129 = vtanh.f32 %v1496_v56 }
 0x335   :  { %v8124_v58 = vpop.eup %8123 }
 0x336   :  { %v8126_v6 = vpop.eup %8125  ;;  %v1486_v61 = vadd.f32 1.0, %v8124_v58 }
 0x337   :  { %v1493_v4 = vadd.f32 1.0, %v8126_v6 }
 0x338   :  { %8131 = vrcp.f32 %v1486_v61 }
 0x339   :  { %8133 = vrcp.f32 %v1493_v4 }
 0x33d   :  { %v8128_v51 = vpop.eup %8127 }
 0x33e   :  { %v8130_v57 = vpop.eup %8129  ;;  %v1502_v14 = vadd.f32 1.0, %v8128_v51 }
 0x340   :  { %8135 = vrcp.f32 %v1502_v14 }
 0x342   :  { %v8132_v12 = vpop.eup %8131 }
 0x343   :  { %v8134_v7 = vpop.eup %8133  ;;  %v1506_v8 = vmul.f32 %v8132_v12, %v8130_v57 }
 0x344   :  { %v1505_v24 = vmul.f32 %v8134_v7, %v1195_v27 }
 0x346   :  { %v1507_v17 = vadd.f32 %v1506_v8, %v1505_v24 }
 0x348   :  { %8137 = vtanh.f32 %v1507_v17 }
 0x34a   :  { %v8136_v47 = vpop.eup %8135 }
 0x352   :  { %v8138_v22 = vpop.eup %8137 }
 0x353   :  { %v1509_v11 = vmul.f32 %v8138_v22, %v8136_v47 }
 0x355   :  { %1510 = vst.msk [vmem:[#allocation2 + $0x10] sm:$0xff] %vm574_vm2, %v1509_v11  ;;  %6990 = vmatmul.mubr.msk.f32.vlgmr.msra.gmra.mrb[26].mxu0 %vm574_vm2, %v1509_v11  ;;  %7001 = vmatmul.mubr.msk.f32.vlgmr.msra.gmra.mrb[30].mxu1 %vm574_vm2, %v1509_v11 }
 0x356   :  { %7746 = vmatpush3.bf16.msra.mxu0 %v8611_v36  ;;  %7752 = vmatpush3.bf16.msra.mxu1 %v8642_v42 }
 0x357   :  { %7747 = vmatprep.subr.bf16.mxu0 %v9463_v20  ;;  %7753 = vmatprep.subr.bf16.mxu1 %v9463_v20 }
 0x358   :  { %7011 = vmatprep.mubr.msk.f32.mxu0 %vm8400_vm1, %v9461_v35  ;;  %7022 = vmatprep.mubr.msk.f32.mxu1 %vm8400_vm1, %v9461_v35 }
 0x35a   :  { %7749 = vmatpush3.bf16.msra.mxu0 %v8626_v39  ;;  %7755 = vmatpush3.bf16.msra.mxu1 %v8654_v45 }
 0x35b   :  { %7756 = vmatprep.subr.bf16.mxu0 %v9463_v20  ;;  %7762 = vmatprep.subr.bf16.mxu1 %v9463_v20 }
 0x35d   :  { %7012 = vmatmul.mubr.msk.f32.vlgmr.msra.gmra.mrb[28].mxu0 %vm574_vm2, %v1509_v11  ;;  %7023 = vmatmul.mubr.msk.f32.vlgmr.msra.gmra.mrb[32].mxu1 %vm574_vm2, %v1509_v11 }
 0x35e   :  { %7758 = vmatpush3.bf16.msra.mxu0 %v8552_v23  ;;  %7764 = vmatpush3.bf16.msra.mxu1 %v8580_v29 }
 0x35f   :  { %7759 = vmatprep.subr.bf16.mxu0 %v9463_v20  ;;  %7765 = vmatprep.subr.bf16.mxu1 %v9463_v20 }
 0x360   :  { %7033 = vmatprep.mubr.msk.f32.mxu0 %vm8400_vm1, %v9461_v35  ;;  %7044 = vmatprep.mubr.msk.f32.mxu1 %vm8400_vm1, %v9461_v35 }
 0x362   :  { %7761 = vmatpush3.bf16.msra.mxu0 %v8572_v28  ;;  %7767 = vmatpush3.bf16.msra.mxu1 %v8603_v34 }
 0x363   :  { %7768 = vmatprep.subr.bf16.mxu0 %v9463_v20  ;;  %7774 = vmatprep.subr.bf16.mxu1 %v9463_v20 }
 0x428   :  { %v1580_v27 = vpop.f32.mrb[26].mxu0  ;;  %v1650_v30 = vpop.f32.mrb[30].mxu1 }
 0x429   :  { %v1794_v46 = vadd.f32 %v1580_v27, %v8688_v59  ;;  %v1801_v52 = vadd.f32 %v1650_v30, %v8692_v0  ;;  %v6991_v19 = vpop.f32.mrb[27].mxu0  ;;  %v7002_v25 = vpop.f32.mrb[31].mxu1 }
 0x42b   :  { %v6248_v26 = vmul.f32 -1.442695, %v1794_v46  ;;  %v6249_v32 = vmul.f32 -1.442695, %v1801_v52 }
 0x42d   :  { %8139 = vpow2.f32 %v6248_v26 }
 0x42e   :  { %8141 = vpow2.f32 %v6249_v32 }
 0x430   :  { %v1720_v37 = vpop.f32.mrb[28].mxu0  ;;  %v1790_v38 = vpop.f32.mrb[32].mxu1 }
 0x431   :  { %v1808_v41 = vadd.f32 %v1720_v37, %v8711_v18  ;;  %v1810_v44 = vadd.f32 %v1790_v38, %v8726_v40  ;;  %v7013_v50 = vpop.f32.mrb[29].mxu0  ;;  %v7024_v55 = vpop.f32.mrb[33].mxu1 }
 0x433   :  { %v6250_v56 = vmul.f32 -1.442695, %v1810_v44 }
 0x435   :  { %8143 = vpow2.f32 %v6250_v56 }
 0x436   :  { %8145 = vtanh.f32 %v1808_v41 }
 0x437   :  { %v8140_v62 = vpop.eup %8139 }
 0x438   :  { %v8142_v63 = vpop.eup %8141  ;;  %v1798_v59 = vadd.f32 1.0, %v8140_v62 }
 0x439   :  { %v1805_v0 = vadd.f32 1.0, %v8142_v63 }
 0x43a   :  { %8147 = vrcp.f32 %v1798_v59 }
 0x43b   :  { %8149 = vrcp.f32 %v1805_v0 }
 0x43f   :  { %v8144_v1 = vpop.eup %8143 }
 0x440   :  { %v8146_v54 = vpop.eup %8145  ;;  %v1814_v4 = vadd.f32 1.0, %v8144_v1 }
 0x442   :  { %8151 = vrcp.f32 %v1814_v4 }
 0x444   :  { %v8148_v58 = vpop.eup %8147 }
 0x445   :  { %v8150_v6 = vpop.eup %8149  ;;  %v1818_v61 = vmul.f32 %v8148_v58, %v8146_v54 }
 0x446   :  { %v1817_v18 = vmul.f32 %v8150_v6, %v1507_v17 }
 0x448   :  { %v1819_v51 = vadd.f32 %v1818_v61, %v1817_v18 }
 0x44a   :  { %8153 = vtanh.f32 %v1819_v51 }
 0x44c   :  { %v8152_v40 = vpop.eup %8151 }
 0x454   :  { %v8154_v57 = vpop.eup %8153 }
 0x455   :  { %v1821_v12 = vmul.f32 %v8154_v57, %v8152_v40 }
 0x457   :  { %1822 = vst.msk [vmem:[#allocation2 + $0x18] sm:$0xff] %vm574_vm2, %v1821_v12  ;;  %7034 = vmatmul.mubr.msk.f32.vlgmr.msra.gmra.mrb[30].mxu0 %vm574_vm2, %v1821_v12  ;;  %7045 = vmatmul.mubr.msk.f32.vlgmr.msra.gmra.mrb[34].mxu1 %vm574_vm2, %v1821_v12 }
 0x458   :  { %7770 = vmatpush3.bf16.msra.mxu0 %v8611_v36  ;;  %7776 = vmatpush3.bf16.msra.mxu1 %v8642_v42 }
 0x459   :  { %7771 = vmatprep.subr.bf16.mxu0 %v9463_v20  ;;  %7777 = vmatprep.subr.bf16.mxu1 %v9463_v20 }
 0x45a   :  { %7055 = vmatprep.mubr.msk.f32.mxu0 %vm8400_vm1, %v9461_v35  ;;  %7066 = vmatprep.mubr.msk.f32.mxu1 %vm8400_vm1, %v9461_v35 }
 0x45c   :  { %7773 = vmatpush3.bf16.msra.mxu0 %v8626_v39  ;;  %7779 = vmatpush3.bf16.msra.mxu1 %v8654_v45 }
 0x45d   :  { %7780 = vmatprep.subr.bf16.mxu0 %v9463_v20  ;;  %7786 = vmatprep.subr.bf16.mxu1 %v9463_v20 }
 0x45f   :  { %7056 = vmatmul.mubr.msk.f32.vlgmr.msra.gmra.mrb[32].mxu0 %vm574_vm2, %v1821_v12  ;;  %7067 = vmatmul.mubr.msk.f32.vlgmr.msra.gmra.mrb[36].mxu1 %vm574_vm2, %v1821_v12 }
 0x460   :  { %7782 = vmatpush3.bf16.msra.mxu0 %v8552_v23  ;;  %7788 = vmatpush3.bf16.msra.mxu1 %v8580_v29 }
 0x461   :  { %7783 = vmatprep.subr.bf16.mxu0 %v9463_v20  ;;  %7789 = vmatprep.subr.bf16.mxu1 %v9463_v20 }
 0x462   :  { %7077 = vmatprep.mubr.msk.f32.mxu0 %vm8400_vm1, %v9461_v35  ;;  %7088 = vmatprep.mubr.msk.f32.mxu1 %vm8400_vm1, %v9461_v35 }
 0x464   :  { %7785 = vmatpush3.bf16.msra.mxu0 %v8572_v28  ;;  %7791 = vmatpush3.bf16.msra.mxu1 %v8603_v34 }
 0x465   :  { %7792 = vmatprep.subr.bf16.mxu0 %v9463_v20  ;;  %7798 = vmatprep.subr.bf16.mxu1 %v9463_v20 }
 0x52a   :  { %v1892_v7 = vpop.f32.mrb[30].mxu0  ;;  %v1962_v8 = vpop.f32.mrb[34].mxu1 }
 0x52b   :  { %v2106_v14 = vadd.f32 %v1892_v7, %v8698_v5  ;;  %v2113_v24 = vadd.f32 %v1962_v8, %v8707_v13  ;;  %v7035_v17 = vpop.f32.mrb[31].mxu0  ;;  %v7046_v47 = vpop.f32.mrb[35].mxu1 }
 0x52d   :  { %v6255_v22 = vmul.f32 -1.442695, %v2106_v14  ;;  %v6256_v11 = vmul.f32 -1.442695, %v2113_v24 }
 0x52f   :  { %8155 = vpow2.f32 %v6255_v22 }
 0x530   :  { %8157 = vpow2.f32 %v6256_v11 }
 0x532   :  { %v2032_v27 = vpop.f32.mrb[32].mxu0  ;;  %v2102_v30 = vpop.f32.mrb[36].mxu1 }
 0x533   :  { %v2120_v46 = vadd.f32 %v2032_v27, %v8724_v33  ;;  %v2122_v52 = vadd.f32 %v2102_v30, %v8736_v3  ;;  %v7057_v19 = vpop.f32.mrb[33].mxu0  ;;  %v7068_v25 = vpop.f32.mrb[37].mxu1 }
 0x535   :  { %v6257_v26 = vmul.f32 -1.442695, %v2122_v52 }
 0x537   :  { %8159 = vpow2.f32 %v6257_v26 }
 0x538   :  { %8161 = vtanh.f32 %v2120_v46 }
 0x539   :  { %v8156_v32 = vpop.eup %8155 }
 0x53a   :  { %v8158_v37 = vpop.eup %8157  ;;  %v2110_v5 = vadd.f32 1.0, %v8156_v32 }
 0x53b   :  { %v2117_v13 = vadd.f32 1.0, %v8158_v37 }
 0x53c   :  { %8163 = vrcp.f32 %v2110_v5 }
 0x53d   :  { %8165 = vrcp.f32 %v2117_v13 }
 0x541   :  { %v8160_v38 = vpop.eup %8159 }
 0x542   :  { %v8162_v41 = vpop.eup %8161  ;;  %v2126_v56 = vadd.f32 1.0, %v8160_v38 }
 0x544   :  { %8167 = vrcp.f32 %v2126_v56 }
 0x546   :  { %v8164_v44 = vpop.eup %8163 }
 0x547   :  { %v8166_v50 = vpop.eup %8165  ;;  %v2130_v55 = vmul.f32 %v8164_v44, %v8162_v41 }
 0x548   :  { %v2129_v33 = vmul.f32 %v8166_v50, %v1819_v51 }
 0x54a   :  { %v2131_v62 = vadd.f32 %v2130_v55, %v2129_v33 }
 0x54c   :  { %8169 = vtanh.f32 %v2131_v62 }
 0x54e   :  { %v8168_v3 = vpop.eup %8167 }
 0x556   :  { %v8170_v63 = vpop.eup %8169 }
 0x557   :  { %v2133_v59 = vmul.f32 %v8170_v63, %v8168_v3 }
 0x559   :  { %2134 = vst.msk [vmem:[#allocation2 + $0x20] sm:$0xff] %vm574_vm2, %v2133_v59  ;;  %7078 = vmatmul.mubr.msk.f32.vlgmr.msra.gmra.mrb[34].mxu0 %vm574_vm2, %v2133_v59  ;;  %7089 = vmatmul.mubr.msk.f32.vlgmr.msra.gmra.mrb[38].mxu1 %vm574_vm2, %v2133_v59 }
 0x55a   :  { %7794 = vmatpush3.bf16.msra.mxu0 %v8611_v36  ;;  %7800 = vmatpush3.bf16.msra.mxu1 %v8642_v42 }
 0x55b   :  { %7795 = vmatprep.subr.bf16.mxu0 %v9463_v20  ;;  %7801 = vmatprep.subr.bf16.mxu1 %v9463_v20 }
 0x55c   :  { %7099 = vmatprep.mubr.msk.f32.mxu0 %vm8400_vm1, %v9461_v35  ;;  %7110 = vmatprep.mubr.msk.f32.mxu1 %vm8400_vm1, %v9461_v35 }
 0x55e   :  { %7797 = vmatpush3.bf16.msra.mxu0 %v8626_v39  ;;  %7803 = vmatpush3.bf16.msra.mxu1 %v8654_v45 }
 0x55f   :  { %7804 = vmatprep.subr.bf16.mxu0 %v9463_v20  ;;  %7810 = vmatprep.subr.bf16.mxu1 %v9463_v20 }
 0x561   :  { %7100 = vmatmul.mubr.msk.f32.vlgmr.msra.gmra.mrb[36].mxu0 %vm574_vm2, %v2133_v59  ;;  %7111 = vmatmul.mubr.msk.f32.vlgmr.msra.gmra.mrb[40].mxu1 %vm574_vm2, %v2133_v59 }
 0x562   :  { %7806 = vmatpush3.bf16.msra.mxu0 %v8552_v23  ;;  %7812 = vmatpush3.bf16.msra.mxu1 %v8580_v29 }
 0x563   :  { %7807 = vmatprep.subr.bf16.mxu0 %v9463_v20  ;;  %7813 = vmatprep.subr.bf16.mxu1 %v9463_v20 }
 0x564   :  { %7121 = vmatprep.mubr.msk.f32.mxu0 %vm8400_vm1, %v9461_v35  ;;  %7132 = vmatprep.mubr.msk.f32.mxu1 %vm8400_vm1, %v9461_v35 }
 0x566   :  { %7809 = vmatpush3.bf16.msra.mxu0 %v8572_v28  ;;  %7815 = vmatpush3.bf16.msra.mxu1 %v8603_v34 }
 0x567   :  { %7816 = vmatprep.subr.bf16.mxu0 %v9463_v20  ;;  %7822 = vmatprep.subr.bf16.mxu1 %v9463_v20 }
 0x62c   :  { %v2204_v0 = vpop.f32.mrb[34].mxu0  ;;  %v2274_v1 = vpop.f32.mrb[38].mxu1 }
 0x62d   :  { %v2418_v54 = vadd.f32 %v2204_v0, %v8694_v2  ;;  %v2425_v58 = vadd.f32 %v2274_v1, %v8703_v9  ;;  %v7079_v6 = vpop.f32.mrb[35].mxu0  ;;  %v7090_v61 = vpop.f32.mrb[39].mxu1 }
 0x62f   :  { %v6262_v4 = vmul.f32 -1.442695, %v2418_v54  ;;  %v6263_v18 = vmul.f32 -1.442695, %v2425_v58 }
 0x631   :  { %8171 = vpow2.f32 %v6262_v4  ;;  %v3079_v4 = vld [vmem:[#allocation3] sm:$0xff] }
 0x632   :  { %8173 = vpow2.f32 %v6263_v18  ;;  %v3080_v18 = vld [vmem:[#allocation3 + $0x8] sm:$0xff] }
 0x634   :  { %v2344_v51 = vpop.f32.mrb[36].mxu0  ;;  %v2414_v40 = vpop.f32.mrb[40].mxu1 }
 0x635   :  { %v2432_v57 = vadd.f32 %v2344_v51, %v8722_v31  ;;  %v2434_v12 = vadd.f32 %v2414_v40, %v8734_v60  ;;  %v7101_v7 = vpop.f32.mrb[37].mxu0  ;;  %v7112_v8 = vpop.f32.mrb[41].mxu1  ;;  %v3220_v51 = vld [vmem:[#allocation3 + $0x20] sm:$0xff]  ;;  %v3221_v40 = vld [vmem:[#allocation3 + $0x28] sm:$0xff] }
 0x636   :  { %v3081_v7 = vld [vmem:[#allocation3 + $0x10] sm:$0xff]  ;;  %v3082_v8 = vld [vmem:[#allocation3 + $0x18] sm:$0xff] }
 0x637   :  { %v6264_v14 = vmul.f32 -1.442695, %v2434_v12  ;;  %v7860_v12 = vpack.c.bf16 %v3221_v40, %v3220_v51 }
 0x639   :  { %8175 = vpow2.f32 %v6264_v14  ;;  %v3222_v14 = vld [vmem:[#allocation3 + $0x30] sm:$0xff] }
 0x63a   :  { %8177 = vtanh.f32 %v2432_v57  ;;  %v7852_v57 = vpack.c.bf16 %v3080_v18, %v3079_v4 }
 0x63b   :  { %v8172_v24 = vpop.eup %8171 }
 0x63c   :  { %v8174_v17 = vpop.eup %8173  ;;  %v2422_v2 = vadd.f32 1.0, %v8172_v24  ;;  %v3223_v24 = vld [vmem:[#allocation3 + $0x38] sm:$0xff] }
 0x63d   :  { %v2429_v9 = vadd.f32 1.0, %v8174_v17  ;;  %v8962_v17 = vld [vmem:[#allocation2] sm:$0xff] }
 0x63e   :  { %8179 = vrcp.f32 %v2422_v2  ;;  %v8980_v2 = vld [vmem:[#allocation2 + $0x18] sm:$0xff] }
 0x63f   :  { %8181 = vrcp.f32 %v2429_v9  ;;  %v8984_v9 = vld [vmem:[#allocation2 + $0x20] sm:$0xff] }
 0x643   :  { %v8176_v47 = vpop.eup %8175 }
 0x644   :  { %v8178_v22 = vpop.eup %8177  ;;  %v2438_v46 = vadd.f32 1.0, %v8176_v47 }
 0x646   :  { %8183 = vrcp.f32 %v2438_v46 }
 0x648   :  { %v8180_v11 = vpop.eup %8179 }
 0x649   :  { %v8182_v27 = vpop.eup %8181  ;;  %v2442_v30 = vmul.f32 %v8180_v11, %v8178_v22  ;;  %v3338_v11 = vld [vmem:[#allocation3 + $0x40] sm:$0xff] }
 0x64a   :  { %v2441_v31 = vmul.f32 %v8182_v27, %v2131_v62  ;;  %v3339_v27 = vld [vmem:[#allocation3 + $0x48] sm:$0xff] }
 0x64b   :  { %v7868_v46 = vpack.c.bf16 %v3339_v27, %v3338_v11  ;;  %v3573_v11 = vld [vmem:[#allocation5] sm:$0xff]  ;;  %v3574_v27 = vld [vmem:[#allocation5 + $0x8] sm:$0xff] }
 0x64c   :  { %v2443_v52 = vadd.f32 %v2442_v30, %v2441_v31  ;;  %v3456_v30 = vld [vmem:[#allocation3 + $0x60] sm:$0xff]  ;;  %v3457_v31 = vld [vmem:[#allocation3 + $0x68] sm:$0xff] }
 0x64e   :  { %8185 = vtanh.f32 %v2443_v52 }
 0x650   :  { %v8184_v60 = vpop.eup %8183 }
 0x658   :  { %v8186_v19 = vpop.eup %8185 }
 0x659   :  { %v2445_v25 = vmul.f32 %v8186_v19, %v8184_v60  ;;  %v3341_v60 = vld [vmem:[#allocation3 + $0x58] sm:$0xff]  ;;  %v7876_v19 = vpack.c.bf16 %v3457_v31, %v3456_v30  ;;  %v3579_v31 = vld [vmem:[#allocation5 + $0x28] sm:$0xff] }
 0x65b   :  { %2446 = vst.msk [vmem:[#allocation2 + $0x28] sm:$0xff] %vm574_vm2, %v2445_v25  ;;  %7122 = vmatmul.mubr.msk.f32.vlgmr.msra.gmra.mrb[38].mxu0 %vm574_vm2, %v2445_v25  ;;  %7133 = vmatmul.mubr.msk.f32.vlgmr.msra.gmra.mrb[42].mxu1 %vm574_vm2, %v2445_v25 }
 0x65c   :  { %7818 = vmatpush3.bf16.msra.mxu0 %v8611_v36  ;;  %7824 = vmatpush3.bf16.msra.mxu1 %v8642_v42 }
 0x65d   :  { %7819 = vmatprep.subr.bf16.mxu0 %v9463_v20  ;;  %7825 = vmatprep.subr.bf16.mxu1 %v9463_v20 }
 0x65e   :  { %7143 = vmatprep.mubr.msk.f32.mxu0 %vm8400_vm1, %v9461_v35  ;;  %7154 = vmatprep.mubr.msk.f32.mxu1 %vm8400_vm1, %v9461_v35 }
 0x660   :  { %7821 = vmatpush3.bf16.msra.mxu0 %v8626_v39  ;;  %7827 = vmatpush3.bf16.msra.mxu1 %v8654_v45 }
 0x661   :  { %7828 = vmatprep.subr.bf16.mxu0 %v9463_v20  ;;  %7834 = vmatprep.subr.bf16.mxu1 %v9463_v20 }
 0x662   :  { %v8992_v47 = vld [vmem:[#allocation2 + $0x28] sm:$0xff] }
 0x663   :  { %7144 = vmatmul.mubr.msk.f32.vlgmr.msra.gmra.mrb[40].mxu0 %vm574_vm2, %v2445_v25  ;;  %7155 = vmatmul.mubr.msk.f32.vlgmr.msra.gmra.mrb[44].mxu1 %vm574_vm2, %v2445_v25 }
 0x664   :  { %7830 = vmatpush3.bf16.msra.mxu0 %v8552_v23  ;;  %7836 = vmatpush3.bf16.msra.mxu1 %v8580_v29 }
 0x665   :  { %7831 = vmatprep.subr.bf16.mxu0 %v9463_v20  ;;  %7837 = vmatprep.subr.bf16.mxu1 %v9463_v20 }
 0x666   :  { %7165 = vmatprep.mubr.msk.f32.mxu0 %vm8400_vm1, %v9461_v35  ;;  %7176 = vmatprep.mubr.msk.f32.mxu1 %vm8400_vm1, %v9461_v35 }
 0x668   :  { %7833 = vmatpush3.bf16.msra.mxu0 %v8572_v28  ;;  %7839 = vmatpush3.bf16.msra.mxu1 %v8603_v34 }
 0x669   :  { %7840 = vmatprep.subr.bf16.mxu0 %v9463_v20  ;;  %7846 = vmatprep.subr.bf16.mxu1 %v9463_v20 }
 0x72e   :  { %v2516_v23 = vpop.f32.mrb[38].mxu0  ;;  %v2586_v29 = vpop.f32.mrb[42].mxu1 }
 0x72f   :  { %v2730_v26 = vadd.f32 %v2516_v23, %v8681_v53  ;;  %v2737_v32 = vadd.f32 %v2586_v29, %v8713_v21  ;;  %v7123_v37 = vpop.f32.mrb[39].mxu0  ;;  %v7134_v5 = vpop.f32.mrb[43].mxu1  ;;  %v3458_v23 = vld [vmem:[#allocation3 + $0x70] sm:$0xff]  ;;  %v3459_v29 = vld [vmem:[#allocation3 + $0x78] sm:$0xff] }
 0x731   :  { %v6269_v13 = vmul.f32 -1.442695, %v2730_v26  ;;  %v6270_v38 = vmul.f32 -1.442695, %v2737_v32  ;;  %v7880_v26 = vpack.c.bf16 %v3459_v29, %v3458_v23  ;;  %v3581_v23 = vld [vmem:[#allocation5 + $0x38] sm:$0xff] }
 0x733   :  { %8187 = vpow2.f32 %v6269_v13 }
 0x734   :  { %8189 = vpow2.f32 %v6270_v38 }
 0x736   :  { %v2656_v41 = vpop.f32.mrb[40].mxu0  ;;  %v2726_v28 = vpop.f32.mrb[44].mxu1 }
 0x737   :  { %v2744_v34 = vadd.f32 %v2656_v41, %v8732_v48  ;;  %v2746_v44 = vadd.f32 %v2726_v28, %v8740_v15  ;;  %v7145_v50 = vpop.f32.mrb[41].mxu0  ;;  %v7156_v55 = vpop.f32.mrb[45].mxu1 }
 0x739   :  { %v6271_v56 = vmul.f32 -1.442695, %v2746_v44 }
 0x73b   :  { %8191 = vpow2.f32 %v6271_v56 }
 0x73c   :  { %8193 = vtanh.f32 %v2744_v34 }
 0x73d   :  { %v8188_v33 = vpop.eup %8187 }
 0x73e   :  { %v8190_v62 = vpop.eup %8189  ;;  %v2734_v53 = vadd.f32 1.0, %v8188_v33 }
 0x73f   :  { %v2741_v21 = vadd.f32 1.0, %v8190_v62 }
 0x740   :  { %8195 = vrcp.f32 %v2734_v53 }
 0x741   :  { %8197 = vrcp.f32 %v2741_v21 }
 0x745   :  { %v8192_v3 = vpop.eup %8191 }
 0x746   :  { %v8194_v63 = vpop.eup %8193  ;;  %v2750_v54 = vadd.f32 1.0, %v8192_v3 }
 0x748   :  { %8199 = vrcp.f32 %v2750_v54 }
 0x74a   :  { %v8196_v59 = vpop.eup %8195 }
 0x74b   :  { %v8198_v0 = vpop.eup %8197  ;;  %v2754_v1 = vmul.f32 %v8196_v59, %v8194_v63 }
 0x74c   :  { %v2753_v48 = vmul.f32 %v8198_v0, %v2443_v52  ;;  %v3340_v52 = vld [vmem:[#allocation3 + $0x50] sm:$0xff] }
 0x74d   :  { %v7872_v25 = vpack.c.bf16 %v3341_v60, %v3340_v52  ;;  %v3575_v60 = vld [vmem:[#allocation5 + $0x10] sm:$0xff] }
 0x74e   :  { %v8944_v58 = vadd.f32 %v2754_v1, %v2753_v48 }
 0x750   :  { %8201 = vtanh.f32 %v8944_v58 }
 0x752   :  { %v8200_v15 = vpop.eup %8199 }
 0x75a   :  { %v8202_v6 = vpop.eup %8201 }
 0x75b   :  { %v2757_v61 = vmul.f32 %v8202_v6, %v8200_v15 }
 0x75d   :  { %2758 = vst.msk [vmem:[#allocation2 + $0x30] sm:$0xff] %vm574_vm2, %v2757_v61  ;;  %7166 = vmatmul.mubr.msk.f32.vlgmr.msra.gmra.mrb[42].mxu0 %vm574_vm2, %v2757_v61  ;;  %7177 = vmatmul.mubr.msk.f32.vlgmr.msra.gmra.mrb[46].mxu1 %vm574_vm2, %v2757_v61 }
 0x75e   :  { %7842 = vmatpush3.bf16.msra.mxu0 %v8611_v36  ;;  %7848 = vmatpush3.bf16.msra.mxu1 %v8642_v42  ;;  %v7856_v36 = vpack.c.bf16 %v3082_v8, %v3081_v7  ;;  %v7864_v42 = vpack.c.bf16 %v3223_v24, %v3222_v14 }
 0x75f   :  { %7843 = vmatprep.subr.bf16.mxu0 %v9463_v20  ;;  %7849 = vmatprep.subr.bf16.mxu1 %v9463_v20 }
 0x760   :  { %7187 = vmatprep.mubr.msk.f32.mxu0 %vm8400_vm1, %v9461_v35  ;;  %7198 = vmatprep.mubr.msk.f32.mxu1 %vm8400_vm1, %v9461_v35 }
 0x762   :  { %7845 = vmatpush3.bf16.msra.mxu0 %v8626_v39  ;;  %7851 = vmatpush3.bf16.msra.mxu1 %v8654_v45  ;;  %v8968_v39 = vld [vmem:[#allocation2 + $0x8] sm:$0xff]  ;;  %v8972_v45 = vld [vmem:[#allocation2 + $0x10] sm:$0xff] }
 0x763   :  { %7853 = vmatprep.subr.bf16.mxu0 %v7852_v57  ;;  %7861 = vmatprep.subr.bf16.mxu1 %v7860_v12 }
 0x764   :  { %v8996_v22 = vld [vmem:[#allocation2 + $0x30] sm:$0xff] }
 0x765   :  { %7188 = vmatmul.mubr.msk.f32.vlgmr.msra.gmra.mrb[44].mxu0 %vm574_vm2, %v2757_v61  ;;  %7199 = vmatmul.mubr.msk.f32.vlgmr.msra.gmra.mrb[48].mxu1 %vm574_vm2, %v2757_v61 }
 0x766   :  { %7855 = vmatpush3.bf16.msra.mxu0 %v7852_v57  ;;  %7209 = vmatprep.mubr.msk.f32.mxu0 %vm574_vm2, %v8962_v17 }
 0x767   :  { %7863 = vmatpush3.bf16.msra.mxu1 %v7860_v12  ;;  %7229 = vmatprep.mubr.msk.f32.mxu1 %vm574_vm2, %v8962_v17 }
 0x768   :  { %7857 = vmatprep.subr.bf16.mxu0 %v7856_v36  ;;  %7865 = vmatprep.subr.bf16.mxu1 %v7864_v42 }
 0x76a   :  { %7859 = vmatpush3.bf16.msra.mxu0 %v7856_v36 }
 0x76b   :  { %7867 = vmatpush3.bf16.msra.mxu1 %v7864_v42  ;;  %7869 = vmatprep.subr.bf16.mxu0 %v7868_v46 }
 0x76c   :  { %7877 = vmatprep.subr.bf16.mxu1 %v7876_v19 }
 0x76d   :  { %7210 = vmatmul.mubr.msk.f32.vlgmr.msra.gmra.mrb[46].mxu0 %vm574_vm2, %v8968_v39 }
 0x76e   :  { %7230 = vmatmul.mubr.msk.f32.vlgmr.msra.gmra.mrb[50].mxu1 %vm574_vm2, %v8968_v39  ;;  %7212 = vmatprep.mubr.msk.f32.mxu0 %vm574_vm2, %v8972_v45 }
 0x76f   :  { %7232 = vmatprep.mubr.msk.f32.mxu1 %vm574_vm2, %v8972_v45  ;;  %7871 = vmatpush3.bf16.msra.mxu0 %v7868_v46  ;;  %v3578_v46 = vld [vmem:[#allocation5 + $0x20] sm:$0xff] }
 0x770   :  { %7879 = vmatpush3.bf16.msra.mxu1 %v7876_v19  ;;  %7873 = vmatprep.subr.bf16.mxu0 %v7872_v25  ;;  %v9044_v52 = vpack.c.bf16 %v3579_v31, %v3578_v46  ;;  %v3576_v19 = vld [vmem:[#allocation5 + $0x18] sm:$0xff]  ;;  %v9161_v46 = vld [vmem:[%s9457_s6] ss:$0 sm:$0xff]  ;;  %v9166_v31 = vld [vmem:[%s9457_s6 + $0x1] ss:$0 sm:$0xff] }
 0x771   :  { %7213 = vmatmul.mubr.msk.f32.gmra.mrb[48].mxu0 %vm574_vm2, %v8980_v2  ;;  %7881 = vmatprep.subr.bf16.mxu1 %v7880_v26 }
 0x772   :  { %7233 = vmatmul.mubr.msk.f32.gmra.mrb[52].mxu1 %vm574_vm2, %v8980_v2  ;;  %7215 = vmatprep.mubr.msk.f32.mxu0 %vm574_vm2, %v8984_v9 }
 0x773   :  { %7235 = vmatprep.mubr.msk.f32.mxu1 %vm574_vm2, %v8984_v9  ;;  %7875 = vmatpush3.bf16.msra.mxu0 %v7872_v25  ;;  %v3580_v25 = vld [vmem:[#allocation5 + $0x30] sm:$0xff] }
 0x774   :  { %7883 = vmatpush3.bf16.msra.mxu1 %v7880_v26  ;;  %7884 = vmatprep.subr.bf16.mxu0 %v9463_v20  ;;  %v9058_v29 = vpack.c.bf16 %v3581_v23, %v3580_v25 }
 0x775   :  { %7216 = vmatmul.mubr.msk.f32.gmra.mrb[50].mxu0 %vm574_vm2, %v8992_v47  ;;  %7890 = vmatprep.subr.bf16.mxu1 %v9463_v20 }
 0x776   :  { %7236 = vmatmul.mubr.msk.f32.gmra.mrb[54].mxu1 %vm574_vm2, %v8992_v47  ;;  %7218 = vmatprep.mubr.msk.f32.mxu0 %vm574_vm2, %v8996_v22 }
 0x777   :  { %7238 = vmatprep.mubr.msk.f32.mxu1 %vm574_vm2, %v8996_v22 }
 0x830   :  { %v2828_v32 = vpop.f32.mrb[42].mxu0  ;;  %v2898_v37 = vpop.f32.mrb[46].mxu1 }
 0x831   :  { %v3042_v5 = vadd.f32 %v2828_v32, %v8677_v49  ;;  %v3049_v13 = vadd.f32 %v2898_v37, %v8709_v16  ;;  %v7167_v38 = vpop.f32.mrb[43].mxu0  ;;  %v7178_v41 = vpop.f32.mrb[47].mxu1  ;;  %v3585_v32 = vld [vmem:[#allocation5 + $0x50] sm:$0xff] }
 0x832   :  { %v3590_v37 = vld [vmem:[#allocation5 + $0x70] sm:$0xff] }
 0x833   :  { %v6276_v28 = vmul.f32 -1.442695, %v3042_v5  ;;  %v6277_v34 = vmul.f32 -1.442695, %v3049_v13  ;;  %v3591_v5 = vld [vmem:[#allocation5 + $0x78] sm:$0xff] }
 0x834   :  { %v9098_v38 = vpack.c.bf16 %v3591_v5, %v3590_v37 }
 0x835   :  { %8203 = vpow2.f32 %v6276_v28 }
 0x836   :  { %8205 = vpow2.f32 %v6277_v34 }
 0x838   :  { %v2968_v44 = vpop.f32.mrb[44].mxu0  ;;  %v3038_v50 = vpop.f32.mrb[48].mxu1 }
 0x839   :  { %v3056_v55 = vadd.f32 %v2968_v44, %v8728_v43  ;;  %v3058_v56 = vadd.f32 %v3038_v50, %v8738_v10  ;;  %v7189_v33 = vpop.f32.mrb[45].mxu0  ;;  %v7200_v62 = vpop.f32.mrb[49].mxu1  ;;  %v6299_v50 = vld [vmem:[%s9457_s6 + $0x2] ss:$0 sm:$0xff] }
 0x83b   :  { %v6278_v53 = vmul.f32 -1.442695, %v3058_v56 }
 0x83d   :  { %8207 = vpow2.f32 %v6278_v53 }
 0x83e   :  { %8209 = vtanh.f32 %v3056_v55  ;;  %v6309_v55 = vld [vmem:[%s9457_s6 + $0x3] ss:$0 sm:$0xff] }
 0x83f   :  { %v8204_v21 = vpop.eup %8203 }
 0x840   :  { %v8206_v3 = vpop.eup %8205  ;;  %v3046_v49 = vadd.f32 1.0, %v8204_v21  ;;  %v9010_v16 = vpop.f32.mrb[46].mxu0 }
 0x841   :  { %v3053_v63 = vadd.f32 1.0, %v8206_v3  ;;  %v9012_v59 = vpop.f32.mrb[50].mxu1  ;;  %v9014_v0 = vpop.f32.mrb[47].mxu0 }
 0x842   :  { %8211 = vrcp.f32 %v3046_v49  ;;  %v9016_v1 = vpop.f32.mrb[51].mxu1 }
 0x843   :  { %8213 = vrcp.f32 %v3053_v63 }
 0x844   :  { %v9018_v43 = vpop.f32.mrb[48].mxu0 }
 0x845   :  { %v9020_v10 = vpop.f32.mrb[52].mxu1  ;;  %v9022_v54 = vpop.f32.mrb[49].mxu0 }
 0x846   :  { %v9024_v48 = vpop.f32.mrb[53].mxu1 }
 0x847   :  { %v8208_v4 = vpop.eup %8207 }
 0x848   :  { %v9026_v15 = vpop.f32.mrb[50].mxu0  ;;  %v8210_v51 = vpop.eup %8209  ;;  %v3062_v7 = vadd.f32 1.0, %v8208_v4 }
 0x849   :  { %v9028_v6 = vpop.f32.mrb[54].mxu1  ;;  %v9030_v61 = vpop.f32.mrb[51].mxu0 }
 0x84a   :  { %v9032_v18 = vpop.f32.mrb[55].mxu1  ;;  %8215 = vrcp.f32 %v3062_v7 }
 0x84c   :  { %v8212_v40 = vpop.eup %8211 }
 0x84d   :  { %v8214_v57 = vpop.eup %8213  ;;  %v3066_v12 = vmul.f32 %v8212_v40, %v8210_v51 }
 0x84e   :  { %v3065_v8 = vmul.f32 %v8214_v57, %v8944_v58  ;;  %v9042_v58 = vpack.c.bf16 %v3574_v27, %v3573_v11 }
 0x850   :  { %v3067_v14 = vadd.f32 %v3066_v12, %v3065_v8 }
 0x852   :  { %8217 = vtanh.f32 %v3067_v14 }
 0x854   :  { %v8216_v24 = vpop.eup %8215 }
 0x85c   :  { %v8218_v36 = vpop.eup %8217 }
 0x85d   :  { %v3069_v42 = vmul.f32 %v8218_v36, %v8216_v24 }
 0x85f   :  { %3070 = vst.msk [vmem:[#allocation2 + $0x38] sm:$0xff] %vm574_vm2, %v3069_v42 }
 0x866   :  { %v3078_v30 = vld [vmem:[#allocation2 + $0x38] sm:$0xff] }
 0x867   :  { %7219 = vmatmul.mubr.msk.f32.gmra.mrb[52].mxu0 %vm574_vm2, %v3078_v30  ;;  %7239 = vmatmul.mubr.msk.f32.gmra.mrb[56].mxu1 %vm574_vm2, %v3078_v30 }
 0x868   :  { %7249 = vmatprep.mubr.msk.f32.mxu0 %vm574_vm2, %v8962_v17  ;;  %7269 = vmatprep.mubr.msk.f32.mxu1 %vm574_vm2, %v8962_v17  ;;  %v9056_v17 = vpack.c.bf16 %v3576_v19, %v3575_v60 }
 0x86b   :  { %7250 = vmatmul.mubr.msk.f32.vlgmr.msra.gmra.mrb[54].mxu0 %vm574_vm2, %v8968_v39  ;;  %7270 = vmatmul.mubr.msk.f32.vlgmr.msra.gmra.mrb[58].mxu1 %vm574_vm2, %v8968_v39  ;;  %v3583_v39 = vld [vmem:[#allocation5 + $0x40] sm:$0xff] }
 0x86c   :  { %7252 = vmatprep.mubr.msk.f32.mxu0 %vm574_vm2, %v8972_v45  ;;  %7272 = vmatprep.mubr.msk.f32.mxu1 %vm574_vm2, %v8972_v45  ;;  %v3584_v45 = vld [vmem:[#allocation5 + $0x48] sm:$0xff] }
 0x86d   :  { %7886 = vmatpush3.bf16.msra.mxu0 %v9042_v58  ;;  %7892 = vmatpush3.bf16.msra.mxu1 %v9044_v52 }
 0x86e   :  { %7887 = vmatprep.subr.bf16.mxu0 %v9463_v20  ;;  %7893 = vmatprep.subr.bf16.mxu1 %v9463_v20 }
 0x86f   :  { %7253 = vmatmul.mubr.msk.f32.gmra.mrb[56].mxu0 %vm574_vm2, %v8980_v2  ;;  %7273 = vmatmul.mubr.msk.f32.gmra.mrb[60].mxu1 %vm574_vm2, %v8980_v2  ;;  %v3588_v2 = vld [vmem:[#allocation5 + $0x60] sm:$0xff] }
 0x870   :  { %7255 = vmatprep.mubr.msk.f32.mxu0 %vm574_vm2, %v8984_v9  ;;  %7275 = vmatprep.mubr.msk.f32.mxu1 %vm574_vm2, %v8984_v9  ;;  %v3589_v9 = vld [vmem:[#allocation5 + $0x68] sm:$0xff] }
 0x871   :  { %7889 = vmatpush3.bf16.msra.mxu0 %v9056_v17  ;;  %7895 = vmatpush3.bf16.msra.mxu1 %v9058_v29  ;;  %v9090_v26 = vpack.c.bf16 %v3589_v9, %v3588_v2 }
 0x872   :  { %7896 = vmatprep.subr.bf16.mxu0 %v9463_v20  ;;  %7902 = vmatprep.subr.bf16.mxu1 %v9463_v20 }
 0x873   :  { %7256 = vmatmul.mubr.msk.f32.gmra.mrb[58].mxu0 %vm574_vm2, %v8992_v47  ;;  %7276 = vmatmul.mubr.msk.f32.gmra.mrb[62].mxu1 %vm574_vm2, %v8992_v47  ;;  %v9088_v47 = vpack.c.bf16 %v3584_v45, %v3583_v39 }
 0x874   :  { %7258 = vmatprep.mubr.msk.f32.mxu0 %vm574_vm2, %v8996_v22  ;;  %7278 = vmatprep.mubr.msk.f32.mxu1 %vm574_vm2, %v8996_v22  ;;  %v3586_v22 = vld [vmem:[#allocation5 + $0x58] sm:$0xff] }
 0x875   :  { %v9096_v13 = vpack.c.bf16 %v3586_v22, %v3585_v32  ;;  %v3181_v32 = vadd.f32 %v9161_v46, %v9014_v0  ;;  %v3299_v22 = vadd.f32 %v9166_v31, %v9016_v1 }
 0x877   :  { %7259 = vmatmul.mubr.msk.f32.gmra.mrb[60].mxu0 %vm574_vm2, %v3078_v30  ;;  %7279 = vmatmul.mubr.msk.f32.gmra.mrb[64].mxu1 %vm574_vm2, %v3078_v30 }
 0x878   :  { %7289 = vmatprep.mubr.msk.f32.mxu0 %vm8400_vm1, %v9461_v35  ;;  %7300 = vmatprep.mubr.msk.f32.mxu1 %vm8400_vm1, %v9461_v35 }
 0x87b   :  { %7290 = vmatmul.mubr.f32.vlgmr.msra.gmra.mrb[62].mxu0 %v9461_v35  ;;  %7301 = vmatmul.mubr.f32.vlgmr.msra.gmra.mrb[66].mxu1 %v9461_v35 }
 0x87c   :  { %7898 = vmatpush3.bf16.msra.mxu0 %v9088_v47  ;;  %7904 = vmatpush3.bf16.msra.mxu1 %v9090_v26 }
 0x87d   :  { %7899 = vmatprep.subr.bf16.mxu0 %v9463_v20  ;;  %7905 = vmatprep.subr.bf16.mxu1 %v9463_v20 }
 0x87e   :  { %7311 = vmatprep.mubr.msk.f32.mxu0 %vm8400_vm1, %v9461_v35  ;;  %7322 = vmatprep.mubr.msk.f32.mxu1 %vm8400_vm1, %v9461_v35 }
 0x880   :  { %7901 = vmatpush3.bf16.msra.mxu0 %v9096_v13  ;;  %7907 = vmatpush3.bf16.msra.mxu1 %v9098_v38 }
 0x881   :  { %7908 = vmatprep.subr.bf16.mxu0 %v9463_v20  ;;  %7914 = vmatprep.subr.bf16.mxu1 %v9463_v20 }
 0x883   :  { %7312 = vmatmul.mubr.f32.vlgmr.msra.gmra.mrb[64].mxu0 %v9461_v35  ;;  %7323 = vmatmul.mubr.f32.vlgmr.msra.gmra.mrb[68].mxu1 %v9461_v35 }
 0x884   :  { %7910 = vmatpush3.bf16.msra.mxu0 %v9042_v58  ;;  %7916 = vmatpush3.bf16.msra.mxu1 %v9044_v52 }
 0x885   :  { %7911 = vmatprep.subr.bf16.mxu0 %v9463_v20  ;;  %7917 = vmatprep.subr.bf16.mxu1 %v9463_v20 }
 0x886   :  { %7333 = vmatprep.mubr.msk.f32.mxu0 %vm8400_vm1, %v9461_v35  ;;  %7344 = vmatprep.mubr.msk.f32.mxu1 %vm8400_vm1, %v9461_v35 }
 0x888   :  { %7913 = vmatpush3.bf16.msra.mxu0 %v9056_v17  ;;  %7919 = vmatpush3.bf16.msra.mxu1 %v9058_v29 }
 0x889   :  { %7920 = vmatprep.subr.bf16.mxu0 %v9463_v20  ;;  %7926 = vmatprep.subr.bf16.mxu1 %v9463_v20 }
 0x93a   :  { %v9124_v41 = vpop.f32.mrb[52].mxu0  ;;  %v9126_v28 = vpop.f32.mrb[56].mxu1 }
 0x93b   :  { %v9128_v34 = vpop.f32.mrb[53].mxu0  ;;  %v9130_v44 = vpop.f32.mrb[57].mxu1 }
 0x93e   :  { %v7251_v56 = vpop.f32.mrb[54].mxu0  ;;  %v7271_v33 = vpop.f32.mrb[58].mxu1 }
 0x93f   :  { %v9138_v62 = vadd.f32 %v7251_v56, %v6299_v50  ;;  %v9140_v53 = vadd.f32 %v7271_v33, %v6309_v55  ;;  %v3416_v21 = vpop.f32.mrb[55].mxu0  ;;  %v3534_v3 = vpop.f32.mrb[59].mxu1 }
 0x942   :  { %v7254_v49 = vpop.f32.mrb[56].mxu0  ;;  %v7274_v63 = vpop.f32.mrb[60].mxu1 }
 0x943   :  { %v9142_v4 = vadd.f32 %v7254_v49, %v6299_v50  ;;  %v9144_v51 = vadd.f32 %v7274_v63, %v6309_v55  ;;  %v3426_v40 = vpop.f32.mrb[57].mxu0  ;;  %v3544_v57 = vpop.f32.mrb[61].mxu1 }
 0x944   :  { %v9146_v12 = vadd.f32 %v6299_v50, %v3426_v40  ;;  %v9148_v7 = vadd.f32 %v6309_v55, %v3544_v57 }
 0x946   :  { %v7257_v8 = vpop.f32.mrb[58].mxu0  ;;  %v7277_v14 = vpop.f32.mrb[62].mxu1 }
 0x947   :  { %v9150_v24 = vadd.f32 %v7257_v8, %v6299_v50  ;;  %v9152_v36 = vadd.f32 %v7277_v14, %v6309_v55  ;;  %v3436_v42 = vpop.f32.mrb[59].mxu0  ;;  %v3554_v11 = vpop.f32.mrb[63].mxu1  ;;  %v3417_v8 = vadd.f32 %v6299_v50, %v3416_v21  ;;  %v3535_v14 = vadd.f32 %v6309_v55, %v3534_v3 }
 0x948   :  { %v9154_v27 = vadd.f32 %v6299_v50, %v3436_v42  ;;  %v9156_v30 = vadd.f32 %v6309_v55, %v3554_v11 }
 0x94a   :  { %v7260_v60 = vpop.f32.mrb[60].mxu0  ;;  %v7280_v19 = vpop.f32.mrb[64].mxu1 }
 0x94b   :  { %v9168_v25 = vadd.f32 %v7260_v60, %v6299_v50  ;;  %v9170_v23 = vadd.f32 %v7280_v19, %v6309_v55  ;;  %v3446_v39 = vpop.f32.mrb[61].mxu0  ;;  %v3564_v45 = vpop.f32.mrb[65].mxu1 }
 0x94c   :  { %v9172_v2 = vadd.f32 %v6299_v50, %v3446_v39  ;;  %v9174_v9 = vadd.f32 %v6309_v55, %v3564_v45 }
 0x94e   :  { %v3658_v37 = vpop.f32.mrb[62].mxu0  ;;  %v3728_v5 = vpop.f32.mrb[66].mxu1 }
 0x94f   :  { %v3872_v56 = vadd.f32 %v3658_v37, %v3181_v32  ;;  %v3879_v33 = vadd.f32 %v3728_v5, %v3299_v22  ;;  %v7291_v49 = vpop.f32.mrb[63].mxu0  ;;  %v7302_v63 = vpop.f32.mrb[67].mxu1 }
 0x951   :  { %v6318_v40 = vmul.f32 -1.442695, %v3872_v56  ;;  %v6319_v57 = vmul.f32 -1.442695, %v3879_v33 }
 0x953   :  { %8219 = vpow2.f32 %v6318_v40  ;;  %v3186_v40 = vadd.f32 %v9010_v16, %v9161_v46 }
 0x954   :  { %8221 = vpow2.f32 %v6319_v57  ;;  %v3304_v57 = vadd.f32 %v9012_v59, %v9166_v31 }
 0x956   :  { %v3798_v42 = vpop.f32.mrb[64].mxu0  ;;  %v3868_v11 = vpop.f32.mrb[68].mxu1 }
 0x957   :  { %v3886_v60 = vadd.f32 %v3798_v42, %v3417_v8  ;;  %v3888_v19 = vadd.f32 %v3868_v11, %v3535_v14  ;;  %v7313_v0 = vpop.f32.mrb[65].mxu0  ;;  %v7324_v39 = vpop.f32.mrb[69].mxu1 }
 0x959   :  { %v6320_v45 = vmul.f32 -1.442695, %v3888_v19 }
 0x95b   :  { %8223 = vpow2.f32 %v6320_v45 }
 0x95c   :  { %8225 = vtanh.f32 %v3886_v60 }
 0x95d   :  { %v8220_v1 = vpop.eup %8219 }
 0x95e   :  { %v8222_v35 = vpop.eup %8221  ;;  %v3876_v20 = vadd.f32 1.0, %v8220_v1 }
 0x95f   :  { %v3883_v32 = vadd.f32 1.0, %v8222_v35  ;;  %v9466_v35 = vmov 0.0  }
 0x960   :  { %8227 = vrcp.f32 %v3876_v20  ;;  %v9465_v20 = vmov 0.0|0.0  }
 0x961   :  { %8229 = vrcp.f32 %v3883_v32 }
 0x965   :  { %v8224_v22 = vpop.eup %8223 }
 0x966   :  { %v8226_v37 = vpop.eup %8225  ;;  %v3892_v21 = vadd.f32 1.0, %v8224_v22 }
 0x968   :  { %8231 = vrcp.f32 %v3892_v21 }
 0x96a   :  { %v8228_v5 = vpop.eup %8227 }
 0x96b   :  { %v8230_v50 = vpop.eup %8229  ;;  %v3896_v55 = vmul.f32 %v8228_v5, %v8226_v37 }
 0x96c   :  { %v3895_v3 = vmul.f32 0.0, %v8230_v50 }
 0x96e   :  { %v9180_v56 = vadd.f32 %v3896_v55, %v3895_v3 }
 0x970   :  { %8233 = vtanh.f32 %v9180_v56 }
 0x972   :  { %v8232_v33 = vpop.eup %8231 }
 0x97a   :  { %v8234_v49 = vpop.eup %8233 }
 0x97b   :  { %v3899_v63 = vmul.f32 %v8234_v49, %v8232_v33 }
 0x97d   :  { %7334 = vmatmul.mubr.msk.f32.vlgmr.msra.gmra.mrb[66].mxu0 %vm574_vm2, %v3899_v63  ;;  %7345 = vmatmul.mubr.msk.f32.vlgmr.msra.gmra.mrb[70].mxu1 %vm574_vm2, %v3899_v63 }
 0x97e   :  { %7922 = vmatpush3.bf16.msra.mxu0 %v9088_v47  ;;  %7928 = vmatpush3.bf16.msra.mxu1 %v9090_v26 }
 0x97f   :  { %7923 = vmatprep.subr.bf16.mxu0 %v9465_v20  ;;  %7929 = vmatprep.subr.bf16.mxu1 %v9465_v20 }
 0x980   :  { %7355 = vmatprep.mubr.msk.f32.mxu0 %vm8400_vm1, %v9466_v35  ;;  %7366 = vmatprep.mubr.msk.f32.mxu1 %vm8400_vm1, %v9466_v35 }
 0x982   :  { %7925 = vmatpush3.bf16.msra.mxu0 %v9096_v13  ;;  %7931 = vmatpush3.bf16.msra.mxu1 %v9098_v38 }
 0x983   :  { %7932 = vmatprep.subr.bf16.mxu0 %v9465_v20  ;;  %7938 = vmatprep.subr.bf16.mxu1 %v9465_v20 }
 0x985   :  { %7356 = vmatmul.mubr.msk.f32.vlgmr.msra.gmra.mrb[68].mxu0 %vm574_vm2, %v3899_v63  ;;  %7367 = vmatmul.mubr.msk.f32.vlgmr.msra.gmra.mrb[72].mxu1 %vm574_vm2, %v3899_v63 }
 0x986   :  { %7934 = vmatpush3.bf16.msra.mxu0 %v9042_v58  ;;  %7940 = vmatpush3.bf16.msra.mxu1 %v9044_v52 }
 0x987   :  { %7935 = vmatprep.subr.bf16.mxu0 %v9465_v20  ;;  %7941 = vmatprep.subr.bf16.mxu1 %v9465_v20 }
 0x988   :  { %7377 = vmatprep.mubr.msk.f32.mxu0 %vm8400_vm1, %v9466_v35  ;;  %7388 = vmatprep.mubr.msk.f32.mxu1 %vm8400_vm1, %v9466_v35 }
 0x98a   :  { %7937 = vmatpush3.bf16.msra.mxu0 %v9056_v17  ;;  %7943 = vmatpush3.bf16.msra.mxu1 %v9058_v29 }
 0x98b   :  { %7944 = vmatprep.subr.bf16.mxu0 %v9465_v20  ;;  %7950 = vmatprep.subr.bf16.mxu1 %v9465_v20 }
 0xa50   :  { %v3969_v8 = vpop.f32.mrb[66].mxu0  ;;  %v4039_v14 = vpop.f32.mrb[70].mxu1 }
 0xa51   :  { %v4183_v42 = vadd.f32 %v3969_v8, %v3186_v40  ;;  %v4190_v11 = vadd.f32 %v4039_v14, %v3304_v57  ;;  %v7335_v60 = vpop.f32.mrb[67].mxu0  ;;  %v7346_v19 = vpop.f32.mrb[71].mxu1 }
 0xa53   :  { %v6325_v0 = vmul.f32 -1.442695, %v4183_v42  ;;  %v6326_v39 = vmul.f32 -1.442695, %v4190_v11  ;;  %v3309_v11 = vadd.f32 %v9166_v31, %v9024_v48 }
 0xa55   :  { %8235 = vpow2.f32 %v6325_v0 }
 0xa56   :  { %8237 = vpow2.f32 %v6326_v39 }
 0xa58   :  { %v4109_v45 = vpop.f32.mrb[68].mxu0  ;;  %v4179_v1 = vpop.f32.mrb[72].mxu1 }
 0xa59   :  { %v4197_v32 = vadd.f32 %v4109_v45, %v9138_v62  ;;  %v4199_v22 = vadd.f32 %v4179_v1, %v9140_v53  ;;  %v7357_v16 = vpop.f32.mrb[69].mxu0  ;;  %v7368_v37 = vpop.f32.mrb[73].mxu1 }
 0xa5b   :  { %v6327_v5 = vmul.f32 -1.442695, %v4199_v22 }
 0xa5d   :  { %8239 = vpow2.f32 %v6327_v5 }
 0xa5e   :  { %8241 = vtanh.f32 %v4197_v32 }
 0xa5f   :  { %v8236_v59 = vpop.eup %8235 }
 0xa60   :  { %v8238_v50 = vpop.eup %8237  ;;  %v4187_v55 = vadd.f32 1.0, %v8236_v59 }
 0xa61   :  { %v4194_v21 = vadd.f32 1.0, %v8238_v50 }
 0xa62   :  { %8243 = vrcp.f32 %v4187_v55 }
 0xa63   :  { %8245 = vrcp.f32 %v4194_v21 }
 0xa67   :  { %v8240_v3 = vpop.eup %8239 }
 0xa68   :  { %v8242_v33 = vpop.eup %8241  ;;  %v4203_v57 = vadd.f32 1.0, %v8240_v3 }
 0xa6a   :  { %8247 = vrcp.f32 %v4203_v57 }
 0xa6c   :  { %v8244_v49 = vpop.eup %8243 }
 0xa6d   :  { %v8246_v63 = vpop.eup %8245  ;;  %v4207_v40 = vmul.f32 %v8244_v49, %v8242_v33 }
 0xa6e   :  { %v4206_v62 = vmul.f32 %v8246_v63, %v9180_v56  ;;  %v3191_v56 = vadd.f32 %v9161_v46, %v9022_v54 }
 0xa70   :  { %v9218_v53 = vadd.f32 %v4207_v40, %v4206_v62 }
 0xa72   :  { %8249 = vtanh.f32 %v9218_v53 }
 0xa74   :  { %v8248_v8 = vpop.eup %8247 }
 0xa7c   :  { %v8250_v14 = vpop.eup %8249 }
 0xa7d   :  { %v4210_v42 = vmul.f32 %v8250_v14, %v8248_v8 }
 0xa7f   :  { %7378 = vmatmul.mubr.msk.f32.vlgmr.msra.gmra.mrb[70].mxu0 %vm574_vm2, %v4210_v42  ;;  %7389 = vmatmul.mubr.msk.f32.vlgmr.msra.gmra.mrb[74].mxu1 %vm574_vm2, %v4210_v42 }
 0xa80   :  { %7946 = vmatpush3.bf16.msra.mxu0 %v9088_v47  ;;  %7952 = vmatpush3.bf16.msra.mxu1 %v9090_v26 }
 0xa81   :  { %7947 = vmatprep.subr.bf16.mxu0 %v9465_v20  ;;  %7953 = vmatprep.subr.bf16.mxu1 %v9465_v20 }
 0xa82   :  { %7399 = vmatprep.mubr.msk.f32.mxu0 %vm8400_vm1, %v9466_v35  ;;  %7410 = vmatprep.mubr.msk.f32.mxu1 %vm8400_vm1, %v9466_v35 }
 0xa84   :  { %7949 = vmatpush3.bf16.msra.mxu0 %v9096_v13  ;;  %7955 = vmatpush3.bf16.msra.mxu1 %v9098_v38 }
 0xa85   :  { %7956 = vmatprep.subr.bf16.mxu0 %v9465_v20  ;;  %7962 = vmatprep.subr.bf16.mxu1 %v9465_v20 }
 0xa87   :  { %7400 = vmatmul.mubr.msk.f32.vlgmr.msra.gmra.mrb[72].mxu0 %vm574_vm2, %v4210_v42  ;;  %7411 = vmatmul.mubr.msk.f32.vlgmr.msra.gmra.mrb[76].mxu1 %vm574_vm2, %v4210_v42 }
 0xa88   :  { %7958 = vmatpush3.bf16.msra.mxu0 %v9042_v58  ;;  %7964 = vmatpush3.bf16.msra.mxu1 %v9044_v52 }
 0xa89   :  { %7959 = vmatprep.subr.bf16.mxu0 %v9465_v20  ;;  %7965 = vmatprep.subr.bf16.mxu1 %v9465_v20 }
 0xa8a   :  { %7421 = vmatprep.mubr.msk.f32.mxu0 %vm8400_vm1, %v9466_v35  ;;  %7432 = vmatprep.mubr.msk.f32.mxu1 %vm8400_vm1, %v9466_v35 }
 0xa8c   :  { %7961 = vmatpush3.bf16.msra.mxu0 %v9056_v17  ;;  %7967 = vmatpush3.bf16.msra.mxu1 %v9058_v29 }
 0xa8d   :  { %7968 = vmatprep.subr.bf16.mxu0 %v9465_v20  ;;  %7974 = vmatprep.subr.bf16.mxu1 %v9465_v20 }
 0xb52   :  { %v4280_v60 = vpop.f32.mrb[70].mxu0  ;;  %v4350_v19 = vpop.f32.mrb[74].mxu1 }
 0xb53   :  { %v4494_v0 = vadd.f32 %v4280_v60, %v3191_v56  ;;  %v4501_v39 = vadd.f32 %v4350_v19, %v3309_v11  ;;  %v7379_v45 = vpop.f32.mrb[71].mxu0  ;;  %v7390_v1 = vpop.f32.mrb[75].mxu1  ;;  %v3314_v11 = vadd.f32 %v9020_v10, %v9166_v31 }
 0xb55   :  { %v6332_v32 = vmul.f32 -1.442695, %v4494_v0  ;;  %v6333_v22 = vmul.f32 -1.442695, %v4501_v39 }
 0xb57   :  { %8251 = vpow2.f32 %v6332_v32 }
 0xb58   :  { %8253 = vpow2.f32 %v6333_v22 }
 0xb5a   :  { %v4420_v16 = vpop.f32.mrb[72].mxu0  ;;  %v4490_v37 = vpop.f32.mrb[76].mxu1 }
 0xb5b   :  { %v4508_v5 = vadd.f32 %v4420_v16, %v9146_v12  ;;  %v4510_v59 = vadd.f32 %v4490_v37, %v9148_v7  ;;  %v7401_v54 = vpop.f32.mrb[73].mxu0  ;;  %v7412_v50 = vpop.f32.mrb[77].mxu1 }
 0xb5d   :  { %v6334_v55 = vmul.f32 -1.442695, %v4510_v59 }
 0xb5f   :  { %8255 = vpow2.f32 %v6334_v55 }
 0xb60   :  { %8257 = vtanh.f32 %v4508_v5 }
 0xb61   :  { %v8252_v48 = vpop.eup %8251 }
 0xb62   :  { %v8254_v21 = vpop.eup %8253  ;;  %v4498_v3 = vadd.f32 1.0, %v8252_v48 }
 0xb63   :  { %v4505_v33 = vadd.f32 1.0, %v8254_v21 }
 0xb64   :  { %8259 = vrcp.f32 %v4498_v3 }
 0xb65   :  { %8261 = vrcp.f32 %v4505_v33 }
 0xb69   :  { %v8256_v49 = vpop.eup %8255 }
 0xb6a   :  { %v8258_v63 = vpop.eup %8257  ;;  %v4514_v8 = vadd.f32 1.0, %v8256_v49 }
 0xb6c   :  { %8263 = vrcp.f32 %v4514_v8 }
 0xb6e   :  { %v8260_v40 = vpop.eup %8259 }
 0xb6f   :  { %v8262_v57 = vpop.eup %8261  ;;  %v4518_v62 = vmul.f32 %v8260_v40, %v8258_v63 }
 0xb70   :  { %v4517_v12 = vmul.f32 %v8262_v57, %v9218_v53  ;;  %v3196_v53 = vadd.f32 %v9018_v43, %v9161_v46 }
 0xb72   :  { %v9256_v7 = vadd.f32 %v4518_v62, %v4517_v12 }
 0xb74   :  { %8265 = vtanh.f32 %v9256_v7 }
 0xb76   :  { %v8264_v14 = vpop.eup %8263 }
 0xb7e   :  { %v8266_v42 = vpop.eup %8265 }
 0xb7f   :  { %v4521_v56 = vmul.f32 %v8266_v42, %v8264_v14  ;;  %v3319_v14 = vadd.f32 %v9166_v31, %v9032_v18 }
 0xb81   :  { %7422 = vmatmul.mubr.msk.f32.vlgmr.msra.gmra.mrb[74].mxu0 %vm574_vm2, %v4521_v56  ;;  %7433 = vmatmul.mubr.msk.f32.vlgmr.msra.gmra.mrb[78].mxu1 %vm574_vm2, %v4521_v56 }
 0xb82   :  { %7970 = vmatpush3.bf16.msra.mxu0 %v9088_v47  ;;  %7976 = vmatpush3.bf16.msra.mxu1 %v9090_v26 }
 0xb83   :  { %7971 = vmatprep.subr.bf16.mxu0 %v9465_v20  ;;  %7977 = vmatprep.subr.bf16.mxu1 %v9465_v20 }
 0xb84   :  { %7443 = vmatprep.mubr.msk.f32.mxu0 %vm8400_vm1, %v9466_v35  ;;  %7454 = vmatprep.mubr.msk.f32.mxu1 %vm8400_vm1, %v9466_v35 }
 0xb86   :  { %7973 = vmatpush3.bf16.msra.mxu0 %v9096_v13  ;;  %7979 = vmatpush3.bf16.msra.mxu1 %v9098_v38 }
 0xb87   :  { %7980 = vmatprep.subr.bf16.mxu0 %v9465_v20  ;;  %7986 = vmatprep.subr.bf16.mxu1 %v9465_v20 }
 0xb89   :  { %7444 = vmatmul.mubr.msk.f32.vlgmr.msra.gmra.mrb[76].mxu0 %vm574_vm2, %v4521_v56  ;;  %7455 = vmatmul.mubr.msk.f32.vlgmr.msra.gmra.mrb[80].mxu1 %vm574_vm2, %v4521_v56 }
 0xb8a   :  { %7982 = vmatpush3.bf16.msra.mxu0 %v9042_v58  ;;  %7988 = vmatpush3.bf16.msra.mxu1 %v9044_v52 }
 0xb8b   :  { %7983 = vmatprep.subr.bf16.mxu0 %v9465_v20  ;;  %7989 = vmatprep.subr.bf16.mxu1 %v9465_v20 }
 0xb8c   :  { %7465 = vmatprep.mubr.msk.f32.mxu0 %vm8400_vm1, %v9466_v35  ;;  %7476 = vmatprep.mubr.msk.f32.mxu1 %vm8400_vm1, %v9466_v35 }
 0xb8e   :  { %7985 = vmatpush3.bf16.msra.mxu0 %v9056_v17  ;;  %7991 = vmatpush3.bf16.msra.mxu1 %v9058_v29 }
 0xb8f   :  { %7992 = vmatprep.subr.bf16.mxu0 %v9465_v20  ;;  %7998 = vmatprep.subr.bf16.mxu1 %v9465_v20 }
 0xc54   :  { %v4591_v60 = vpop.f32.mrb[74].mxu0  ;;  %v4661_v19 = vpop.f32.mrb[78].mxu1 }
 0xc55   :  { %v4805_v0 = vadd.f32 %v4591_v60, %v3196_v53  ;;  %v4812_v39 = vadd.f32 %v4661_v19, %v3314_v11  ;;  %v7423_v45 = vpop.f32.mrb[75].mxu0  ;;  %v7434_v1 = vpop.f32.mrb[79].mxu1 }
 0xc57   :  { %v6339_v32 = vmul.f32 -1.442695, %v4805_v0  ;;  %v6340_v22 = vmul.f32 -1.442695, %v4812_v39 }
 0xc59   :  { %8267 = vpow2.f32 %v6339_v32 }
 0xc5a   :  { %8269 = vpow2.f32 %v6340_v22 }
 0xc5c   :  { %v4731_v16 = vpop.f32.mrb[76].mxu0  ;;  %v4801_v37 = vpop.f32.mrb[80].mxu1 }
 0xc5d   :  { %v4819_v5 = vadd.f32 %v4731_v16, %v9142_v4  ;;  %v4821_v59 = vadd.f32 %v4801_v37, %v9144_v51  ;;  %v7445_v43 = vpop.f32.mrb[77].mxu0  ;;  %v7456_v54 = vpop.f32.mrb[81].mxu1 }
 0xc5f   :  { %v6341_v50 = vmul.f32 -1.442695, %v4821_v59 }
 0xc61   :  { %8271 = vpow2.f32 %v6341_v50 }
 0xc62   :  { %8273 = vtanh.f32 %v4819_v5 }
 0xc63   :  { %v8268_v10 = vpop.eup %8267 }
 0xc64   :  { %v8270_v55 = vpop.eup %8269  ;;  %v4809_v48 = vadd.f32 1.0, %v8268_v10 }
 0xc65   :  { %v4816_v21 = vadd.f32 1.0, %v8270_v55 }
 0xc66   :  { %8275 = vrcp.f32 %v4809_v48 }
 0xc67   :  { %8277 = vrcp.f32 %v4816_v21 }
 0xc6b   :  { %v8272_v3 = vpop.eup %8271 }
 0xc6c   :  { %v8274_v33 = vpop.eup %8273  ;;  %v4825_v57 = vadd.f32 1.0, %v8272_v3 }
 0xc6e   :  { %8279 = vrcp.f32 %v4825_v57 }
 0xc70   :  { %v8276_v49 = vpop.eup %8275 }
 0xc71   :  { %v8278_v63 = vpop.eup %8277  ;;  %v4829_v40 = vmul.f32 %v8276_v49, %v8274_v33 }
 0xc72   :  { %v4828_v4 = vmul.f32 %v8278_v63, %v9256_v7  ;;  %v3201_v7 = vadd.f32 %v9161_v46, %v9030_v61  ;;  %v3206_v63 = vadd.f32 %v9026_v15, %v9161_v46 }
 0xc74   :  { %v9294_v51 = vadd.f32 %v4829_v40, %v4828_v4  ;;  %v3324_v40 = vadd.f32 %v9028_v6, %v9166_v31 }
 0xc76   :  { %8281 = vtanh.f32 %v9294_v51 }
 0xc78   :  { %v8280_v62 = vpop.eup %8279 }
 0xc80   :  { %v8282_v8 = vpop.eup %8281 }
 0xc81   :  { %v4832_v12 = vmul.f32 %v8282_v8, %v8280_v62 }
 0xc83   :  { %7466 = vmatmul.mubr.msk.f32.vlgmr.msra.gmra.mrb[78].mxu0 %vm574_vm2, %v4832_v12  ;;  %7477 = vmatmul.mubr.msk.f32.vlgmr.msra.gmra.mrb[82].mxu1 %vm574_vm2, %v4832_v12 }
 0xc84   :  { %7994 = vmatpush3.bf16.msra.mxu0 %v9088_v47  ;;  %8000 = vmatpush3.bf16.msra.mxu1 %v9090_v26 }
 0xc85   :  { %7995 = vmatprep.subr.bf16.mxu0 %v9465_v20  ;;  %8001 = vmatprep.subr.bf16.mxu1 %v9465_v20 }
 0xc86   :  { %7487 = vmatprep.mubr.msk.f32.mxu0 %vm8400_vm1, %v9466_v35  ;;  %7498 = vmatprep.mubr.msk.f32.mxu1 %vm8400_vm1, %v9466_v35 }
 0xc88   :  { %7997 = vmatpush3.bf16.msra.mxu0 %v9096_v13  ;;  %8003 = vmatpush3.bf16.msra.mxu1 %v9098_v38 }
 0xc89   :  { %8004 = vmatprep.subr.bf16.mxu0 %v9465_v20  ;;  %8010 = vmatprep.subr.bf16.mxu1 %v9465_v20 }
 0xc8b   :  { %7488 = vmatmul.mubr.msk.f32.vlgmr.msra.gmra.mrb[80].mxu0 %vm574_vm2, %v4832_v12  ;;  %7499 = vmatmul.mubr.msk.f32.vlgmr.msra.gmra.mrb[84].mxu1 %vm574_vm2, %v4832_v12 }
 0xc8c   :  { %8006 = vmatpush3.bf16.msra.mxu0 %v9042_v58  ;;  %8012 = vmatpush3.bf16.msra.mxu1 %v9044_v52 }
 0xc8d   :  { %8007 = vmatprep.subr.bf16.mxu0 %v9465_v20  ;;  %8013 = vmatprep.subr.bf16.mxu1 %v9465_v20 }
 0xc8e   :  { %7509 = vmatprep.mubr.msk.f32.mxu0 %vm8400_vm1, %v9466_v35  ;;  %7520 = vmatprep.mubr.msk.f32.mxu1 %vm8400_vm1, %v9466_v35 }
 0xc90   :  { %8009 = vmatpush3.bf16.msra.mxu0 %v9056_v17  ;;  %8015 = vmatpush3.bf16.msra.mxu1 %v9058_v29 }
 0xc91   :  { %8016 = vmatprep.subr.bf16.mxu0 %v9465_v20  ;;  %8022 = vmatprep.subr.bf16.mxu1 %v9465_v20 }
 0xd56   :  { %v4902_v42 = vpop.f32.mrb[78].mxu0  ;;  %v4972_v56 = vpop.f32.mrb[82].mxu1 }
 0xd57   :  { %v5116_v53 = vadd.f32 %v4902_v42, %v3201_v7  ;;  %v5123_v11 = vadd.f32 %v4972_v56, %v3319_v14  ;;  %v7467_v60 = vpop.f32.mrb[79].mxu0  ;;  %v7478_v19 = vpop.f32.mrb[83].mxu1 }
 0xd59   :  { %v6346_v0 = vmul.f32 -1.442695, %v5116_v53  ;;  %v6347_v39 = vmul.f32 -1.442695, %v5123_v11 }
 0xd5b   :  { %8283 = vpow2.f32 %v6346_v0 }
 0xd5c   :  { %8285 = vpow2.f32 %v6347_v39 }
 0xd5e   :  { %v5042_v45 = vpop.f32.mrb[80].mxu0  ;;  %v5112_v1 = vpop.f32.mrb[84].mxu1 }
 0xd5f   :  { %v5130_v32 = vadd.f32 %v5042_v45, %v9154_v27  ;;  %v5132_v22 = vadd.f32 %v5112_v1, %v9156_v30  ;;  %v7489_v61 = vpop.f32.mrb[81].mxu0  ;;  %v7500_v16 = vpop.f32.mrb[85].mxu1 }
 0xd61   :  { %v6348_v37 = vmul.f32 -1.442695, %v5132_v22 }
 0xd63   :  { %8287 = vpow2.f32 %v6348_v37 }
 0xd64   :  { %8289 = vtanh.f32 %v5130_v32 }
 0xd65   :  { %v8284_v18 = vpop.eup %8283 }
 0xd66   :  { %v8286_v5 = vpop.eup %8285  ;;  %v5120_v59 = vadd.f32 1.0, %v8284_v18 }
 0xd67   :  { %v5127_v43 = vadd.f32 1.0, %v8286_v5 }
 0xd68   :  { %8291 = vrcp.f32 %v5120_v59 }
 0xd69   :  { %8293 = vrcp.f32 %v5127_v43 }
 0xd6d   :  { %v8288_v54 = vpop.eup %8287 }
 0xd6e   :  { %v8290_v50 = vpop.eup %8289  ;;  %v5136_v21 = vadd.f32 1.0, %v8288_v54 }
 0xd70   :  { %8295 = vrcp.f32 %v5136_v21 }
 0xd72   :  { %v8292_v10 = vpop.eup %8291 }
 0xd73   :  { %v8294_v55 = vpop.eup %8293  ;;  %v5140_v48 = vmul.f32 %v8292_v10, %v8290_v50 }
 0xd74   :  { %v5139_v27 = vmul.f32 %v8294_v55, %v9294_v51 }
 0xd76   :  { %v9332_v30 = vadd.f32 %v5140_v48, %v5139_v27 }
 0xd78   :  { %8297 = vtanh.f32 %v9332_v30 }
 0xd7a   :  { %v8296_v3 = vpop.eup %8295 }
 0xd82   :  { %v8298_v33 = vpop.eup %8297 }
 0xd83   :  { %v5143_v49 = vmul.f32 %v8298_v33, %v8296_v3 }
 0xd85   :  { %7510 = vmatmul.mubr.msk.f32.vlgmr.msra.gmra.mrb[82].mxu0 %vm574_vm2, %v5143_v49  ;;  %7521 = vmatmul.mubr.msk.f32.vlgmr.msra.gmra.mrb[86].mxu1 %vm574_vm2, %v5143_v49 }
 0xd86   :  { %8018 = vmatpush3.bf16.msra.mxu0 %v9088_v47  ;;  %8024 = vmatpush3.bf16.msra.mxu1 %v9090_v26 }
 0xd87   :  { %8019 = vmatprep.subr.bf16.mxu0 %v9465_v20  ;;  %8025 = vmatprep.subr.bf16.mxu1 %v9465_v20 }
 0xd88   :  { %7531 = vmatprep.mubr.msk.f32.mxu0 %vm8400_vm1, %v9466_v35  ;;  %7542 = vmatprep.mubr.msk.f32.mxu1 %vm8400_vm1, %v9466_v35 }
 0xd8a   :  { %8021 = vmatpush3.bf16.msra.mxu0 %v9096_v13  ;;  %8027 = vmatpush3.bf16.msra.mxu1 %v9098_v38 }
 0xd8b   :  { %8028 = vmatprep.subr.bf16.mxu0 %v9465_v20  ;;  %8034 = vmatprep.subr.bf16.mxu1 %v9465_v20 }
 0xd8d   :  { %7532 = vmatmul.mubr.msk.f32.vlgmr.msra.gmra.mrb[84].mxu0 %vm574_vm2, %v5143_v49  ;;  %7543 = vmatmul.mubr.msk.f32.vlgmr.msra.gmra.mrb[88].mxu1 %vm574_vm2, %v5143_v49 }
 0xd8e   :  { %8030 = vmatpush3.bf16.msra.mxu0 %v9042_v58  ;;  %8036 = vmatpush3.bf16.msra.mxu1 %v9044_v52 }
 0xd8f   :  { %8031 = vmatprep.subr.bf16.mxu0 %v9465_v20  ;;  %8037 = vmatprep.subr.bf16.mxu1 %v9465_v20 }
 0xd90   :  { %7553 = vmatprep.mubr.msk.f32.mxu0 %vm8400_vm1, %v9466_v35  ;;  %7564 = vmatprep.mubr.msk.f32.mxu1 %vm8400_vm1, %v9466_v35 }
 0xd92   :  { %8033 = vmatpush3.bf16.msra.mxu0 %v9056_v17  ;;  %8039 = vmatpush3.bf16.msra.mxu1 %v9058_v29 }
 0xd93   :  { %8040 = vmatprep.subr.bf16.mxu0 %v9465_v20  ;;  %8046 = vmatprep.subr.bf16.mxu1 %v9465_v20 }
 0xe58   :  { %v5213_v57 = vpop.f32.mrb[82].mxu0  ;;  %v5283_v4 = vpop.f32.mrb[86].mxu1 }
 0xe59   :  { %v5427_v51 = vadd.f32 %v5213_v57, %v3206_v63  ;;  %v5434_v62 = vadd.f32 %v5283_v4, %v3324_v40  ;;  %v7511_v8 = vpop.f32.mrb[83].mxu0  ;;  %v7522_v12 = vpop.f32.mrb[87].mxu1 }
 0xe5b   :  { %v6353_v7 = vmul.f32 -1.442695, %v5427_v51  ;;  %v6354_v14 = vmul.f32 -1.442695, %v5434_v62 }
 0xe5d   :  { %8299 = vpow2.f32 %v6353_v7 }
 0xe5e   :  { %8301 = vpow2.f32 %v6354_v14 }
 0xe60   :  { %v5353_v42 = vpop.f32.mrb[84].mxu0  ;;  %v5423_v56 = vpop.f32.mrb[88].mxu1 }
 0xe61   :  { %v5441_v53 = vadd.f32 %v5353_v42, %v9150_v24  ;;  %v5443_v11 = vadd.f32 %v5423_v56, %v9152_v36  ;;  %v7533_v15 = vpop.f32.mrb[85].mxu0  ;;  %v7544_v60 = vpop.f32.mrb[89].mxu1 }
 0xe62   :  { %v3334_v15 = vadd.f32 %v9126_v28, %v9166_v31 }
 0xe63   :  { %v6355_v19 = vmul.f32 -1.442695, %v5443_v11 }
 0xe65   :  { %8303 = vpow2.f32 %v6355_v19 }
 0xe66   :  { %8305 = vtanh.f32 %v5441_v53  ;;  %v6081_v53 = vld [vmem:[%s9458_s7 + $0x18] sm:$0xff] }
 0xe67   :  { %v8300_v6 = vpop.eup %8299 }
 0xe68   :  { %v8302_v0 = vpop.eup %8301  ;;  %v5431_v39 = vadd.f32 1.0, %v8300_v6 }
 0xe69   :  { %v5438_v45 = vadd.f32 1.0, %v8302_v0 }
 0xe6a   :  { %8307 = vrcp.f32 %v5431_v39 }
 0xe6b   :  { %8309 = vrcp.f32 %v5438_v45 }
 0xe6f   :  { %v8304_v1 = vpop.eup %8303 }
 0xe70   :  { %v8306_v32 = vpop.eup %8305  ;;  %v5447_v37 = vadd.f32 1.0, %v8304_v1 }
 0xe72   :  { %8311 = vrcp.f32 %v5447_v37 }
 0xe74   :  { %v8308_v22 = vpop.eup %8307 }
 0xe75   :  { %v8310_v61 = vpop.eup %8309  ;;  %v5451_v16 = vmul.f32 %v8308_v22, %v8306_v32 }
 0xe76   :  { %v5450_v24 = vmul.f32 %v8310_v61, %v9332_v30 }
 0xe78   :  { %v9370_v36 = vadd.f32 %v5451_v16, %v5450_v24 }
 0xe7a   :  { %8313 = vtanh.f32 %v9370_v36 }
 0xe7c   :  { %v8312_v18 = vpop.eup %8311 }
 0xe84   :  { %v8314_v5 = vpop.eup %8313 }
 0xe85   :  { %v5454_v59 = vmul.f32 %v8314_v5, %v8312_v18 }
 0xe87   :  { %7554 = vmatmul.mubr.msk.f32.vlgmr.msra.gmra.mrb[86].mxu0 %vm574_vm2, %v5454_v59  ;;  %7565 = vmatmul.mubr.msk.f32.vlgmr.msra.gmra.mrb[90].mxu1 %vm574_vm2, %v5454_v59 }
 0xe88   :  { %8042 = vmatpush3.bf16.msra.mxu0 %v9088_v47  ;;  %8048 = vmatpush3.bf16.msra.mxu1 %v9090_v26 }
 0xe89   :  { %8043 = vmatprep.subr.bf16.mxu0 %v9465_v20  ;;  %8049 = vmatprep.subr.bf16.mxu1 %v9465_v20 }
 0xe8a   :  { %7575 = vmatprep.mubr.msk.f32.mxu0 %vm8400_vm1, %v9466_v35  ;;  %7586 = vmatprep.mubr.msk.f32.mxu1 %vm8400_vm1, %v9466_v35 }
 0xe8c   :  { %8045 = vmatpush3.bf16.msra.mxu0 %v9096_v13  ;;  %8051 = vmatpush3.bf16.msra.mxu1 %v9098_v38 }
 0xe8d   :  { %8052 = vmatprep.subr.bf16.mxu0 %v9465_v20  ;;  %8058 = vmatprep.subr.bf16.mxu1 %v9465_v20 }
 0xe8f   :  { %7576 = vmatmul.mubr.msk.f32.vlgmr.msra.gmra.mrb[88].mxu0 %vm574_vm2, %v5454_v59  ;;  %7587 = vmatmul.mubr.msk.f32.vlgmr.msra.gmra.mrb[92].mxu1 %vm574_vm2, %v5454_v59 }
 0xe90   :  { %8054 = vmatpush3.bf16.msra.mxu0 %v9042_v58  ;;  %8060 = vmatpush3.bf16.msra.mxu1 %v9044_v52  ;;  %v3211_v58 = vadd.f32 %v9161_v46, %v9128_v34  ;;  %v3329_v52 = vadd.f32 %v9166_v31, %v9130_v44 }
 0xe91   :  { %8055 = vmatprep.subr.bf16.mxu0 %v9465_v20  ;;  %8061 = vmatprep.subr.bf16.mxu1 %v9465_v20 }
 0xe92   :  { %7597 = vmatprep.mubr.msk.f32.mxu0 %vm8400_vm1, %v9466_v35  ;;  %7608 = vmatprep.mubr.msk.f32.mxu1 %vm8400_vm1, %v9466_v35 }
 0xe94   :  { %8057 = vmatpush3.bf16.msra.mxu0 %v9056_v17  ;;  %8063 = vmatpush3.bf16.msra.mxu1 %v9058_v29 }
 0xe95   :  { %8064 = vmatprep.subr.bf16.mxu0 %v9465_v20  ;;  %8070 = vmatprep.subr.bf16.mxu1 %v9465_v20 }
 0xf5a   :  { %v5524_v43 = vpop.f32.mrb[86].mxu0  ;;  %v5594_v54 = vpop.f32.mrb[90].mxu1 }
 0xf5b   :  { %v5738_v50 = vadd.f32 %v5524_v43, %v3211_v58  ;;  %v5745_v10 = vadd.f32 %v5594_v54, %v3329_v52  ;;  %v7555_v55 = vpop.f32.mrb[87].mxu0  ;;  %v7566_v48 = vpop.f32.mrb[91].mxu1 }
 0xf5c   :  { %v6370_v48 = vld [vmem:[%s9459_s8] ss:$0 sm:$0xff] }
 0xf5d   :  { %v6360_v21 = vmul.f32 -1.442695, %v5738_v50  ;;  %v6361_v17 = vmul.f32 -1.442695, %v5745_v10 }
 0xf5f   :  { %8315 = vpow2.f32 %v6360_v21 }
 0xf60   :  { %8317 = vpow2.f32 %v6361_v17 }
 0xf62   :  { %v5664_v29 = vpop.f32.mrb[88].mxu0  ;;  %v5734_v27 = vpop.f32.mrb[92].mxu1 }
 0xf63   :  { %v5752_v30 = vadd.f32 %v5664_v29, %v9172_v2  ;;  %v5754_v3 = vadd.f32 %v5734_v27, %v9174_v9  ;;  %v7577_v34 = vpop.f32.mrb[89].mxu0  ;;  %v7588_v33 = vpop.f32.mrb[93].mxu1 }
 0xf65   :  { %v6362_v49 = vmul.f32 -1.442695, %v5754_v3 }
 0xf67   :  { %8319 = vpow2.f32 %v6362_v49 }
 0xf68   :  { %8321 = vtanh.f32 %v5752_v30 }
 0xf69   :  { %v8316_v44 = vpop.eup %8315 }
 0xf6a   :  { %v8318_v63 = vpop.eup %8317  ;;  %v5742_v40 = vadd.f32 1.0, %v8316_v44 }
 0xf6b   :  { %v5749_v57 = vadd.f32 1.0, %v8318_v63 }
 0xf6c   :  { %8323 = vrcp.f32 %v5742_v40 }
 0xf6d   :  { %8325 = vrcp.f32 %v5749_v57 }
 0xf71   :  { %v8320_v4 = vpop.eup %8319 }
 0xf72   :  { %v8322_v51 = vpop.eup %8321  ;;  %v5758_v7 = vadd.f32 1.0, %v8320_v4 }
 0xf74   :  { %8327 = vrcp.f32 %v5758_v7 }
 0xf76   :  { %v8324_v62 = vpop.eup %8323 }
 0xf77   :  { %v8326_v8 = vpop.eup %8325  ;;  %v5762_v12 = vmul.f32 %v8324_v62, %v8322_v51 }
 0xf78   :  { %v5761_v2 = vmul.f32 %v8326_v8, %v9370_v36 }
 0xf7a   :  { %v5763_v9 = vadd.f32 %v5762_v12, %v5761_v2 }
 0xf7c   :  { %8329 = vtanh.f32 %v5763_v9 }
 0xf7e   :  { %v8328_v14 = vpop.eup %8327 }
 0xf86   :  { %v8330_v42 = vpop.eup %8329 }
 0xf87   :  { %v5765_v56 = vmul.f32 %v8330_v42, %v8328_v14 }
 0xf89   :  { %7598 = vmatmul.mubr.msk.f32.vlgmr.msra.gmra.mrb[90].mxu0 %vm574_vm2, %v5765_v56  ;;  %7609 = vmatmul.mubr.msk.f32.vlgmr.msra.gmra.mrb[94].mxu1 %vm574_vm2, %v5765_v56 }
 0xf8a   :  { %8066 = vmatpush3.bf16.msra.mxu0 %v9088_v47  ;;  %8072 = vmatpush3.bf16.msra.mxu1 %v9090_v26  ;;  %v6078_v47 = vld [vmem:[%s9458_s7] sm:$0xff]  ;;  %v6079_v26 = vld [vmem:[%s9458_s7 + $0x8] sm:$0xff] }
 0xf8b   :  { %8067 = vmatprep.subr.bf16.mxu0 %v9465_v20  ;;  %8073 = vmatprep.subr.bf16.mxu1 %v9465_v20 }
 0xf8c   :  { %7619 = vmatprep.mubr.msk.f32.mxu0 %vm8400_vm1, %v9466_v35  ;;  %7630 = vmatprep.mubr.msk.f32.mxu1 %vm8400_vm1, %v9466_v35 }
 0xf8e   :  { %8069 = vmatpush3.bf16.msra.mxu0 %v9096_v13  ;;  %8075 = vmatpush3.bf16.msra.mxu1 %v9098_v38  ;;  %v6080_v13 = vld [vmem:[%s9458_s7 + $0x10] sm:$0xff]  ;;  %v8077_v38 = vpack.c.bf16 %v6079_v26, %v6078_v47 }
 0xf8f   :  { %8076 = vmatprep.subr.bf16.mxu0 %v9465_v20  ;;  %v8080_v11 = vpack.c.bf16 %v6081_v53, %v6080_v13 }
 0xf91   :  { %7620 = vmatmul.mubr.msk.f32.vlgmr.msra.gmra.mrb[92].mxu0 %vm574_vm2, %v5765_v56  ;;  %7631 = vmatmul.mubr.msk.f32.vlgmr.msra.gmra.mrb[96].mxu1 %vm574_vm2, %v5765_v56 }
 0xf92   :  { %7641 = vmatprep.mubr.msk.f32.mxu0 %vm8400_vm1, %v9466_v35  ;;  %8078 = vmatpush3.bf16.msra.mxu0 %v8077_v38  ;;  %v3216_v35 = vadd.f32 %v9124_v41, %v9161_v46 }
 0xf93   :  { %8079 = vmatprep.subr.bf16.mxu0 %v9465_v20 }
 0xf96   :  { %8081 = vmatpush3.bf16.msra.mxu0 %v8080_v11 }
0x105c   :  { %v5835_v60 = vpop.f32.mrb[90].mxu0  ;;  %v5905_v19 = vpop.f32.mrb[94].mxu1 }
0x105d   :  { %v6049_v6 = vadd.f32 %v5835_v60, %v3216_v35  ;;  %v6056_v0 = vadd.f32 %v5905_v19, %v3334_v15  ;;  %v7599_v39 = vpop.f32.mrb[91].mxu0  ;;  %v7610_v45 = vpop.f32.mrb[95].mxu1 }
0x105f   :  { %v6367_v1 = vmul.f32 -1.442695, %v6049_v6  ;;  %v6368_v32 = vmul.f32 -1.442695, %v6056_v0 }
0x1061   :  { %8331 = vpow2.f32 %v6367_v1 }
0x1062   :  { %8333 = vpow2.f32 %v6368_v32 }
0x1064   :  { %v5975_v22 = vpop.f32.mrb[92].mxu0  ;;  %v6045_v61 = vpop.f32.mrb[96].mxu1 }
0x1065   :  { %v6063_v20 = vadd.f32 %v5975_v22, %v9168_v25  ;;  %v6065_v16 = vadd.f32 %v6045_v61, %v9170_v23  ;;  %v7621_v41 = vpop.f32.mrb[93].mxu0  ;;  %v7632_v46 = vpop.f32.mrb[97].mxu1 }
0x1067   :  { %v6369_v37 = vmul.f32 -1.442695, %v6065_v16 }
0x1069   :  { %8335 = vpow2.f32 %v6369_v37 }
0x106a   :  { %8337 = vtanh.f32 %v6063_v20 }
0x106b   :  { %v8332_v28 = vpop.eup %8331 }
0x106c   :  { %v8334_v31 = vpop.eup %8333  ;;  %v6053_v24 = vadd.f32 1.0, %v8332_v28 }
0x106d   :  { %v6060_v36 = vadd.f32 1.0, %v8334_v31 }
0x106e   :  { %8339 = vrcp.f32 %v6053_v24 }
0x106f   :  { %8341 = vrcp.f32 %v6060_v36 }
0x1073   :  { %v8336_v18 = vpop.eup %8335 }
0x1074   :  { %v8338_v5 = vpop.eup %8337  ;;  %v6069_v43 = vadd.f32 1.0, %v8336_v18 }
0x1076   :  { %8343 = vrcp.f32 %v6069_v43 }
0x1078   :  { %v8340_v59 = vpop.eup %8339 }
0x1079   :  { %v8342_v58 = vpop.eup %8341  ;;  %v6073_v52 = vmul.f32 %v8340_v59, %v8338_v5 }
0x107a   :  { %v6072_v25 = vmul.f32 %v8342_v58, %v5763_v9 }
0x107c   :  { %v6074_v54 = vadd.f32 %v6073_v52, %v6072_v25 }
0x107e   :  { %8345 = vtanh.f32 %v6074_v54 }
0x1080   :  { %v8344_v23 = vpop.eup %8343 }
0x1088   :  { %v8346_v50 = vpop.eup %8345 }
0x1089   :  { %v6076_v10 = vmul.f32 %v8346_v50, %v8344_v23 }
0x108b   :  { %v6077_v55 = vmax.f32 %v6076_v10, 0.0 }
0x108d   :  { %7642 = vmatmul.mubr.msk.f32.vlgmr.msra.gmra.mrb[94].mxu0 %vm574_vm2, %v6077_v55 }
0x1160   :  { %v6158_v21 = vpop.f32.mrb[94].mxu0 }
0x1161   :  { %v6159_v17 = vadd.f32 %v6370_v48, %v6158_v21  ;;  %v7643_v29 = vpop.f32.mrb[95].mxu0 }
0x1163   :  { %6163 = vst.msk [vmem:[%s9460_s9] sm:$0xff] %vm6162_vm3, %v6159_v17 }
0x1164   :  { %6168 = vsyncpa [#allocation4], 1 }
0x1165   :  { %6169 = vsyncpa [#allocation6], 1 }

</bundles_post_ra>
